<compile_context>
chip_gen: v7x
topology: tpu7x:2x2x1
jax: 0.10.0
libtpu: 0.0.40
codegen_flags: <defaults>
</compile_context>

<pallas_src>
import functools
import math

import jax
import jax.numpy as jnp
from jax.experimental import pallas as pl
from jax.experimental.pallas import tpu as pltpu

EPS = 1e-5                       # nn.LayerNorm default
MXU_DTYPE = jnp.bfloat16         # matmul-operand dtype (f32 accumulation)
_VMEM_LIMIT = 48 * 1024 * 1024   # under v7x's 64 MiB physical VMEM


# ------------------------------ small helpers ------------------------------ #

def _row_tile(n, cap=512):
    """Largest row tile dividing n that is <= cap and sublane-aligned
    (multiple of 8) or the full extent."""
    cap = max(1, min(n, cap))
    for c in range(cap, 0, -1):
        if n % c == 0 and (c % 8 == 0 or c == n):
            return c
    return n


def _vmem_row_cap(per_row_bytes, budget_bytes=16 * 1024 * 1024, hard_cap=512):
    """Cap the row tile so row-dependent VMEM stays within a per-generation
    safe budget (v7x has only 64 MiB physical VMEM)."""
    return int(max(8, min(hard_cap, budget_bytes // max(per_row_bytes, 1))))


def _cparams(sem):
    return pltpu.CompilerParams(dimension_semantics=sem,
                                vmem_limit_bytes=_VMEM_LIMIT)


def _layernorm_f32(x, g, b):
    """x: (rows, D) f32; g/b: (1, D) f32."""
    mu = jnp.mean(x, axis=-1, keepdims=True)
    var = jnp.mean(jnp.square(x - mu), axis=-1, keepdims=True)
    return (x - mu) * jax.lax.rsqrt(var + EPS) * g + b


# ------------------------------ Pallas kernels ------------------------------ #

def _attn_fused_kernel(*refs, nhead, ln_kv, has_bias):
    """Fully fused attention block for one (batch, row-tile) grid point.

    Computes: out = x_row + LN_attn( MHA(LN(x)+pos, KV) @ Wo + bo )
    K/V for the whole KV sequence of this batch are projected once (per batch)
    into VMEM scratch when the row-tile index is 0.
    """
    it = iter(refs)
    x_ref = next(it)        # (1, tSq, D)  residual / Q source rows
    pos_ref = next(it)      # (tSq, D)     query positional embedding rows
    kv_ref = next(it)       # (1, Skv, D)  full KV source for this batch
    kvpos_ref = next(it)    # (Skv, D)     key positional embedding
    bias_ref = next(it) if has_bias else None   # (1, 1, Skv) additive key bias
    g1_ref = next(it); b1_ref = next(it)        # pre-attn LayerNorm (norm1/norm2)
    wq_ref = next(it); bq_ref = next(it)        # (nhead, D, dh), (nhead, 1, dh)
    wk_ref = next(it); bk_ref = next(it)
    wv_ref = next(it); bv_ref = next(it)
    wo_ref = next(it); bo_ref = next(it)        # (nhead, dh, D), (1, D)
    g2_ref = next(it); b2_ref = next(it)        # post-attn LayerNorm
    o_ref = next(it)                            # (1, tSq, D)
    k_scr = next(it); v_scr = next(it)          # (nhead, Skv, dh) bf16 scratch

    # ---- once per batch: project K / V for the whole KV sequence ---- #
    @pl.when(pl.program_id(1) == 0)
    def _():
        kv = kv_ref[0].astype(jnp.float32)                 # (Skv, D)
        if ln_kv:                                          # self-attn: K/V see LN1 too
            kv = _layernorm_f32(kv, g1_ref[...], b1_ref[...])
        k_in = (kv + kvpos_ref[...]).astype(MXU_DTYPE)
        v_in = kv.astype(MXU_DTYPE)
        for h in range(nhead):                             # static, small
            k_scr[h] = (jnp.dot(k_in, wk_ref[h], preferred_element_type=jnp.float32)
                        + bk_ref[h]).astype(MXU_DTYPE)
            v_scr[h] = (jnp.dot(v_in, wv_ref[h], preferred_element_type=jnp.float32)
                        + bv_ref[h]).astype(MXU_DTYPE)

    # ---- per row tile: LN + Q proj + attention + out-proj + LN + residual ---- #
    x = x_ref[0].astype(jnp.float32)                       # (tSq, D)
    ln = _layernorm_f32(x, g1_ref[...], b1_ref[...])
    q_in = (ln + pos_ref[...]).astype(MXU_DTYPE)           # (tSq, D)
    bias = bias_ref[0] if has_bias else None               # (1, Skv)

    tSq, D = x.shape
    trans_b = (((1,), (1,)), ((), ()))                     # q @ k^T, no transpose op

    def head_body(h, y):
        # per-head Q projection (weights pre-sliced head-major at trace time;
        # the 1/sqrt(dh) softmax scale is folded into Wq/bq).
        qh = (jnp.dot(q_in, wq_ref[h], preferred_element_type=jnp.float32)
              + bq_ref[h]).astype(MXU_DTYPE)               # (tSq, dh)
        s = jax.lax.dot_general(qh, k_scr[h], trans_b,
                                preferred_element_type=jnp.float32)  # (tSq, Skv)
        if bias is not None:
            s = s + bias                                   # key-padding bias
        s = s - jnp.max(s, axis=-1, keepdims=True)
        p = jnp.exp(s)
        p = p * pl.reciprocal(jnp.sum(p, axis=-1, keepdims=True), approx=True)
        pv = jnp.dot(p.astype(MXU_DTYPE), v_scr[h],
                     preferred_element_type=jnp.float32)   # (tSq, dh)
        # fold this head's output through its Wo slice -> no concat / lane slices
        return y + jnp.dot(pv.astype(MXU_DTYPE), wo_ref[h],
                           preferred_element_type=jnp.float32)       # (tSq, D)

    y = jax.lax.fori_loop(0, nhead, head_body,
                          jnp.zeros((tSq, D), jnp.float32))
    y = y + bo_ref[...]
    y = _layernorm_f32(y, g2_ref[...], b2_ref[...])        # self/cross attn norm
    o_ref[0] = (x + y).astype(o_ref.dtype)                 # residual (dropout=id)


def _ffn_kernel(x_ref, g3_ref, b3_ref, w1_ref, b1_ref, gf_ref, bf_ref,
                w2_ref, b2_ref, o_ref):
    """FFN block on flat rows: x + Linear2(LN(ReLU(Linear1(LN3(x)))))."""
    x = x_ref[...].astype(jnp.float32)                     # (tR, D)
    ln = _layernorm_f32(x, g3_ref[...], b3_ref[...])
    h = jnp.dot(ln.astype(MXU_DTYPE), w1_ref[...],
                preferred_element_type=jnp.float32) + b1_ref[...]
    h = jnp.maximum(h, 0.0)
    h = _layernorm_f32(h, gf_ref[...], bf_ref[...])
    y = jnp.dot(h.astype(MXU_DTYPE), w2_ref[...],
                preferred_element_type=jnp.float32) + b2_ref[...]
    o_ref[...] = (x + y).astype(o_ref.dtype)


# ------------------------------ kernel wrappers ----------------------------- #

def attention_block(x, pos, kv, kv_pos, bias, ln_g, ln_b, ln_kv,
                    wq, bq, wk, bk, wv, bv, wo, bo, g_attn, b_attn, *, nhead):
    """x: (B, Sq, D) f32 (residual + query source); kv: (B, Skv, D) f32;
    pos: (Sq, D); kv_pos: (Skv, D); bias: (B, 1, Skv) f32 or None.
    Returns x + LN_attn(MHA(LN(x)+pos, kv(+kv_pos)) @ Wo + bo), shape (B, Sq, D)."""
    B, Sq, D = x.shape
    Skv = kv.shape[1]
    dh = D // nhead

    # row-dependent VMEM per query row (double-buffered x/pos/out + score row)
    per_row = 6 * D * 4 + Skv * 4 + 2 * D * 2
    tSq = _row_tile(Sq, cap=_vmem_row_cap(per_row))

    xmap = lambda bi, si: (bi, si, 0)
    prow = lambda bi, si: (si, 0)
    kvmap = lambda bi, si: (bi, 0, 0)
    z2 = lambda bi, si: (0, 0)
    z3 = lambda bi, si: (0, 0, 0)

    has_bias = bias is not None
    in_specs = [pl.BlockSpec((1, tSq, D), xmap),
                pl.BlockSpec((tSq, D), prow),
                pl.BlockSpec((1, Skv, D), kvmap),
                pl.BlockSpec((Skv, D), z2)]
    inputs = [x, pos, kv, kv_pos]
    if has_bias:
        in_specs.append(pl.BlockSpec((1, 1, Skv), kvmap))
        inputs.append(bias)
    in_specs += [pl.BlockSpec((1, D), z2), pl.BlockSpec((1, D), z2),
                 pl.BlockSpec((nhead, D, dh), z3), pl.BlockSpec((nhead, 1, dh), z3),
                 pl.BlockSpec((nhead, D, dh), z3), pl.BlockSpec((nhead, 1, dh), z3),
                 pl.BlockSpec((nhead, D, dh), z3), pl.BlockSpec((nhead, 1, dh), z3),
                 pl.BlockSpec((nhead, dh, D), z3), pl.BlockSpec((1, D), z2),
                 pl.BlockSpec((1, D), z2), pl.BlockSpec((1, D), z2)]
    inputs += [ln_g.reshape(1, D), ln_b.reshape(1, D),
               wq, bq, wk, bk, wv, bv, wo, bo.reshape(1, D),
               g_attn.reshape(1, D), b_attn.reshape(1, D)]

    kern = functools.partial(_attn_fused_kernel, nhead=nhead, ln_kv=ln_kv,
                             has_bias=has_bias)
    return pl.pallas_call(
        kern,
        out_shape=jax.ShapeDtypeStruct((B, Sq, D), x.dtype),
        grid=(B, Sq // tSq),
        in_specs=in_specs,
        out_specs=pl.BlockSpec((1, tSq, D), xmap),
        scratch_shapes=[pltpu.VMEM((nhead, Skv, dh), MXU_DTYPE),
                        pltpu.VMEM((nhead, Skv, dh), MXU_DTYPE)],
        # batch axis parallel (megacore), row-tile axis arbitrary (K/V scratch carry)
        compiler_params=_cparams(("parallel", "arbitrary")),
    )(*inputs)


def ffn_block(x, g3, b3, w1, b1, gf, bf, w2, b2):
    """x: (B, S, D) -> x + FFN(LN3(x)), computed on the flat (B*S, D) view."""
    B, S, D = x.shape
    FF = w1.shape[1]
    R = B * S
    x2 = x.reshape(R, D)                                   # free leading-dim merge

    per_row = 4 * D * 4 + 2 * FF * 4                       # x/out bufs + f32 hidden
    tR = _row_tile(R, cap=_vmem_row_cap(per_row))

    rmap = lambda ri: (ri, 0)
    zmap = lambda ri: (0, 0)
    out = pl.pallas_call(
        _ffn_kernel,
        out_shape=jax.ShapeDtypeStruct((R, D), x.dtype),
        grid=(R // tR,),
        in_specs=[pl.BlockSpec((tR, D), rmap),
                  pl.BlockSpec((1, D), zmap), pl.BlockSpec((1, D), zmap),
                  pl.BlockSpec((D, FF), zmap), pl.BlockSpec((1, FF), zmap),
                  pl.BlockSpec((1, FF), zmap), pl.BlockSpec((1, FF), zmap),
                  pl.BlockSpec((FF, D), zmap), pl.BlockSpec((1, D), zmap)],
        out_specs=pl.BlockSpec((tR, D), rmap),
        compiler_params=_cparams(("parallel",)),
    )(x2, g3.reshape(1, D), b3.reshape(1, D), w1, b1.reshape(1, FF),
      gf.reshape(1, FF), bf.reshape(1, FF), w2, b2.reshape(1, D))
    return out.reshape(B, S, D)


# ------------------------- TransformerDecoderLayer ------------------------- #

def decoder_layer(params, vis, txt, vis_pos, txt_pos, pad_mask):
    """vis: (HW, B, D); txt: (L, B, D); vis_pos: (HW, 1, D); txt_pos: (L, 1, D);
    pad_mask: (B, L) bool (True = padded key).  Returns (HW, B, D)."""
    nhead = params["nhead"]
    S, B, D = vis.shape
    L = txt.shape[0]
    dh = D // nhead
    scale = 1.0 / math.sqrt(dh)

    # Batch-major internal layout for the attention kernels (lane-dense (rows, D)
    # tiles per batch).  The FFN uses the flat (B*S, D) view directly.
    vis_b = jnp.transpose(vis, (1, 0, 2))          # (B, S, D)
    txt_b = jnp.transpose(txt, (1, 0, 2))          # (B, L, D)
    vpos = vis_pos[:, 0, :]                        # (S, D)
    tpos = txt_pos[:, 0, :]                        # (L, D)
    kp_bias = jnp.where(pad_mask, -1e30, 0.0).astype(jnp.float32)[:, None, :]  # (B,1,L)

    sa, ca = params["self_attn"], params["cross_attn"]

    # Split projection weights head-major at trace time (no in-kernel lane slices)
    # and fold the softmax scale into Wq / bq.
    def heads_w(w):                                # (D, D) -> (nhead, D, dh)
        return jnp.transpose(w.reshape(D, nhead, dh), (1, 0, 2))

    def heads_b(b):                                # (D,) -> (nhead, 1, dh)
        return b.reshape(nhead, 1, dh).astype(jnp.float32)

    def scaled(w):                                 # fold 1/sqrt(dh) into Wq
        return (w.astype(jnp.float32) * scale).astype(w.dtype)

    def attn_weights(p):
        return dict(wq=heads_w(scaled(p["wq"])), bq=heads_b(p["bq"] * scale),
                    wk=heads_w(p["wk"]), bk=heads_b(p["bk"]),
                    wv=heads_w(p["wv"]), bv=heads_b(p["bv"]),
                    wo=p["wo"].reshape(nhead, dh, D), bo=p["bo"])

    saw, caw = attn_weights(sa), attn_weights(ca)

    # --- self-attention block (dropout1 -> identity in eval) ---
    vis_b = attention_block(vis_b, vpos, vis_b, vpos, None,
                            params["norm1_g"], params["norm1_b"], True,
                            saw["wq"], saw["bq"], saw["wk"], saw["bk"],
                            saw["wv"], saw["bv"], saw["wo"], saw["bo"],
                            params["sa_norm_g"], params["sa_norm_b"], nhead=nhead)

    # --- cross-attention block (dropout2 -> identity in eval) ---
    vis_b = attention_block(vis_b, vpos, txt_b, tpos, kp_bias,
                            params["norm2_g"], params["norm2_b"], False,
                            caw["wq"], caw["bq"], caw["wk"], caw["bk"],
                            caw["wv"], caw["bv"], caw["wo"], caw["bo"],
                            params["ca_norm_g"], params["ca_norm_b"], nhead=nhead)

    # --- FFN block (dropout3 -> identity in eval) ---
    vis_b = ffn_block(vis_b, params["norm3_g"], params["norm3_b"],
                      params["ffn_w1"], params["ffn_b1"],
                      params["ffn_ln_g"], params["ffn_ln_b"],
                      params["ffn_w2"], params["ffn_b2"])

    return jnp.transpose(vis_b, (1, 0, 2))         # back to (S, B, D)


# ------------------------------ param setup -------------------------------- #

def init_params(key, d_model, nhead, dim_ff):
    ks = iter(jax.random.split(key, 48))

    def w(shape, scale=0.05):                      # matmul weights -> bf16
        return (scale * jax.random.normal(next(ks), shape)).astype(MXU_DTYPE)

    def bvec(n, scale=0.05):                       # biases stay f32
        return (scale * jax.random.normal(next(ks), (n,))).astype(jnp.float32)

    def ln(n):
        g = (1.0 + 0.1 * jax.random.normal(next(ks), (n,))).astype(jnp.float32)
        b = (0.1 * jax.random.normal(next(ks), (n,))).astype(jnp.float32)
        return g, b

    def attn():
        return {"wq": w((d_model, d_model)), "bq": bvec(d_model),
                "wk": w((d_model, d_model)), "bk": bvec(d_model),
                "wv": w((d_model, d_model)), "bv": bvec(d_model),
                "wo": w((d_model, d_model)), "bo": bvec(d_model)}

    n1g, n1b = ln(d_model); n2g, n2b = ln(d_model); n3g, n3b = ln(d_model)
    sag, sab = ln(d_model); cag, cab = ln(d_model)
    ffg, ffb = ln(dim_ff)
    return {
        "nhead": nhead,
        "norm1_g": n1g, "norm1_b": n1b,
        "norm2_g": n2g, "norm2_b": n2b,
        "norm3_g": n3g, "norm3_b": n3b,
        "sa_norm_g": sag, "sa_norm_b": sab,
        "ca_norm_g": cag, "ca_norm_b": cab,
        "self_attn": attn(),
        "cross_attn": attn(),
        "ffn_w1": w((d_model, dim_ff)), "ffn_b1": bvec(dim_ff),
        "ffn_ln_g": ffg, "ffn_ln_b": ffb,
        "ffn_w2": w((dim_ff, d_model)), "ffn_b2": bvec(d_model),
    }


if __name__ == "__main__":
    # Small shapes consistent with the module's forward contract:
    #   vis: (HW, B, D), txt: (L, B, D), vis_pos: (HW, 1, D), txt_pos: (L, 1, D),
    #   pad_mask: (B, L).  (Real CRIS deployment uses D=512, HW=26*26; keep
    #   d_model / dim_ff multiples of 128 there for lane-dense stores.)
    D, NHEAD, FF = 32, 4, 64     # d_model must be divisible by nhead
    HW, L, B = 16, 8, 2

    root = jax.random.PRNGKey(0)
    kp, kv, kt, kvp, ktp = jax.random.split(root, 5)

    params = init_params(kp, D, NHEAD, FF)
    vis = jax.random.normal(kv, (HW, B, D), dtype=jnp.float32)
    txt = jax.random.normal(kt, (L, B, D), dtype=jnp.float32)
    vis_pos = jax.random.normal(kvp, (HW, 1, D), dtype=jnp.float32)
    txt_pos = jax.random.normal(ktp, (L, 1, D), dtype=jnp.float32)
    # key_padding_mask: True = ignore that key (last two txt tokens padded).
    pad_mask = jnp.zeros((B, L), dtype=bool).at[:, L - 2:].set(True)

    fwd = jax.jit(functools.partial(decoder_layer, params))
    out = fwd(vis, txt, vis_pos, txt_pos, pad_mask)
    jax.block_until_ready(out)
    assert out.shape == (HW, B, D)
    assert bool(jnp.all(jnp.isfinite(out)))
    print("KERNEL_OK")
</pallas_src>

<mosaic_0001>
module attributes {stable_mosaic.version = 11 : i64} {
  func.func @_attn_fused_kernel(%arg0: i32, %arg1: i32, %arg2: memref<1x16x32xf32, #tpu.memory_space<vmem>>, %arg3: memref<16x32xf32, #tpu.memory_space<vmem>>, %arg4: memref<1x16x32xf32, #tpu.memory_space<vmem>>, %arg5: memref<16x32xf32, #tpu.memory_space<vmem>>, %arg6: memref<1x32xf32, #tpu.memory_space<vmem>>, %arg7: memref<1x32xf32, #tpu.memory_space<vmem>>, %arg8: memref<4x32x8xbf16, #tpu.memory_space<vmem>>, %arg9: memref<4x1x8xf32, #tpu.memory_space<vmem>>, %arg10: memref<4x32x8xbf16, #tpu.memory_space<vmem>>, %arg11: memref<4x1x8xf32, #tpu.memory_space<vmem>>, %arg12: memref<4x32x8xbf16, #tpu.memory_space<vmem>>, %arg13: memref<4x1x8xf32, #tpu.memory_space<vmem>>, %arg14: memref<4x8x32xbf16, #tpu.memory_space<vmem>>, %arg15: memref<1x32xf32, #tpu.memory_space<vmem>>, %arg16: memref<1x32xf32, #tpu.memory_space<vmem>>, %arg17: memref<1x32xf32, #tpu.memory_space<vmem>>, %arg18: memref<1x16x32xf32, #tpu.memory_space<vmem>>, %arg19: memref<4x16x8xbf16, #tpu.memory_space<vmem>>, %arg20: memref<4x16x8xbf16, #tpu.memory_space<vmem>>) attributes {dimension_semantics = [#tpu.dimension_semantics<parallel>, #tpu.dimension_semantics<arbitrary>], iteration_bounds = array<i64: 2, 1>, scalar_prefetch = 0 : i64, scratch_operands = 2 : i64, tpu.core_type = #tpu.core_type<tc>, window_params = [{transform_indices = @transform_0, window_bounds = array<i64: 1, 16, 32>}, {transform_indices = @transform_1, window_bounds = array<i64: 16, 32>}, {transform_indices = @transform_2, window_bounds = array<i64: 1, 16, 32>}, {pipeline_mode = #tpu.pipeline_mode<synchronous>, transform_indices = @transform_3, window_bounds = array<i64: 16, 32>}, {pipeline_mode = #tpu.pipeline_mode<synchronous>, transform_indices = @transform_4, window_bounds = array<i64: 1, 32>}, {pipeline_mode = #tpu.pipeline_mode<synchronous>, transform_indices = @transform_5, window_bounds = array<i64: 1, 32>}, {pipeline_mode = #tpu.pipeline_mode<synchronous>, transform_indices = @transform_6, window_bounds = array<i64: 4, 32, 8>}, {pipeline_mode = #tpu.pipeline_mode<synchronous>, transform_indices = @transform_7, window_bounds = array<i64: 4, 1, 8>}, {pipeline_mode = #tpu.pipeline_mode<synchronous>, transform_indices = @transform_8, window_bounds = array<i64: 4, 32, 8>}, {pipeline_mode = #tpu.pipeline_mode<synchronous>, transform_indices = @transform_9, window_bounds = array<i64: 4, 1, 8>}, {pipeline_mode = #tpu.pipeline_mode<synchronous>, transform_indices = @transform_10, window_bounds = array<i64: 4, 32, 8>}, {pipeline_mode = #tpu.pipeline_mode<synchronous>, transform_indices = @transform_11, window_bounds = array<i64: 4, 1, 8>}, {pipeline_mode = #tpu.pipeline_mode<synchronous>, transform_indices = @transform_12, window_bounds = array<i64: 4, 8, 32>}, {pipeline_mode = #tpu.pipeline_mode<synchronous>, transform_indices = @transform_13, window_bounds = array<i64: 1, 32>}, {pipeline_mode = #tpu.pipeline_mode<synchronous>, transform_indices = @transform_14, window_bounds = array<i64: 1, 32>}, {pipeline_mode = #tpu.pipeline_mode<synchronous>, transform_indices = @transform_15, window_bounds = array<i64: 1, 32>}, {transform_indices = @transform_16, window_bounds = array<i64: 1, 16, 32>}]} {
    %c0_i32 = arith.constant 0 : i32
    %0 = arith.cmpi eq, %arg1, %c0_i32 : i32
    %1 = arith.extui %0 : i1 to i32
    %c0_i32_0 = arith.constant 0 : i32
    %2 = arith.cmpi ne, %1, %c0_i32_0 : i32
    scf.if %2 {
      %c0_30 = arith.constant 0 : index
      %c0_31 = arith.constant 0 : index
      %c0_32 = arith.constant 0 : index
      %66 = vector.load %arg4[%c0_30, %c0_31, %c0_32] : memref<1x16x32xf32, #tpu.memory_space<vmem>>, vector<1x16x32xf32>
      %67 = vector.shape_cast %66 : vector<1x16x32xf32> to vector<16x32xf32>
      %c0_33 = arith.constant 0 : index
      %c0_34 = arith.constant 0 : index
      %68 = vector.load %arg6[%c0_33, %c0_34] : memref<1x32xf32, #tpu.memory_space<vmem>>, vector<1x32xf32>
      %c0_35 = arith.constant 0 : index
      %c0_36 = arith.constant 0 : index
      %69 = vector.load %arg7[%c0_35, %c0_36] : memref<1x32xf32, #tpu.memory_space<vmem>>, vector<1x32xf32>
      %cst_37 = arith.constant dense<0.000000e+00> : vector<16xf32>
      %70 = vector.multi_reduction <add>, %67, %cst_37 [1] : vector<16x32xf32> to vector<16xf32>
      %71 = vector.shape_cast %70 : vector<16xf32> to vector<16x1xf32>
      %cst_38 = arith.constant 3.200000e+01 : f32
      %72 = vector.broadcast %cst_38 : f32 to vector<16x1xf32>
      %73 = arith.divf %71, %72 : vector<16x1xf32>
      %74 = vector.broadcast %73 : vector<16x1xf32> to vector<16x32xf32>
      %75 = arith.subf %67, %74 : vector<16x32xf32>
      %76 = arith.mulf %75, %75 : vector<16x32xf32>
      %cst_39 = arith.constant dense<0.000000e+00> : vector<16xf32>
      %77 = vector.multi_reduction <add>, %76, %cst_39 [1] : vector<16x32xf32> to vector<16xf32>
      %78 = vector.shape_cast %77 : vector<16xf32> to vector<16x1xf32>
      %cst_40 = arith.constant 3.200000e+01 : f32
      %79 = vector.broadcast %cst_40 : f32 to vector<16x1xf32>
      %80 = arith.divf %78, %79 : vector<16x1xf32>
      %81 = vector.broadcast %73 : vector<16x1xf32> to vector<16x32xf32>
      %82 = arith.subf %67, %81 : vector<16x32xf32>
      %cst_41 = arith.constant 9.99999974E-6 : f32
      %83 = vector.broadcast %cst_41 : f32 to vector<16x1xf32>
      %84 = arith.addf %80, %83 : vector<16x1xf32>
      %85 = math.rsqrt %84 : vector<16x1xf32>
      %86 = vector.broadcast %85 : vector<16x1xf32> to vector<16x32xf32>
      %87 = arith.mulf %82, %86 : vector<16x32xf32>
      %88 = vector.broadcast %68 : vector<1x32xf32> to vector<16x32xf32>
      %89 = arith.mulf %87, %88 : vector<16x32xf32>
      %90 = vector.broadcast %69 : vector<1x32xf32> to vector<16x32xf32>
      %91 = arith.addf %89, %90 : vector<16x32xf32>
      %c0_42 = arith.constant 0 : index
      %c0_43 = arith.constant 0 : index
      %92 = vector.load %arg5[%c0_42, %c0_43] : memref<16x32xf32, #tpu.memory_space<vmem>>, vector<16x32xf32>
      %93 = arith.addf %91, %92 : vector<16x32xf32>
      %94 = arith.truncf %93 : vector<16x32xf32> to vector<16x32xbf16>
      %95 = arith.truncf %91 : vector<16x32xf32> to vector<16x32xbf16>
      %c0_44 = arith.constant 0 : index
      %c0_45 = arith.constant 0 : index
      %c0_46 = arith.constant 0 : index
      %96 = vector.load %arg10[%c0_44, %c0_45, %c0_46] : memref<4x32x8xbf16, #tpu.memory_space<vmem>>, vector<1x32x8xbf16>
      %97 = vector.shape_cast %96 : vector<1x32x8xbf16> to vector<32x8xbf16>
      %cst_47 = arith.constant dense<0.000000e+00> : vector<16x8xf32>
      %98 = tpu.matmul %94, %97, %cst_47 {dimension_numbers = #tpu.dot_dimension_numbers<[1], [0], [0], [1], [0, 0, 1, 1], [], []>} : vector<16x32xbf16>, vector<32x8xbf16>, vector<16x8xf32> -> vector<16x8xf32>
      %c0_48 = arith.constant 0 : index
      %c0_49 = arith.constant 0 : index
      %c0_50 = arith.constant 0 : index
      %99 = vector.load %arg11[%c0_48, %c0_49, %c0_50] : memref<4x1x8xf32, #tpu.memory_space<vmem>>, vector<1x1x8xf32>
      %100 = vector.shape_cast %99 : vector<1x1x8xf32> to vector<1x8xf32>
      %101 = vector.broadcast %100 : vector<1x8xf32> to vector<16x8xf32>
      %102 = arith.addf %98, %101 : vector<16x8xf32>
      %103 = arith.truncf %102 : vector<16x8xf32> to vector<16x8xbf16>
      %c0_51 = arith.constant 0 : index
      %c0_52 = arith.constant 0 : index
      %c0_53 = arith.constant 0 : index
      %104 = vector.load %arg19[%c0_51, %c0_52, %c0_53] : memref<4x16x8xbf16, #tpu.memory_space<vmem>>, vector<1x16x8xbf16>
      %105 = vector.shape_cast %104 : vector<1x16x8xbf16> to vector<16x8xbf16>
      %106 = vector.shape_cast %103 : vector<16x8xbf16> to vector<1x16x8xbf16>
      tpu.vector_store %arg19[%c0_51, %c0_52, %c0_53], %106 {strides = array<i32>} : memref<4x16x8xbf16, #tpu.memory_space<vmem>>, vector<1x16x8xbf16>,
      %c0_54 = arith.constant 0 : index
      %c0_55 = arith.constant 0 : index
      %c0_56 = arith.constant 0 : index
      %107 = vector.load %arg12[%c0_54, %c0_55, %c0_56] : memref<4x32x8xbf16, #tpu.memory_space<vmem>>, vector<1x32x8xbf16>
      %108 = vector.shape_cast %107 : vector<1x32x8xbf16> to vector<32x8xbf16>
      %cst_57 = arith.constant dense<0.000000e+00> : vector<16x8xf32>
      %109 = tpu.matmul %95, %108, %cst_57 {dimension_numbers = #tpu.dot_dimension_numbers<[1], [0], [0], [1], [0, 0, 1, 1], [], []>} : vector<16x32xbf16>, vector<32x8xbf16>, vector<16x8xf32> -> vector<16x8xf32>
      %c0_58 = arith.constant 0 : index
      %c0_59 = arith.constant 0 : index
      %c0_60 = arith.constant 0 : index
      %110 = vector.load %arg13[%c0_58, %c0_59, %c0_60] : memref<4x1x8xf32, #tpu.memory_space<vmem>>, vector<1x1x8xf32>
      %111 = vector.shape_cast %110 : vector<1x1x8xf32> to vector<1x8xf32>
      %112 = vector.broadcast %111 : vector<1x8xf32> to vector<16x8xf32>
      %113 = arith.addf %109, %112 : vector<16x8xf32>
      %114 = arith.truncf %113 : vector<16x8xf32> to vector<16x8xbf16>
      %c0_61 = arith.constant 0 : index
      %c0_62 = arith.constant 0 : index
      %c0_63 = arith.constant 0 : index
      %115 = vector.load %arg20[%c0_61, %c0_62, %c0_63] : memref<4x16x8xbf16, #tpu.memory_space<vmem>>, vector<1x16x8xbf16>
      %116 = vector.shape_cast %115 : vector<1x16x8xbf16> to vector<16x8xbf16>
      %117 = vector.shape_cast %114 : vector<16x8xbf16> to vector<1x16x8xbf16>
      tpu.vector_store %arg20[%c0_61, %c0_62, %c0_63], %117 {strides = array<i32>} : memref<4x16x8xbf16, #tpu.memory_space<vmem>>, vector<1x16x8xbf16>,
      %c1 = arith.constant 1 : index
      %c0_64 = arith.constant 0 : index
      %c0_65 = arith.constant 0 : index
      %118 = vector.load %arg10[%c1, %c0_64, %c0_65] : memref<4x32x8xbf16, #tpu.memory_space<vmem>>, vector<1x32x8xbf16>
      %119 = vector.shape_cast %118 : vector<1x32x8xbf16> to vector<32x8xbf16>
      %cst_66 = arith.constant dense<0.000000e+00> : vector<16x8xf32>
      %120 = tpu.matmul %94, %119, %cst_66 {dimension_numbers = #tpu.dot_dimension_numbers<[1], [0], [0], [1], [0, 0, 1, 1], [], []>} : vector<16x32xbf16>, vector<32x8xbf16>, vector<16x8xf32> -> vector<16x8xf32>
      %c1_67 = arith.constant 1 : index
      %c0_68 = arith.constant 0 : index
      %c0_69 = arith.constant 0 : index
      %121 = vector.load %arg11[%c1_67, %c0_68, %c0_69] : memref<4x1x8xf32, #tpu.memory_space<vmem>>, vector<1x1x8xf32>
      %122 = vector.shape_cast %121 : vector<1x1x8xf32> to vector<1x8xf32>
      %123 = vector.broadcast %122 : vector<1x8xf32> to vector<16x8xf32>
      %124 = arith.addf %120, %123 : vector<16x8xf32>
      %125 = arith.truncf %124 : vector<16x8xf32> to vector<16x8xbf16>
      %c1_70 = arith.constant 1 : index
      %c0_71 = arith.constant 0 : index
      %c0_72 = arith.constant 0 : index
      %126 = vector.load %arg19[%c1_70, %c0_71, %c0_72] : memref<4x16x8xbf16, #tpu.memory_space<vmem>>, vector<1x16x8xbf16>
      %127 = vector.shape_cast %126 : vector<1x16x8xbf16> to vector<16x8xbf16>
      %128 = vector.shape_cast %125 : vector<16x8xbf16> to vector<1x16x8xbf16>
      tpu.vector_store %arg19[%c1_70, %c0_71, %c0_72], %128 {strides = array<i32>} : memref<4x16x8xbf16, #tpu.memory_space<vmem>>, vector<1x16x8xbf16>,
      %c1_73 = arith.constant 1 : index
      %c0_74 = arith.constant 0 : index
      %c0_75 = arith.constant 0 : index
      %129 = vector.load %arg12[%c1_73, %c0_74, %c0_75] : memref<4x32x8xbf16, #tpu.memory_space<vmem>>, vector<1x32x8xbf16>
      %130 = vector.shape_cast %129 : vector<1x32x8xbf16> to vector<32x8xbf16>
      %cst_76 = arith.constant dense<0.000000e+00> : vector<16x8xf32>
      %131 = tpu.matmul %95, %130, %cst_76 {dimension_numbers = #tpu.dot_dimension_numbers<[1], [0], [0], [1], [0, 0, 1, 1], [], []>} : vector<16x32xbf16>, vector<32x8xbf16>, vector<16x8xf32> -> vector<16x8xf32>
      %c1_77 = arith.constant 1 : index
      %c0_78 = arith.constant 0 : index
      %c0_79 = arith.constant 0 : index
      %132 = vector.load %arg13[%c1_77, %c0_78, %c0_79] : memref<4x1x8xf32, #tpu.memory_space<vmem>>, vector<1x1x8xf32>
      %133 = vector.shape_cast %132 : vector<1x1x8xf32> to vector<1x8xf32>
      %134 = vector.broadcast %133 : vector<1x8xf32> to vector<16x8xf32>
      %135 = arith.addf %131, %134 : vector<16x8xf32>
      %136 = arith.truncf %135 : vector<16x8xf32> to vector<16x8xbf16>
      %c1_80 = arith.constant 1 : index
      %c0_81 = arith.constant 0 : index
      %c0_82 = arith.constant 0 : index
      %137 = vector.load %arg20[%c1_80, %c0_81, %c0_82] : memref<4x16x8xbf16, #tpu.memory_space<vmem>>, vector<1x16x8xbf16>
      %138 = vector.shape_cast %137 : vector<1x16x8xbf16> to vector<16x8xbf16>
      %139 = vector.shape_cast %136 : vector<16x8xbf16> to vector<1x16x8xbf16>
      tpu.vector_store %arg20[%c1_80, %c0_81, %c0_82], %139 {strides = array<i32>} : memref<4x16x8xbf16, #tpu.memory_space<vmem>>, vector<1x16x8xbf16>,
      %c2 = arith.constant 2 : index
      %c0_83 = arith.constant 0 : index
      %c0_84 = arith.constant 0 : index
      %140 = vector.load %arg10[%c2, %c0_83, %c0_84] : memref<4x32x8xbf16, #tpu.memory_space<vmem>>, vector<1x32x8xbf16>
      %141 = vector.shape_cast %140 : vector<1x32x8xbf16> to vector<32x8xbf16>
      %cst_85 = arith.constant dense<0.000000e+00> : vector<16x8xf32>
      %142 = tpu.matmul %94, %141, %cst_85 {dimension_numbers = #tpu.dot_dimension_numbers<[1], [0], [0], [1], [0, 0, 1, 1], [], []>} : vector<16x32xbf16>, vector<32x8xbf16>, vector<16x8xf32> -> vector<16x8xf32>
      %c2_86 = arith.constant 2 : index
      %c0_87 = arith.constant 0 : index
      %c0_88 = arith.constant 0 : index
      %143 = vector.load %arg11[%c2_86, %c0_87, %c0_88] : memref<4x1x8xf32, #tpu.memory_space<vmem>>, vector<1x1x8xf32>
      %144 = vector.shape_cast %143 : vector<1x1x8xf32> to vector<1x8xf32>
      %145 = vector.broadcast %144 : vector<1x8xf32> to vector<16x8xf32>
      %146 = arith.addf %142, %145 : vector<16x8xf32>
      %147 = arith.truncf %146 : vector<16x8xf32> to vector<16x8xbf16>
      %c2_89 = arith.constant 2 : index
      %c0_90 = arith.constant 0 : index
      %c0_91 = arith.constant 0 : index
      %148 = vector.load %arg19[%c2_89, %c0_90, %c0_91] : memref<4x16x8xbf16, #tpu.memory_space<vmem>>, vector<1x16x8xbf16>
      %149 = vector.shape_cast %148 : vector<1x16x8xbf16> to vector<16x8xbf16>
      %150 = vector.shape_cast %147 : vector<16x8xbf16> to vector<1x16x8xbf16>
      tpu.vector_store %arg19[%c2_89, %c0_90, %c0_91], %150 {strides = array<i32>} : memref<4x16x8xbf16, #tpu.memory_space<vmem>>, vector<1x16x8xbf16>,
      %c2_92 = arith.constant 2 : index
      %c0_93 = arith.constant 0 : index
      %c0_94 = arith.constant 0 : index
      %151 = vector.load %arg12[%c2_92, %c0_93, %c0_94] : memref<4x32x8xbf16, #tpu.memory_space<vmem>>, vector<1x32x8xbf16>
      %152 = vector.shape_cast %151 : vector<1x32x8xbf16> to vector<32x8xbf16>
      %cst_95 = arith.constant dense<0.000000e+00> : vector<16x8xf32>
      %153 = tpu.matmul %95, %152, %cst_95 {dimension_numbers = #tpu.dot_dimension_numbers<[1], [0], [0], [1], [0, 0, 1, 1], [], []>} : vector<16x32xbf16>, vector<32x8xbf16>, vector<16x8xf32> -> vector<16x8xf32>
      %c2_96 = arith.constant 2 : index
      %c0_97 = arith.constant 0 : index
      %c0_98 = arith.constant 0 : index
      %154 = vector.load %arg13[%c2_96, %c0_97, %c0_98] : memref<4x1x8xf32, #tpu.memory_space<vmem>>, vector<1x1x8xf32>
      %155 = vector.shape_cast %154 : vector<1x1x8xf32> to vector<1x8xf32>
      %156 = vector.broadcast %155 : vector<1x8xf32> to vector<16x8xf32>
      %157 = arith.addf %153, %156 : vector<16x8xf32>
      %158 = arith.truncf %157 : vector<16x8xf32> to vector<16x8xbf16>
      %c2_99 = arith.constant 2 : index
      %c0_100 = arith.constant 0 : index
      %c0_101 = arith.constant 0 : index
      %159 = vector.load %arg20[%c2_99, %c0_100, %c0_101] : memref<4x16x8xbf16, #tpu.memory_space<vmem>>, vector<1x16x8xbf16>
      %160 = vector.shape_cast %159 : vector<1x16x8xbf16> to vector<16x8xbf16>
      %161 = vector.shape_cast %158 : vector<16x8xbf16> to vector<1x16x8xbf16>
      tpu.vector_store %arg20[%c2_99, %c0_100, %c0_101], %161 {strides = array<i32>} : memref<4x16x8xbf16, #tpu.memory_space<vmem>>, vector<1x16x8xbf16>,
      %c3 = arith.constant 3 : index
      %c0_102 = arith.constant 0 : index
      %c0_103 = arith.constant 0 : index
      %162 = vector.load %arg10[%c3, %c0_102, %c0_103] : memref<4x32x8xbf16, #tpu.memory_space<vmem>>, vector<1x32x8xbf16>
      %163 = vector.shape_cast %162 : vector<1x32x8xbf16> to vector<32x8xbf16>
      %cst_104 = arith.constant dense<0.000000e+00> : vector<16x8xf32>
      %164 = tpu.matmul %94, %163, %cst_104 {dimension_numbers = #tpu.dot_dimension_numbers<[1], [0], [0], [1], [0, 0, 1, 1], [], []>} : vector<16x32xbf16>, vector<32x8xbf16>, vector<16x8xf32> -> vector<16x8xf32>
      %c3_105 = arith.constant 3 : index
      %c0_106 = arith.constant 0 : index
      %c0_107 = arith.constant 0 : index
      %165 = vector.load %arg11[%c3_105, %c0_106, %c0_107] : memref<4x1x8xf32, #tpu.memory_space<vmem>>, vector<1x1x8xf32>
      %166 = vector.shape_cast %165 : vector<1x1x8xf32> to vector<1x8xf32>
      %167 = vector.broadcast %166 : vector<1x8xf32> to vector<16x8xf32>
      %168 = arith.addf %164, %167 : vector<16x8xf32>
      %169 = arith.truncf %168 : vector<16x8xf32> to vector<16x8xbf16>
      %c3_108 = arith.constant 3 : index
      %c0_109 = arith.constant 0 : index
      %c0_110 = arith.constant 0 : index
      %170 = vector.load %arg19[%c3_108, %c0_109, %c0_110] : memref<4x16x8xbf16, #tpu.memory_space<vmem>>, vector<1x16x8xbf16>
      %171 = vector.shape_cast %170 : vector<1x16x8xbf16> to vector<16x8xbf16>
      %172 = vector.shape_cast %169 : vector<16x8xbf16> to vector<1x16x8xbf16>
      tpu.vector_store %arg19[%c3_108, %c0_109, %c0_110], %172 {strides = array<i32>} : memref<4x16x8xbf16, #tpu.memory_space<vmem>>, vector<1x16x8xbf16>,
      %c3_111 = arith.constant 3 : index
      %c0_112 = arith.constant 0 : index
      %c0_113 = arith.constant 0 : index
      %173 = vector.load %arg12[%c3_111, %c0_112, %c0_113] : memref<4x32x8xbf16, #tpu.memory_space<vmem>>, vector<1x32x8xbf16>
      %174 = vector.shape_cast %173 : vector<1x32x8xbf16> to vector<32x8xbf16>
      %cst_114 = arith.constant dense<0.000000e+00> : vector<16x8xf32>
      %175 = tpu.matmul %95, %174, %cst_114 {dimension_numbers = #tpu.dot_dimension_numbers<[1], [0], [0], [1], [0, 0, 1, 1], [], []>} : vector<16x32xbf16>, vector<32x8xbf16>, vector<16x8xf32> -> vector<16x8xf32>
      %c3_115 = arith.constant 3 : index
      %c0_116 = arith.constant 0 : index
      %c0_117 = arith.constant 0 : index
      %176 = vector.load %arg13[%c3_115, %c0_116, %c0_117] : memref<4x1x8xf32, #tpu.memory_space<vmem>>, vector<1x1x8xf32>
      %177 = vector.shape_cast %176 : vector<1x1x8xf32> to vector<1x8xf32>
      %178 = vector.broadcast %177 : vector<1x8xf32> to vector<16x8xf32>
      %179 = arith.addf %175, %178 : vector<16x8xf32>
      %180 = arith.truncf %179 : vector<16x8xf32> to vector<16x8xbf16>
      %c3_118 = arith.constant 3 : index
      %c0_119 = arith.constant 0 : index
      %c0_120 = arith.constant 0 : index
      %181 = vector.load %arg20[%c3_118, %c0_119, %c0_120] : memref<4x16x8xbf16, #tpu.memory_space<vmem>>, vector<1x16x8xbf16>
      %182 = vector.shape_cast %181 : vector<1x16x8xbf16> to vector<16x8xbf16>
      %183 = vector.shape_cast %180 : vector<16x8xbf16> to vector<1x16x8xbf16>
      tpu.vector_store %arg20[%c3_118, %c0_119, %c0_120], %183 {strides = array<i32>} : memref<4x16x8xbf16, #tpu.memory_space<vmem>>, vector<1x16x8xbf16>,
    } else {
    }
    %c0 = arith.constant 0 : index
    %c0_1 = arith.constant 0 : index
    %c0_2 = arith.constant 0 : index
    %3 = vector.load %arg2[%c0, %c0_1, %c0_2] : memref<1x16x32xf32, #tpu.memory_space<vmem>>, vector<1x16x32xf32>
    %4 = vector.shape_cast %3 : vector<1x16x32xf32> to vector<16x32xf32>
    %c0_3 = arith.constant 0 : index
    %c0_4 = arith.constant 0 : index
    %5 = vector.load %arg6[%c0_3, %c0_4] : memref<1x32xf32, #tpu.memory_space<vmem>>, vector<1x32xf32>
    %c0_5 = arith.constant 0 : index
    %c0_6 = arith.constant 0 : index
    %6 = vector.load %arg7[%c0_5, %c0_6] : memref<1x32xf32, #tpu.memory_space<vmem>>, vector<1x32xf32>
    %cst = arith.constant dense<0.000000e+00> : vector<16xf32>
    %7 = vector.multi_reduction <add>, %4, %cst [1] : vector<16x32xf32> to vector<16xf32>
    %8 = vector.shape_cast %7 : vector<16xf32> to vector<16x1xf32>
    %cst_7 = arith.constant 3.200000e+01 : f32
    %9 = vector.broadcast %cst_7 : f32 to vector<16x1xf32>
    %10 = arith.divf %8, %9 : vector<16x1xf32>
    %11 = vector.broadcast %10 : vector<16x1xf32> to vector<16x32xf32>
    %12 = arith.subf %4, %11 : vector<16x32xf32>
    %13 = arith.mulf %12, %12 : vector<16x32xf32>
    %cst_8 = arith.constant dense<0.000000e+00> : vector<16xf32>
    %14 = vector.multi_reduction <add>, %13, %cst_8 [1] : vector<16x32xf32> to vector<16xf32>
    %15 = vector.shape_cast %14 : vector<16xf32> to vector<16x1xf32>
    %cst_9 = arith.constant 3.200000e+01 : f32
    %16 = vector.broadcast %cst_9 : f32 to vector<16x1xf32>
    %17 = arith.divf %15, %16 : vector<16x1xf32>
    %18 = vector.broadcast %10 : vector<16x1xf32> to vector<16x32xf32>
    %19 = arith.subf %4, %18 : vector<16x32xf32>
    %cst_10 = arith.constant 9.99999974E-6 : f32
    %20 = vector.broadcast %cst_10 : f32 to vector<16x1xf32>
    %21 = arith.addf %17, %20 : vector<16x1xf32>
    %22 = math.rsqrt %21 : vector<16x1xf32>
    %23 = vector.broadcast %22 : vector<16x1xf32> to vector<16x32xf32>
    %24 = arith.mulf %19, %23 : vector<16x32xf32>
    %25 = vector.broadcast %5 : vector<1x32xf32> to vector<16x32xf32>
    %26 = arith.mulf %24, %25 : vector<16x32xf32>
    %27 = vector.broadcast %6 : vector<1x32xf32> to vector<16x32xf32>
    %28 = arith.addf %26, %27 : vector<16x32xf32>
    %c0_11 = arith.constant 0 : index
    %c0_12 = arith.constant 0 : index
    %29 = vector.load %arg3[%c0_11, %c0_12] : memref<16x32xf32, #tpu.memory_space<vmem>>, vector<16x32xf32>
    %30 = arith.addf %28, %29 : vector<16x32xf32>
    %31 = arith.truncf %30 : vector<16x32xf32> to vector<16x32xbf16>
    %cst_13 = arith.constant 0.000000e+00 : f32
    %32 = vector.broadcast %cst_13 : f32 to vector<16x32xf32>
    %c0_i32_14 = arith.constant 0 : i32
    %c4_i32 = arith.constant 4 : i32
    %33 = arith.addi %c0_i32_14, %c4_i32 : i32
    %c1_i32 = arith.constant 1 : i32
    %34 = scf.for %arg21 = %c0_i32_14 to %33 step %c1_i32 iter_args(%arg22 = %32) -> (vector<16x32xf32>)  : i32 {
      %66 = arith.index_cast %arg21 : i32 to index
      %c0_30 = arith.constant 0 : index
      %c0_31 = arith.constant 0 : index
      %67 = vector.load %arg8[%66, %c0_30, %c0_31] : memref<4x32x8xbf16, #tpu.memory_space<vmem>>, vector<1x32x8xbf16>
      %68 = vector.shape_cast %67 : vector<1x32x8xbf16> to vector<32x8xbf16>
      %cst_32 = arith.constant dense<0.000000e+00> : vector<16x8xf32>
      %69 = tpu.matmul %31, %68, %cst_32 {dimension_numbers = #tpu.dot_dimension_numbers<[1], [0], [0], [1], [0, 0, 1, 1], [], []>} : vector<16x32xbf16>, vector<32x8xbf16>, vector<16x8xf32> -> vector<16x8xf32>
      %70 = arith.index_cast %arg21 : i32 to index
      %c0_33 = arith.constant 0 : index
      %c0_34 = arith.constant 0 : index
      %71 = vector.load %arg9[%70, %c0_33, %c0_34] : memref<4x1x8xf32, #tpu.memory_space<vmem>>, vector<1x1x8xf32>
      %72 = vector.shape_cast %71 : vector<1x1x8xf32> to vector<1x8xf32>
      %73 = vector.broadcast %72 : vector<1x8xf32> to vector<16x8xf32>
      %74 = arith.addf %69, %73 : vector<16x8xf32>
      %75 = arith.truncf %74 : vector<16x8xf32> to vector<16x8xbf16>
      %76 = arith.index_cast %arg21 : i32 to index
      %c0_35 = arith.constant 0 : index
      %c0_36 = arith.constant 0 : index
      %77 = vector.load %arg19[%76, %c0_35, %c0_36] : memref<4x16x8xbf16, #tpu.memory_space<vmem>>, vector<1x16x8xbf16>
      %78 = vector.shape_cast %77 : vector<1x16x8xbf16> to vector<16x8xbf16>
      %cst_37 = arith.constant dense<0.000000e+00> : vector<16x16xf32>
      %79 = tpu.matmul %75, %78, %cst_37 {dimension_numbers = #tpu.dot_dimension_numbers<[1], [1], [0], [0], [0, 0, 1, 0], [], []>} : vector<16x8xbf16>, vector<16x8xbf16>, vector<16x16xf32> -> vector<16x16xf32>
      %cst_38 = arith.constant dense<0xFF800000> : vector<16xf32>
      %80 = vector.multi_reduction <maximumf>, %79, %cst_38 [1] : vector<16x16xf32> to vector<16xf32>
      %81 = vector.shape_cast %80 : vector<16xf32> to vector<16x1xf32>
      %82 = vector.broadcast %81 : vector<16x1xf32> to vector<16x16xf32>
      %83 = arith.subf %79, %82 : vector<16x16xf32>
      %84 = math.exp %83 : vector<16x16xf32>
      %cst_39 = arith.constant dense<0.000000e+00> : vector<16xf32>
      %85 = vector.multi_reduction <add>, %84, %cst_39 [1] : vector<16x16xf32> to vector<16xf32>
      %86 = vector.shape_cast %85 : vector<16xf32> to vector<16x1xf32>
      %87 = tpu.reciprocal %86 {approx = true} : vector<16x1xf32> -> vector<16x1xf32>
      %88 = vector.broadcast %87 : vector<16x1xf32> to vector<16x16xf32>
      %89 = arith.mulf %84, %88 : vector<16x16xf32>
      %90 = arith.truncf %89 : vector<16x16xf32> to vector<16x16xbf16>
      %91 = arith.index_cast %arg21 : i32 to index
      %c0_40 = arith.constant 0 : index
      %c0_41 = arith.constant 0 : index
      %92 = vector.load %arg20[%91, %c0_40, %c0_41] : memref<4x16x8xbf16, #tpu.memory_space<vmem>>, vector<1x16x8xbf16>
      %93 = vector.shape_cast %92 : vector<1x16x8xbf16> to vector<16x8xbf16>
      %cst_42 = arith.constant dense<0.000000e+00> : vector<16x8xf32>
      %94 = tpu.matmul %90, %93, %cst_42 {dimension_numbers = #tpu.dot_dimension_numbers<[1], [0], [0], [1], [0, 0, 1, 1], [], []>} : vector<16x16xbf16>, vector<16x8xbf16>, vector<16x8xf32> -> vector<16x8xf32>
      %95 = arith.truncf %94 : vector<16x8xf32> to vector<16x8xbf16>
      %96 = arith.index_cast %arg21 : i32 to index
      %c0_43 = arith.constant 0 : index
      %c0_44 = arith.constant 0 : index
      %97 = vector.load %arg14[%96, %c0_43, %c0_44] : memref<4x8x32xbf16, #tpu.memory_space<vmem>>, vector<1x8x32xbf16>
      %98 = vector.shape_cast %97 : vector<1x8x32xbf16> to vector<8x32xbf16>
      %cst_45 = arith.constant dense<0.000000e+00> : vector<16x32xf32>
      %99 = tpu.matmul %95, %98, %cst_45 {dimension_numbers = #tpu.dot_dimension_numbers<[1], [0], [0], [1], [0, 0, 1, 1], [], []>} : vector<16x8xbf16>, vector<8x32xbf16>, vector<16x32xf32> -> vector<16x32xf32>
      %100 = arith.addf %arg22, %99 : vector<16x32xf32>
      scf.yield %100 : vector<16x32xf32>
    }
    %c4_i32_15 = arith.constant 4 : i32
    %c0_16 = arith.constant 0 : index
    %c0_17 = arith.constant 0 : index
    %35 = vector.load %arg15[%c0_16, %c0_17] : memref<1x32xf32, #tpu.memory_space<vmem>>, vector<1x32xf32>
    %36 = vector.broadcast %35 : vector<1x32xf32> to vector<16x32xf32>
    %37 = arith.addf %34, %36 : vector<16x32xf32>
    %c0_18 = arith.constant 0 : index
    %c0_19 = arith.constant 0 : index
    %38 = vector.load %arg16[%c0_18, %c0_19] : memref<1x32xf32, #tpu.memory_space<vmem>>, vector<1x32xf32>
    %c0_20 = arith.constant 0 : index
    %c0_21 = arith.constant 0 : index
    %39 = vector.load %arg17[%c0_20, %c0_21] : memref<1x32xf32, #tpu.memory_space<vmem>>, vector<1x32xf32>
    %cst_22 = arith.constant dense<0.000000e+00> : vector<16xf32>
    %40 = vector.multi_reduction <add>, %37, %cst_22 [1] : vector<16x32xf32> to vector<16xf32>
    %41 = vector.shape_cast %40 : vector<16xf32> to vector<16x1xf32>
    %cst_23 = arith.constant 3.200000e+01 : f32
    %42 = vector.broadcast %cst_23 : f32 to vector<16x1xf32>
    %43 = arith.divf %41, %42 : vector<16x1xf32>
    %44 = vector.broadcast %43 : vector<16x1xf32> to vector<16x32xf32>
    %45 = arith.subf %37, %44 : vector<16x32xf32>
    %46 = arith.mulf %45, %45 : vector<16x32xf32>
    %cst_24 = arith.constant dense<0.000000e+00> : vector<16xf32>
    %47 = vector.multi_reduction <add>, %46, %cst_24 [1] : vector<16x32xf32> to vector<16xf32>
    %48 = vector.shape_cast %47 : vector<16xf32> to vector<16x1xf32>
    %cst_25 = arith.constant 3.200000e+01 : f32
    %49 = vector.broadcast %cst_25 : f32 to vector<16x1xf32>
    %50 = arith.divf %48, %49 : vector<16x1xf32>
    %51 = vector.broadcast %43 : vector<16x1xf32> to vector<16x32xf32>
    %52 = arith.subf %37, %51 : vector<16x32xf32>
    %cst_26 = arith.constant 9.99999974E-6 : f32
    %53 = vector.broadcast %cst_26 : f32 to vector<16x1xf32>
    %54 = arith.addf %50, %53 : vector<16x1xf32>
    %55 = math.rsqrt %54 : vector<16x1xf32>
    %56 = vector.broadcast %55 : vector<16x1xf32> to vector<16x32xf32>
    %57 = arith.mulf %52, %56 : vector<16x32xf32>
    %58 = vector.broadcast %38 : vector<1x32xf32> to vector<16x32xf32>
    %59 = arith.mulf %57, %58 : vector<16x32xf32>
    %60 = vector.broadcast %39 : vector<1x32xf32> to vector<16x32xf32>
    %61 = arith.addf %59, %60 : vector<16x32xf32>
    %62 = arith.addf %4, %61 : vector<16x32xf32>
    %c0_27 = arith.constant 0 : index
    %c0_28 = arith.constant 0 : index
    %c0_29 = arith.constant 0 : index
    %63 = vector.load %arg18[%c0_27, %c0_28, %c0_29] : memref<1x16x32xf32, #tpu.memory_space<vmem>>, vector<1x16x32xf32>
    %64 = vector.shape_cast %63 : vector<1x16x32xf32> to vector<16x32xf32>
    %65 = vector.shape_cast %62 : vector<16x32xf32> to vector<1x16x32xf32>
    tpu.vector_store %arg18[%c0_27, %c0_28, %c0_29], %65 {strides = array<i32>} : memref<1x16x32xf32, #tpu.memory_space<vmem>>, vector<1x16x32xf32>,
    return
  }
  func.func @transform_0(%arg0: i32, %arg1: i32) -> (i32, i32, i32) {
    %c0_i32 = arith.constant 0 : i32
    %c0_i32_0 = arith.constant 0 : i32
    return %arg0, %arg1, %c0_i32 : i32, i32, i32
  }
  func.func @transform_1(%arg0: i32, %arg1: i32) -> (i32, i32) {
    %c0_i32 = arith.constant 0 : i32
    %c0_i32_0 = arith.constant 0 : i32
    return %arg1, %c0_i32 : i32, i32
  }
  func.func @transform_2(%arg0: i32, %arg1: i32) -> (i32, i32, i32) {
    %c0_i32 = arith.constant 0 : i32
    %c0_i32_0 = arith.constant 0 : i32
    %c0_i32_1 = arith.constant 0 : i32
    return %arg0, %c0_i32, %c0_i32_0 : i32, i32, i32
  }
  func.func @transform_3(%arg0: i32, %arg1: i32) -> (i32, i32) {
    %c0_i32 = arith.constant 0 : i32
    %c0_i32_0 = arith.constant 0 : i32
    %c0_i32_1 = arith.constant 0 : i32
    return %c0_i32, %c0_i32_0 : i32, i32
  }
  func.func @transform_4(%arg0: i32, %arg1: i32) -> (i32, i32) {
    %c0_i32 = arith.constant 0 : i32
    %c0_i32_0 = arith.constant 0 : i32
    %c0_i32_1 = arith.constant 0 : i32
    return %c0_i32, %c0_i32_0 : i32, i32
  }
  func.func @transform_5(%arg0: i32, %arg1: i32) -> (i32, i32) {
    %c0_i32 = arith.constant 0 : i32
    %c0_i32_0 = arith.constant 0 : i32
    %c0_i32_1 = arith.constant 0 : i32
    return %c0_i32, %c0_i32_0 : i32, i32
  }
  func.func @transform_6(%arg0: i32, %arg1: i32) -> (i32, i32, i32) {
    %c0_i32 = arith.constant 0 : i32
    %c0_i32_0 = arith.constant 0 : i32
    %c0_i32_1 = arith.constant 0 : i32
    %c0_i32_2 = arith.constant 0 : i32
    return %c0_i32, %c0_i32_0, %c0_i32_1 : i32, i32, i32
  }
  func.func @transform_7(%arg0: i32, %arg1: i32) -> (i32, i32, i32) {
    %c0_i32 = arith.constant 0 : i32
    %c0_i32_0 = arith.constant 0 : i32
    %c0_i32_1 = arith.constant 0 : i32
    %c0_i32_2 = arith.constant 0 : i32
    return %c0_i32, %c0_i32_0, %c0_i32_1 : i32, i32, i32
  }
  func.func @transform_8(%arg0: i32, %arg1: i32) -> (i32, i32, i32) {
    %c0_i32 = arith.constant 0 : i32
    %c0_i32_0 = arith.constant 0 : i32
    %c0_i32_1 = arith.constant 0 : i32
    %c0_i32_2 = arith.constant 0 : i32
    return %c0_i32, %c0_i32_0, %c0_i32_1 : i32, i32, i32
  }
  func.func @transform_9(%arg0: i32, %arg1: i32) -> (i32, i32, i32) {
    %c0_i32 = arith.constant 0 : i32
    %c0_i32_0 = arith.constant 0 : i32
    %c0_i32_1 = arith.constant 0 : i32
    %c0_i32_2 = arith.constant 0 : i32
    return %c0_i32, %c0_i32_0, %c0_i32_1 : i32, i32, i32
  }
  func.func @transform_10(%arg0: i32, %arg1: i32) -> (i32, i32, i32) {
    %c0_i32 = arith.constant 0 : i32
    %c0_i32_0 = arith.constant 0 : i32
    %c0_i32_1 = arith.constant 0 : i32
    %c0_i32_2 = arith.constant 0 : i32
    return %c0_i32, %c0_i32_0, %c0_i32_1 : i32, i32, i32
  }
  func.func @transform_11(%arg0: i32, %arg1: i32) -> (i32, i32, i32) {
    %c0_i32 = arith.constant 0 : i32
    %c0_i32_0 = arith.constant 0 : i32
    %c0_i32_1 = arith.constant 0 : i32
    %c0_i32_2 = arith.constant 0 : i32
    return %c0_i32, %c0_i32_0, %c0_i32_1 : i32, i32, i32
  }
  func.func @transform_12(%arg0: i32, %arg1: i32) -> (i32, i32, i32) {
    %c0_i32 = arith.constant 0 : i32
    %c0_i32_0 = arith.constant 0 : i32
    %c0_i32_1 = arith.constant 0 : i32
    %c0_i32_2 = arith.constant 0 : i32
    return %c0_i32, %c0_i32_0, %c0_i32_1 : i32, i32, i32
  }
  func.func @transform_13(%arg0: i32, %arg1: i32) -> (i32, i32) {
    %c0_i32 = arith.constant 0 : i32
    %c0_i32_0 = arith.constant 0 : i32
    %c0_i32_1 = arith.constant 0 : i32
    return %c0_i32, %c0_i32_0 : i32, i32
  }
  func.func @transform_14(%arg0: i32, %arg1: i32) -> (i32, i32) {
    %c0_i32 = arith.constant 0 : i32
    %c0_i32_0 = arith.constant 0 : i32
    %c0_i32_1 = arith.constant 0 : i32
    return %c0_i32, %c0_i32_0 : i32, i32
  }
  func.func @transform_15(%arg0: i32, %arg1: i32) -> (i32, i32) {
    %c0_i32 = arith.constant 0 : i32
    %c0_i32_0 = arith.constant 0 : i32
    %c0_i32_1 = arith.constant 0 : i32
    return %c0_i32, %c0_i32_0 : i32, i32
  }
  func.func @transform_16(%arg0: i32, %arg1: i32) -> (i32, i32, i32) {
    %c0_i32 = arith.constant 0 : i32
    %c0_i32_0 = arith.constant 0 : i32
    return %arg0, %arg1, %c0_i32 : i32, i32, i32
  }
}

module attributes {stable_mosaic.version = 11 : i64} {
  func.func @_attn_fused_kernel(%arg0: i32, %arg1: i32, %arg2: memref<1x16x32xf32, #tpu.memory_space<vmem>>, %arg3: memref<16x32xf32, #tpu.memory_space<vmem>>, %arg4: memref<1x8x32xf32, #tpu.memory_space<vmem>>, %arg5: memref<8x32xf32, #tpu.memory_space<vmem>>, %arg6: memref<1x1x8xf32, #tpu.memory_space<vmem>>, %arg7: memref<1x32xf32, #tpu.memory_space<vmem>>, %arg8: memref<1x32xf32, #tpu.memory_space<vmem>>, %arg9: memref<4x32x8xbf16, #tpu.memory_space<vmem>>, %arg10: memref<4x1x8xf32, #tpu.memory_space<vmem>>, %arg11: memref<4x32x8xbf16, #tpu.memory_space<vmem>>, %arg12: memref<4x1x8xf32, #tpu.memory_space<vmem>>, %arg13: memref<4x32x8xbf16, #tpu.memory_space<vmem>>, %arg14: memref<4x1x8xf32, #tpu.memory_space<vmem>>, %arg15: memref<4x8x32xbf16, #tpu.memory_space<vmem>>, %arg16: memref<1x32xf32, #tpu.memory_space<vmem>>, %arg17: memref<1x32xf32, #tpu.memory_space<vmem>>, %arg18: memref<1x32xf32, #tpu.memory_space<vmem>>, %arg19: memref<1x16x32xf32, #tpu.memory_space<vmem>>, %arg20: memref<4x8x8xbf16, #tpu.memory_space<vmem>>, %arg21: memref<4x8x8xbf16, #tpu.memory_space<vmem>>) attributes {dimension_semantics = [#tpu.dimension_semantics<parallel>, #tpu.dimension_semantics<arbitrary>], iteration_bounds = array<i64: 2, 1>, scalar_prefetch = 0 : i64, scratch_operands = 2 : i64, tpu.core_type = #tpu.core_type<tc>, window_params = [{transform_indices = @transform_0, window_bounds = array<i64: 1, 16, 32>}, {transform_indices = @transform_1, window_bounds = array<i64: 16, 32>}, {transform_indices = @transform_2, window_bounds = array<i64: 1, 8, 32>}, {pipeline_mode = #tpu.pipeline_mode<synchronous>, transform_indices = @transform_3, window_bounds = array<i64: 8, 32>}, {transform_indices = @transform_4, window_bounds = array<i64: 1, 1, 8>}, {pipeline_mode = #tpu.pipeline_mode<synchronous>, transform_indices = @transform_5, window_bounds = array<i64: 1, 32>}, {pipeline_mode = #tpu.pipeline_mode<synchronous>, transform_indices = @transform_6, window_bounds = array<i64: 1, 32>}, {pipeline_mode = #tpu.pipeline_mode<synchronous>, transform_indices = @transform_7, window_bounds = array<i64: 4, 32, 8>}, {pipeline_mode = #tpu.pipeline_mode<synchronous>, transform_indices = @transform_8, window_bounds = array<i64: 4, 1, 8>}, {pipeline_mode = #tpu.pipeline_mode<synchronous>, transform_indices = @transform_9, window_bounds = array<i64: 4, 32, 8>}, {pipeline_mode = #tpu.pipeline_mode<synchronous>, transform_indices = @transform_10, window_bounds = array<i64: 4, 1, 8>}, {pipeline_mode = #tpu.pipeline_mode<synchronous>, transform_indices = @transform_11, window_bounds = array<i64: 4, 32, 8>}, {pipeline_mode = #tpu.pipeline_mode<synchronous>, transform_indices = @transform_12, window_bounds = array<i64: 4, 1, 8>}, {pipeline_mode = #tpu.pipeline_mode<synchronous>, transform_indices = @transform_13, window_bounds = array<i64: 4, 8, 32>}, {pipeline_mode = #tpu.pipeline_mode<synchronous>, transform_indices = @transform_14, window_bounds = array<i64: 1, 32>}, {pipeline_mode = #tpu.pipeline_mode<synchronous>, transform_indices = @transform_15, window_bounds = array<i64: 1, 32>}, {pipeline_mode = #tpu.pipeline_mode<synchronous>, transform_indices = @transform_16, window_bounds = array<i64: 1, 32>}, {transform_indices = @transform_17, window_bounds = array<i64: 1, 16, 32>}]} {
    %c0_i32 = arith.constant 0 : i32
    %0 = arith.cmpi eq, %arg1, %c0_i32 : i32
    %1 = arith.extui %0 : i1 to i32
    %c0_i32_0 = arith.constant 0 : i32
    %2 = arith.cmpi ne, %1, %c0_i32_0 : i32
    scf.if %2 {
      %c0_33 = arith.constant 0 : index
      %c0_34 = arith.constant 0 : index
      %c0_35 = arith.constant 0 : index
      %68 = vector.load %arg4[%c0_33, %c0_34, %c0_35] : memref<1x8x32xf32, #tpu.memory_space<vmem>>, vector<1x8x32xf32>
      %69 = vector.shape_cast %68 : vector<1x8x32xf32> to vector<8x32xf32>
      %c0_36 = arith.constant 0 : index
      %c0_37 = arith.constant 0 : index
      %70 = vector.load %arg5[%c0_36, %c0_37] : memref<8x32xf32, #tpu.memory_space<vmem>>, vector<8x32xf32>
      %71 = arith.addf %69, %70 : vector<8x32xf32>
      %72 = arith.truncf %71 : vector<8x32xf32> to vector<8x32xbf16>
      %73 = arith.truncf %69 : vector<8x32xf32> to vector<8x32xbf16>
      %c0_38 = arith.constant 0 : index
      %c0_39 = arith.constant 0 : index
      %c0_40 = arith.constant 0 : index
      %74 = vector.load %arg11[%c0_38, %c0_39, %c0_40] : memref<4x32x8xbf16, #tpu.memory_space<vmem>>, vector<1x32x8xbf16>
      %75 = vector.shape_cast %74 : vector<1x32x8xbf16> to vector<32x8xbf16>
      %cst_41 = arith.constant dense<0.000000e+00> : vector<8x8xf32>
      %76 = tpu.matmul %72, %75, %cst_41 {dimension_numbers = #tpu.dot_dimension_numbers<[1], [0], [0], [1], [0, 0, 1, 1], [], []>} : vector<8x32xbf16>, vector<32x8xbf16>, vector<8x8xf32> -> vector<8x8xf32>
      %c0_42 = arith.constant 0 : index
      %c0_43 = arith.constant 0 : index
      %c0_44 = arith.constant 0 : index
      %77 = vector.load %arg12[%c0_42, %c0_43, %c0_44] : memref<4x1x8xf32, #tpu.memory_space<vmem>>, vector<1x1x8xf32>
      %78 = vector.shape_cast %77 : vector<1x1x8xf32> to vector<1x8xf32>
      %79 = vector.broadcast %78 : vector<1x8xf32> to vector<8x8xf32>
      %80 = arith.addf %76, %79 : vector<8x8xf32>
      %81 = arith.truncf %80 : vector<8x8xf32> to vector<8x8xbf16>
      %c0_45 = arith.constant 0 : index
      %c0_46 = arith.constant 0 : index
      %c0_47 = arith.constant 0 : index
      %82 = vector.load %arg20[%c0_45, %c0_46, %c0_47] : memref<4x8x8xbf16, #tpu.memory_space<vmem>>, vector<1x8x8xbf16>
      %83 = vector.shape_cast %82 : vector<1x8x8xbf16> to vector<8x8xbf16>
      %84 = vector.shape_cast %81 : vector<8x8xbf16> to vector<1x8x8xbf16>
      tpu.vector_store %arg20[%c0_45, %c0_46, %c0_47], %84 {strides = array<i32>} : memref<4x8x8xbf16, #tpu.memory_space<vmem>>, vector<1x8x8xbf16>,
      %c0_48 = arith.constant 0 : index
      %c0_49 = arith.constant 0 : index
      %c0_50 = arith.constant 0 : index
      %85 = vector.load %arg13[%c0_48, %c0_49, %c0_50] : memref<4x32x8xbf16, #tpu.memory_space<vmem>>, vector<1x32x8xbf16>
      %86 = vector.shape_cast %85 : vector<1x32x8xbf16> to vector<32x8xbf16>
      %cst_51 = arith.constant dense<0.000000e+00> : vector<8x8xf32>
      %87 = tpu.matmul %73, %86, %cst_51 {dimension_numbers = #tpu.dot_dimension_numbers<[1], [0], [0], [1], [0, 0, 1, 1], [], []>} : vector<8x32xbf16>, vector<32x8xbf16>, vector<8x8xf32> -> vector<8x8xf32>
      %c0_52 = arith.constant 0 : index
      %c0_53 = arith.constant 0 : index
      %c0_54 = arith.constant 0 : index
      %88 = vector.load %arg14[%c0_52, %c0_53, %c0_54] : memref<4x1x8xf32, #tpu.memory_space<vmem>>, vector<1x1x8xf32>
      %89 = vector.shape_cast %88 : vector<1x1x8xf32> to vector<1x8xf32>
      %90 = vector.broadcast %89 : vector<1x8xf32> to vector<8x8xf32>
      %91 = arith.addf %87, %90 : vector<8x8xf32>
      %92 = arith.truncf %91 : vector<8x8xf32> to vector<8x8xbf16>
      %c0_55 = arith.constant 0 : index
      %c0_56 = arith.constant 0 : index
      %c0_57 = arith.constant 0 : index
      %93 = vector.load %arg21[%c0_55, %c0_56, %c0_57] : memref<4x8x8xbf16, #tpu.memory_space<vmem>>, vector<1x8x8xbf16>
      %94 = vector.shape_cast %93 : vector<1x8x8xbf16> to vector<8x8xbf16>
      %95 = vector.shape_cast %92 : vector<8x8xbf16> to vector<1x8x8xbf16>
      tpu.vector_store %arg21[%c0_55, %c0_56, %c0_57], %95 {strides = array<i32>} : memref<4x8x8xbf16, #tpu.memory_space<vmem>>, vector<1x8x8xbf16>,
      %c1 = arith.constant 1 : index
      %c0_58 = arith.constant 0 : index
      %c0_59 = arith.constant 0 : index
      %96 = vector.load %arg11[%c1, %c0_58, %c0_59] : memref<4x32x8xbf16, #tpu.memory_space<vmem>>, vector<1x32x8xbf16>
      %97 = vector.shape_cast %96 : vector<1x32x8xbf16> to vector<32x8xbf16>
      %cst_60 = arith.constant dense<0.000000e+00> : vector<8x8xf32>
      %98 = tpu.matmul %72, %97, %cst_60 {dimension_numbers = #tpu.dot_dimension_numbers<[1], [0], [0], [1], [0, 0, 1, 1], [], []>} : vector<8x32xbf16>, vector<32x8xbf16>, vector<8x8xf32> -> vector<8x8xf32>
      %c1_61 = arith.constant 1 : index
      %c0_62 = arith.constant 0 : index
      %c0_63 = arith.constant 0 : index
      %99 = vector.load %arg12[%c1_61, %c0_62, %c0_63] : memref<4x1x8xf32, #tpu.memory_space<vmem>>, vector<1x1x8xf32>
      %100 = vector.shape_cast %99 : vector<1x1x8xf32> to vector<1x8xf32>
      %101 = vector.broadcast %100 : vector<1x8xf32> to vector<8x8xf32>
      %102 = arith.addf %98, %101 : vector<8x8xf32>
      %103 = arith.truncf %102 : vector<8x8xf32> to vector<8x8xbf16>
      %c1_64 = arith.constant 1 : index
      %c0_65 = arith.constant 0 : index
      %c0_66 = arith.constant 0 : index
      %104 = vector.load %arg20[%c1_64, %c0_65, %c0_66] : memref<4x8x8xbf16, #tpu.memory_space<vmem>>, vector<1x8x8xbf16>
      %105 = vector.shape_cast %104 : vector<1x8x8xbf16> to vector<8x8xbf16>
      %106 = vector.shape_cast %103 : vector<8x8xbf16> to vector<1x8x8xbf16>
      tpu.vector_store %arg20[%c1_64, %c0_65, %c0_66], %106 {strides = array<i32>} : memref<4x8x8xbf16, #tpu.memory_space<vmem>>, vector<1x8x8xbf16>,
      %c1_67 = arith.constant 1 : index
      %c0_68 = arith.constant 0 : index
      %c0_69 = arith.constant 0 : index
      %107 = vector.load %arg13[%c1_67, %c0_68, %c0_69] : memref<4x32x8xbf16, #tpu.memory_space<vmem>>, vector<1x32x8xbf16>
      %108 = vector.shape_cast %107 : vector<1x32x8xbf16> to vector<32x8xbf16>
      %cst_70 = arith.constant dense<0.000000e+00> : vector<8x8xf32>
      %109 = tpu.matmul %73, %108, %cst_70 {dimension_numbers = #tpu.dot_dimension_numbers<[1], [0], [0], [1], [0, 0, 1, 1], [], []>} : vector<8x32xbf16>, vector<32x8xbf16>, vector<8x8xf32> -> vector<8x8xf32>
      %c1_71 = arith.constant 1 : index
      %c0_72 = arith.constant 0 : index
      %c0_73 = arith.constant 0 : index
      %110 = vector.load %arg14[%c1_71, %c0_72, %c0_73] : memref<4x1x8xf32, #tpu.memory_space<vmem>>, vector<1x1x8xf32>
      %111 = vector.shape_cast %110 : vector<1x1x8xf32> to vector<1x8xf32>
      %112 = vector.broadcast %111 : vector<1x8xf32> to vector<8x8xf32>
      %113 = arith.addf %109, %112 : vector<8x8xf32>
      %114 = arith.truncf %113 : vector<8x8xf32> to vector<8x8xbf16>
      %c1_74 = arith.constant 1 : index
      %c0_75 = arith.constant 0 : index
      %c0_76 = arith.constant 0 : index
      %115 = vector.load %arg21[%c1_74, %c0_75, %c0_76] : memref<4x8x8xbf16, #tpu.memory_space<vmem>>, vector<1x8x8xbf16>
      %116 = vector.shape_cast %115 : vector<1x8x8xbf16> to vector<8x8xbf16>
      %117 = vector.shape_cast %114 : vector<8x8xbf16> to vector<1x8x8xbf16>
      tpu.vector_store %arg21[%c1_74, %c0_75, %c0_76], %117 {strides = array<i32>} : memref<4x8x8xbf16, #tpu.memory_space<vmem>>, vector<1x8x8xbf16>,
      %c2 = arith.constant 2 : index
      %c0_77 = arith.constant 0 : index
      %c0_78 = arith.constant 0 : index
      %118 = vector.load %arg11[%c2, %c0_77, %c0_78] : memref<4x32x8xbf16, #tpu.memory_space<vmem>>, vector<1x32x8xbf16>
      %119 = vector.shape_cast %118 : vector<1x32x8xbf16> to vector<32x8xbf16>
      %cst_79 = arith.constant dense<0.000000e+00> : vector<8x8xf32>
      %120 = tpu.matmul %72, %119, %cst_79 {dimension_numbers = #tpu.dot_dimension_numbers<[1], [0], [0], [1], [0, 0, 1, 1], [], []>} : vector<8x32xbf16>, vector<32x8xbf16>, vector<8x8xf32> -> vector<8x8xf32>
      %c2_80 = arith.constant 2 : index
      %c0_81 = arith.constant 0 : index
      %c0_82 = arith.constant 0 : index
      %121 = vector.load %arg12[%c2_80, %c0_81, %c0_82] : memref<4x1x8xf32, #tpu.memory_space<vmem>>, vector<1x1x8xf32>
      %122 = vector.shape_cast %121 : vector<1x1x8xf32> to vector<1x8xf32>
      %123 = vector.broadcast %122 : vector<1x8xf32> to vector<8x8xf32>
      %124 = arith.addf %120, %123 : vector<8x8xf32>
      %125 = arith.truncf %124 : vector<8x8xf32> to vector<8x8xbf16>
      %c2_83 = arith.constant 2 : index
      %c0_84 = arith.constant 0 : index
      %c0_85 = arith.constant 0 : index
      %126 = vector.load %arg20[%c2_83, %c0_84, %c0_85] : memref<4x8x8xbf16, #tpu.memory_space<vmem>>, vector<1x8x8xbf16>
      %127 = vector.shape_cast %126 : vector<1x8x8xbf16> to vector<8x8xbf16>
      %128 = vector.shape_cast %125 : vector<8x8xbf16> to vector<1x8x8xbf16>
      tpu.vector_store %arg20[%c2_83, %c0_84, %c0_85], %128 {strides = array<i32>} : memref<4x8x8xbf16, #tpu.memory_space<vmem>>, vector<1x8x8xbf16>,
      %c2_86 = arith.constant 2 : index
      %c0_87 = arith.constant 0 : index
      %c0_88 = arith.constant 0 : index
      %129 = vector.load %arg13[%c2_86, %c0_87, %c0_88] : memref<4x32x8xbf16, #tpu.memory_space<vmem>>, vector<1x32x8xbf16>
      %130 = vector.shape_cast %129 : vector<1x32x8xbf16> to vector<32x8xbf16>
      %cst_89 = arith.constant dense<0.000000e+00> : vector<8x8xf32>
      %131 = tpu.matmul %73, %130, %cst_89 {dimension_numbers = #tpu.dot_dimension_numbers<[1], [0], [0], [1], [0, 0, 1, 1], [], []>} : vector<8x32xbf16>, vector<32x8xbf16>, vector<8x8xf32> -> vector<8x8xf32>
      %c2_90 = arith.constant 2 : index
      %c0_91 = arith.constant 0 : index
      %c0_92 = arith.constant 0 : index
      %132 = vector.load %arg14[%c2_90, %c0_91, %c0_92] : memref<4x1x8xf32, #tpu.memory_space<vmem>>, vector<1x1x8xf32>
      %133 = vector.shape_cast %132 : vector<1x1x8xf32> to vector<1x8xf32>
      %134 = vector.broadcast %133 : vector<1x8xf32> to vector<8x8xf32>
      %135 = arith.addf %131, %134 : vector<8x8xf32>
      %136 = arith.truncf %135 : vector<8x8xf32> to vector<8x8xbf16>
      %c2_93 = arith.constant 2 : index
      %c0_94 = arith.constant 0 : index
      %c0_95 = arith.constant 0 : index
      %137 = vector.load %arg21[%c2_93, %c0_94, %c0_95] : memref<4x8x8xbf16, #tpu.memory_space<vmem>>, vector<1x8x8xbf16>
      %138 = vector.shape_cast %137 : vector<1x8x8xbf16> to vector<8x8xbf16>
      %139 = vector.shape_cast %136 : vector<8x8xbf16> to vector<1x8x8xbf16>
      tpu.vector_store %arg21[%c2_93, %c0_94, %c0_95], %139 {strides = array<i32>} : memref<4x8x8xbf16, #tpu.memory_space<vmem>>, vector<1x8x8xbf16>,
      %c3 = arith.constant 3 : index
      %c0_96 = arith.constant 0 : index
      %c0_97 = arith.constant 0 : index
      %140 = vector.load %arg11[%c3, %c0_96, %c0_97] : memref<4x32x8xbf16, #tpu.memory_space<vmem>>, vector<1x32x8xbf16>
      %141 = vector.shape_cast %140 : vector<1x32x8xbf16> to vector<32x8xbf16>
      %cst_98 = arith.constant dense<0.000000e+00> : vector<8x8xf32>
      %142 = tpu.matmul %72, %141, %cst_98 {dimension_numbers = #tpu.dot_dimension_numbers<[1], [0], [0], [1], [0, 0, 1, 1], [], []>} : vector<8x32xbf16>, vector<32x8xbf16>, vector<8x8xf32> -> vector<8x8xf32>
      %c3_99 = arith.constant 3 : index
      %c0_100 = arith.constant 0 : index
      %c0_101 = arith.constant 0 : index
      %143 = vector.load %arg12[%c3_99, %c0_100, %c0_101] : memref<4x1x8xf32, #tpu.memory_space<vmem>>, vector<1x1x8xf32>
      %144 = vector.shape_cast %143 : vector<1x1x8xf32> to vector<1x8xf32>
      %145 = vector.broadcast %144 : vector<1x8xf32> to vector<8x8xf32>
      %146 = arith.addf %142, %145 : vector<8x8xf32>
      %147 = arith.truncf %146 : vector<8x8xf32> to vector<8x8xbf16>
      %c3_102 = arith.constant 3 : index
      %c0_103 = arith.constant 0 : index
      %c0_104 = arith.constant 0 : index
      %148 = vector.load %arg20[%c3_102, %c0_103, %c0_104] : memref<4x8x8xbf16, #tpu.memory_space<vmem>>, vector<1x8x8xbf16>
      %149 = vector.shape_cast %148 : vector<1x8x8xbf16> to vector<8x8xbf16>
      %150 = vector.shape_cast %147 : vector<8x8xbf16> to vector<1x8x8xbf16>
      tpu.vector_store %arg20[%c3_102, %c0_103, %c0_104], %150 {strides = array<i32>} : memref<4x8x8xbf16, #tpu.memory_space<vmem>>, vector<1x8x8xbf16>,
      %c3_105 = arith.constant 3 : index
      %c0_106 = arith.constant 0 : index
      %c0_107 = arith.constant 0 : index
      %151 = vector.load %arg13[%c3_105, %c0_106, %c0_107] : memref<4x32x8xbf16, #tpu.memory_space<vmem>>, vector<1x32x8xbf16>
      %152 = vector.shape_cast %151 : vector<1x32x8xbf16> to vector<32x8xbf16>
      %cst_108 = arith.constant dense<0.000000e+00> : vector<8x8xf32>
      %153 = tpu.matmul %73, %152, %cst_108 {dimension_numbers = #tpu.dot_dimension_numbers<[1], [0], [0], [1], [0, 0, 1, 1], [], []>} : vector<8x32xbf16>, vector<32x8xbf16>, vector<8x8xf32> -> vector<8x8xf32>
      %c3_109 = arith.constant 3 : index
      %c0_110 = arith.constant 0 : index
      %c0_111 = arith.constant 0 : index
      %154 = vector.load %arg14[%c3_109, %c0_110, %c0_111] : memref<4x1x8xf32, #tpu.memory_space<vmem>>, vector<1x1x8xf32>
      %155 = vector.shape_cast %154 : vector<1x1x8xf32> to vector<1x8xf32>
      %156 = vector.broadcast %155 : vector<1x8xf32> to vector<8x8xf32>
      %157 = arith.addf %153, %156 : vector<8x8xf32>
      %158 = arith.truncf %157 : vector<8x8xf32> to vector<8x8xbf16>
      %c3_112 = arith.constant 3 : index
      %c0_113 = arith.constant 0 : index
      %c0_114 = arith.constant 0 : index
      %159 = vector.load %arg21[%c3_112, %c0_113, %c0_114] : memref<4x8x8xbf16, #tpu.memory_space<vmem>>, vector<1x8x8xbf16>
      %160 = vector.shape_cast %159 : vector<1x8x8xbf16> to vector<8x8xbf16>
      %161 = vector.shape_cast %158 : vector<8x8xbf16> to vector<1x8x8xbf16>
      tpu.vector_store %arg21[%c3_112, %c0_113, %c0_114], %161 {strides = array<i32>} : memref<4x8x8xbf16, #tpu.memory_space<vmem>>, vector<1x8x8xbf16>,
    } else {
    }
    %c0 = arith.constant 0 : index
    %c0_1 = arith.constant 0 : index
    %c0_2 = arith.constant 0 : index
    %3 = vector.load %arg2[%c0, %c0_1, %c0_2] : memref<1x16x32xf32, #tpu.memory_space<vmem>>, vector<1x16x32xf32>
    %4 = vector.shape_cast %3 : vector<1x16x32xf32> to vector<16x32xf32>
    %c0_3 = arith.constant 0 : index
    %c0_4 = arith.constant 0 : index
    %5 = vector.load %arg7[%c0_3, %c0_4] : memref<1x32xf32, #tpu.memory_space<vmem>>, vector<1x32xf32>
    %c0_5 = arith.constant 0 : index
    %c0_6 = arith.constant 0 : index
    %6 = vector.load %arg8[%c0_5, %c0_6] : memref<1x32xf32, #tpu.memory_space<vmem>>, vector<1x32xf32>
    %cst = arith.constant dense<0.000000e+00> : vector<16xf32>
    %7 = vector.multi_reduction <add>, %4, %cst [1] : vector<16x32xf32> to vector<16xf32>
    %8 = vector.shape_cast %7 : vector<16xf32> to vector<16x1xf32>
    %cst_7 = arith.constant 3.200000e+01 : f32
    %9 = vector.broadcast %cst_7 : f32 to vector<16x1xf32>
    %10 = arith.divf %8, %9 : vector<16x1xf32>
    %11 = vector.broadcast %10 : vector<16x1xf32> to vector<16x32xf32>
    %12 = arith.subf %4, %11 : vector<16x32xf32>
    %13 = arith.mulf %12, %12 : vector<16x32xf32>
    %cst_8 = arith.constant dense<0.000000e+00> : vector<16xf32>
    %14 = vector.multi_reduction <add>, %13, %cst_8 [1] : vector<16x32xf32> to vector<16xf32>
    %15 = vector.shape_cast %14 : vector<16xf32> to vector<16x1xf32>
    %cst_9 = arith.constant 3.200000e+01 : f32
    %16 = vector.broadcast %cst_9 : f32 to vector<16x1xf32>
    %17 = arith.divf %15, %16 : vector<16x1xf32>
    %18 = vector.broadcast %10 : vector<16x1xf32> to vector<16x32xf32>
    %19 = arith.subf %4, %18 : vector<16x32xf32>
    %cst_10 = arith.constant 9.99999974E-6 : f32
    %20 = vector.broadcast %cst_10 : f32 to vector<16x1xf32>
    %21 = arith.addf %17, %20 : vector<16x1xf32>
    %22 = math.rsqrt %21 : vector<16x1xf32>
    %23 = vector.broadcast %22 : vector<16x1xf32> to vector<16x32xf32>
    %24 = arith.mulf %19, %23 : vector<16x32xf32>
    %25 = vector.broadcast %5 : vector<1x32xf32> to vector<16x32xf32>
    %26 = arith.mulf %24, %25 : vector<16x32xf32>
    %27 = vector.broadcast %6 : vector<1x32xf32> to vector<16x32xf32>
    %28 = arith.addf %26, %27 : vector<16x32xf32>
    %c0_11 = arith.constant 0 : index
    %c0_12 = arith.constant 0 : index
    %29 = vector.load %arg3[%c0_11, %c0_12] : memref<16x32xf32, #tpu.memory_space<vmem>>, vector<16x32xf32>
    %30 = arith.addf %28, %29 : vector<16x32xf32>
    %31 = arith.truncf %30 : vector<16x32xf32> to vector<16x32xbf16>
    %c0_13 = arith.constant 0 : index
    %c0_14 = arith.constant 0 : index
    %c0_15 = arith.constant 0 : index
    %32 = vector.load %arg6[%c0_13, %c0_14, %c0_15] : memref<1x1x8xf32, #tpu.memory_space<vmem>>, vector<1x1x8xf32>
    %33 = vector.shape_cast %32 : vector<1x1x8xf32> to vector<1x8xf32>
    %cst_16 = arith.constant 0.000000e+00 : f32
    %34 = vector.broadcast %cst_16 : f32 to vector<16x32xf32>
    %c0_i32_17 = arith.constant 0 : i32
    %c4_i32 = arith.constant 4 : i32
    %35 = arith.addi %c0_i32_17, %c4_i32 : i32
    %c1_i32 = arith.constant 1 : i32
    %36 = scf.for %arg22 = %c0_i32_17 to %35 step %c1_i32 iter_args(%arg23 = %34) -> (vector<16x32xf32>)  : i32 {
      %68 = arith.index_cast %arg22 : i32 to index
      %c0_33 = arith.constant 0 : index
      %c0_34 = arith.constant 0 : index
      %69 = vector.load %arg9[%68, %c0_33, %c0_34] : memref<4x32x8xbf16, #tpu.memory_space<vmem>>, vector<1x32x8xbf16>
      %70 = vector.shape_cast %69 : vector<1x32x8xbf16> to vector<32x8xbf16>
      %cst_35 = arith.constant dense<0.000000e+00> : vector<16x8xf32>
      %71 = tpu.matmul %31, %70, %cst_35 {dimension_numbers = #tpu.dot_dimension_numbers<[1], [0], [0], [1], [0, 0, 1, 1], [], []>} : vector<16x32xbf16>, vector<32x8xbf16>, vector<16x8xf32> -> vector<16x8xf32>
      %72 = arith.index_cast %arg22 : i32 to index
      %c0_36 = arith.constant 0 : index
      %c0_37 = arith.constant 0 : index
      %73 = vector.load %arg10[%72, %c0_36, %c0_37] : memref<4x1x8xf32, #tpu.memory_space<vmem>>, vector<1x1x8xf32>
      %74 = vector.shape_cast %73 : vector<1x1x8xf32> to vector<1x8xf32>
      %75 = vector.broadcast %74 : vector<1x8xf32> to vector<16x8xf32>
      %76 = arith.addf %71, %75 : vector<16x8xf32>
      %77 = arith.truncf %76 : vector<16x8xf32> to vector<16x8xbf16>
      %78 = arith.index_cast %arg22 : i32 to index
      %c0_38 = arith.constant 0 : index
      %c0_39 = arith.constant 0 : index
      %79 = vector.load %arg20[%78, %c0_38, %c0_39] : memref<4x8x8xbf16, #tpu.memory_space<vmem>>, vector<1x8x8xbf16>
      %80 = vector.shape_cast %79 : vector<1x8x8xbf16> to vector<8x8xbf16>
      %cst_40 = arith.constant dense<0.000000e+00> : vector<16x8xf32>
      %81 = tpu.matmul %77, %80, %cst_40 {dimension_numbers = #tpu.dot_dimension_numbers<[1], [1], [0], [0], [0, 0, 1, 0], [], []>} : vector<16x8xbf16>, vector<8x8xbf16>, vector<16x8xf32> -> vector<16x8xf32>
      %82 = vector.broadcast %33 : vector<1x8xf32> to vector<16x8xf32>
      %83 = arith.addf %81, %82 : vector<16x8xf32>
      %cst_41 = arith.constant dense<0xFF800000> : vector<16xf32>
      %84 = vector.multi_reduction <maximumf>, %83, %cst_41 [1] : vector<16x8xf32> to vector<16xf32>
      %85 = vector.shape_cast %84 : vector<16xf32> to vector<16x1xf32>
      %86 = vector.broadcast %85 : vector<16x1xf32> to vector<16x8xf32>
      %87 = arith.subf %83, %86 : vector<16x8xf32>
      %88 = math.exp %87 : vector<16x8xf32>
      %cst_42 = arith.constant dense<0.000000e+00> : vector<16xf32>
      %89 = vector.multi_reduction <add>, %88, %cst_42 [1] : vector<16x8xf32> to vector<16xf32>
      %90 = vector.shape_cast %89 : vector<16xf32> to vector<16x1xf32>
      %91 = tpu.reciprocal %90 {approx = true} : vector<16x1xf32> -> vector<16x1xf32>
      %92 = vector.broadcast %91 : vector<16x1xf32> to vector<16x8xf32>
      %93 = arith.mulf %88, %92 : vector<16x8xf32>
      %94 = arith.truncf %93 : vector<16x8xf32> to vector<16x8xbf16>
      %95 = arith.index_cast %arg22 : i32 to index
      %c0_43 = arith.constant 0 : index
      %c0_44 = arith.constant 0 : index
      %96 = vector.load %arg21[%95, %c0_43, %c0_44] : memref<4x8x8xbf16, #tpu.memory_space<vmem>>, vector<1x8x8xbf16>
      %97 = vector.shape_cast %96 : vector<1x8x8xbf16> to vector<8x8xbf16>
      %cst_45 = arith.constant dense<0.000000e+00> : vector<16x8xf32>
      %98 = tpu.matmul %94, %97, %cst_45 {dimension_numbers = #tpu.dot_dimension_numbers<[1], [0], [0], [1], [0, 0, 1, 1], [], []>} : vector<16x8xbf16>, vector<8x8xbf16>, vector<16x8xf32> -> vector<16x8xf32>
      %99 = arith.truncf %98 : vector<16x8xf32> to vector<16x8xbf16>
      %100 = arith.index_cast %arg22 : i32 to index
      %c0_46 = arith.constant 0 : index
      %c0_47 = arith.constant 0 : index
      %101 = vector.load %arg15[%100, %c0_46, %c0_47] : memref<4x8x32xbf16, #tpu.memory_space<vmem>>, vector<1x8x32xbf16>
      %102 = vector.shape_cast %101 : vector<1x8x32xbf16> to vector<8x32xbf16>
      %cst_48 = arith.constant dense<0.000000e+00> : vector<16x32xf32>
      %103 = tpu.matmul %99, %102, %cst_48 {dimension_numbers = #tpu.dot_dimension_numbers<[1], [0], [0], [1], [0, 0, 1, 1], [], []>} : vector<16x8xbf16>, vector<8x32xbf16>, vector<16x32xf32> -> vector<16x32xf32>
      %104 = arith.addf %arg23, %103 : vector<16x32xf32>
      scf.yield %104 : vector<16x32xf32>
    }
    %c4_i32_18 = arith.constant 4 : i32
    %c0_19 = arith.constant 0 : index
    %c0_20 = arith.constant 0 : index
    %37 = vector.load %arg16[%c0_19, %c0_20] : memref<1x32xf32, #tpu.memory_space<vmem>>, vector<1x32xf32>
    %38 = vector.broadcast %37 : vector<1x32xf32> to vector<16x32xf32>
    %39 = arith.addf %36, %38 : vector<16x32xf32>
    %c0_21 = arith.constant 0 : index
    %c0_22 = arith.constant 0 : index
    %40 = vector.load %arg17[%c0_21, %c0_22] : memref<1x32xf32, #tpu.memory_space<vmem>>, vector<1x32xf32>
    %c0_23 = arith.constant 0 : index
    %c0_24 = arith.constant 0 : index
    %41 = vector.load %arg18[%c0_23, %c0_24] : memref<1x32xf32, #tpu.memory_space<vmem>>, vector<1x32xf32>
    %cst_25 = arith.constant dense<0.000000e+00> : vector<16xf32>
    %42 = vector.multi_reduction <add>, %39, %cst_25 [1] : vector<16x32xf32> to vector<16xf32>
    %43 = vector.shape_cast %42 : vector<16xf32> to vector<16x1xf32>
    %cst_26 = arith.constant 3.200000e+01 : f32
    %44 = vector.broadcast %cst_26 : f32 to vector<16x1xf32>
    %45 = arith.divf %43, %44 : vector<16x1xf32>
    %46 = vector.broadcast %45 : vector<16x1xf32> to vector<16x32xf32>
    %47 = arith.subf %39, %46 : vector<16x32xf32>
    %48 = arith.mulf %47, %47 : vector<16x32xf32>
    %cst_27 = arith.constant dense<0.000000e+00> : vector<16xf32>
    %49 = vector.multi_reduction <add>, %48, %cst_27 [1] : vector<16x32xf32> to vector<16xf32>
    %50 = vector.shape_cast %49 : vector<16xf32> to vector<16x1xf32>
    %cst_28 = arith.constant 3.200000e+01 : f32
    %51 = vector.broadcast %cst_28 : f32 to vector<16x1xf32>
    %52 = arith.divf %50, %51 : vector<16x1xf32>
    %53 = vector.broadcast %45 : vector<16x1xf32> to vector<16x32xf32>
    %54 = arith.subf %39, %53 : vector<16x32xf32>
    %cst_29 = arith.constant 9.99999974E-6 : f32
    %55 = vector.broadcast %cst_29 : f32 to vector<16x1xf32>
    %56 = arith.addf %52, %55 : vector<16x1xf32>
    %57 = math.rsqrt %56 : vector<16x1xf32>
    %58 = vector.broadcast %57 : vector<16x1xf32> to vector<16x32xf32>
    %59 = arith.mulf %54, %58 : vector<16x32xf32>
    %60 = vector.broadcast %40 : vector<1x32xf32> to vector<16x32xf32>
    %61 = arith.mulf %59, %60 : vector<16x32xf32>
    %62 = vector.broadcast %41 : vector<1x32xf32> to vector<16x32xf32>
    %63 = arith.addf %61, %62 : vector<16x32xf32>
    %64 = arith.addf %4, %63 : vector<16x32xf32>
    %c0_30 = arith.constant 0 : index
    %c0_31 = arith.constant 0 : index
    %c0_32 = arith.constant 0 : index
    %65 = vector.load %arg19[%c0_30, %c0_31, %c0_32] : memref<1x16x32xf32, #tpu.memory_space<vmem>>, vector<1x16x32xf32>
    %66 = vector.shape_cast %65 : vector<1x16x32xf32> to vector<16x32xf32>
    %67 = vector.shape_cast %64 : vector<16x32xf32> to vector<1x16x32xf32>
    tpu.vector_store %arg19[%c0_30, %c0_31, %c0_32], %67 {strides = array<i32>} : memref<1x16x32xf32, #tpu.memory_space<vmem>>, vector<1x16x32xf32>,
    return
  }
  func.func @transform_0(%arg0: i32, %arg1: i32) -> (i32, i32, i32) {
    %c0_i32 = arith.constant 0 : i32
    %c0_i32_0 = arith.constant 0 : i32
    return %arg0, %arg1, %c0_i32 : i32, i32, i32
  }
  func.func @transform_1(%arg0: i32, %arg1: i32) -> (i32, i32) {
    %c0_i32 = arith.constant 0 : i32
    %c0_i32_0 = arith.constant 0 : i32
    return %arg1, %c0_i32 : i32, i32
  }
  func.func @transform_2(%arg0: i32, %arg1: i32) -> (i32, i32, i32) {
    %c0_i32 = arith.constant 0 : i32
    %c0_i32_0 = arith.constant 0 : i32
    %c0_i32_1 = arith.constant 0 : i32
    return %arg0, %c0_i32, %c0_i32_0 : i32, i32, i32
  }
  func.func @transform_3(%arg0: i32, %arg1: i32) -> (i32, i32) {
    %c0_i32 = arith.constant 0 : i32
    %c0_i32_0 = arith.constant 0 : i32
    %c0_i32_1 = arith.constant 0 : i32
    return %c0_i32, %c0_i32_0 : i32, i32
  }
  func.func @transform_4(%arg0: i32, %arg1: i32) -> (i32, i32, i32) {
    %c0_i32 = arith.constant 0 : i32
    %c0_i32_0 = arith.constant 0 : i32
    %c0_i32_1 = arith.constant 0 : i32
    return %arg0, %c0_i32, %c0_i32_0 : i32, i32, i32
  }
  func.func @transform_5(%arg0: i32, %arg1: i32) -> (i32, i32) {
    %c0_i32 = arith.constant 0 : i32
    %c0_i32_0 = arith.constant 0 : i32
    %c0_i32_1 = arith.constant 0 : i32
    return %c0_i32, %c0_i32_0 : i32, i32
  }
  func.func @transform_6(%arg0: i32, %arg1: i32) -> (i32, i32) {
    %c0_i32 = arith.constant 0 : i32
    %c0_i32_0 = arith.constant 0 : i32
    %c0_i32_1 = arith.constant 0 : i32
    return %c0_i32, %c0_i32_0 : i32, i32
  }
  func.func @transform_7(%arg0: i32, %arg1: i32) -> (i32, i32, i32) {
    %c0_i32 = arith.constant 0 : i32
    %c0_i32_0 = arith.constant 0 : i32
    %c0_i32_1 = arith.constant 0 : i32
    %c0_i32_2 = arith.constant 0 : i32
    return %c0_i32, %c0_i32_0, %c0_i32_1 : i32, i32, i32
  }
  func.func @transform_8(%arg0: i32, %arg1: i32) -> (i32, i32, i32) {
    %c0_i32 = arith.constant 0 : i32
    %c0_i32_0 = arith.constant 0 : i32
    %c0_i32_1 = arith.constant 0 : i32
    %c0_i32_2 = arith.constant 0 : i32
    return %c0_i32, %c0_i32_0, %c0_i32_1 : i32, i32, i32
  }
  func.func @transform_9(%arg0: i32, %arg1: i32) -> (i32, i32, i32) {
    %c0_i32 = arith.constant 0 : i32
    %c0_i32_0 = arith.constant 0 : i32
    %c0_i32_1 = arith.constant 0 : i32
    %c0_i32_2 = arith.constant 0 : i32
    return %c0_i32, %c0_i32_0, %c0_i32_1 : i32, i32, i32
  }
  func.func @transform_10(%arg0: i32, %arg1: i32) -> (i32, i32, i32) {
    %c0_i32 = arith.constant 0 : i32
    %c0_i32_0 = arith.constant 0 : i32
    %c0_i32_1 = arith.constant 0 : i32
    %c0_i32_2 = arith.constant 0 : i32
    return %c0_i32, %c0_i32_0, %c0_i32_1 : i32, i32, i32
  }
  func.func @transform_11(%arg0: i32, %arg1: i32) -> (i32, i32, i32) {
    %c0_i32 = arith.constant 0 : i32
    %c0_i32_0 = arith.constant 0 : i32
    %c0_i32_1 = arith.constant 0 : i32
    %c0_i32_2 = arith.constant 0 : i32
    return %c0_i32, %c0_i32_0, %c0_i32_1 : i32, i32, i32
  }
  func.func @transform_12(%arg0: i32, %arg1: i32) -> (i32, i32, i32) {
    %c0_i32 = arith.constant 0 : i32
    %c0_i32_0 = arith.constant 0 : i32
    %c0_i32_1 = arith.constant 0 : i32
    %c0_i32_2 = arith.constant 0 : i32
    return %c0_i32, %c0_i32_0, %c0_i32_1 : i32, i32, i32
  }
  func.func @transform_13(%arg0: i32, %arg1: i32) -> (i32, i32, i32) {
    %c0_i32 = arith.constant 0 : i32
    %c0_i32_0 = arith.constant 0 : i32
    %c0_i32_1 = arith.constant 0 : i32
    %c0_i32_2 = arith.constant 0 : i32
    return %c0_i32, %c0_i32_0, %c0_i32_1 : i32, i32, i32
  }
  func.func @transform_14(%arg0: i32, %arg1: i32) -> (i32, i32) {
    %c0_i32 = arith.constant 0 : i32
    %c0_i32_0 = arith.constant 0 : i32
    %c0_i32_1 = arith.constant 0 : i32
    return %c0_i32, %c0_i32_0 : i32, i32
  }
  func.func @transform_15(%arg0: i32, %arg1: i32) -> (i32, i32) {
    %c0_i32 = arith.constant 0 : i32
    %c0_i32_0 = arith.constant 0 : i32
    %c0_i32_1 = arith.constant 0 : i32
    return %c0_i32, %c0_i32_0 : i32, i32
  }
  func.func @transform_16(%arg0: i32, %arg1: i32) -> (i32, i32) {
    %c0_i32 = arith.constant 0 : i32
    %c0_i32_0 = arith.constant 0 : i32
    %c0_i32_1 = arith.constant 0 : i32
    return %c0_i32, %c0_i32_0 : i32, i32
  }
  func.func @transform_17(%arg0: i32, %arg1: i32) -> (i32, i32, i32) {
    %c0_i32 = arith.constant 0 : i32
    %c0_i32_0 = arith.constant 0 : i32
    return %arg0, %arg1, %c0_i32 : i32, i32, i32
  }
}

module attributes {stable_mosaic.version = 11 : i64} {
  func.func @_ffn_kernel(%arg0: i32, %arg1: memref<32x32xf32, #tpu.memory_space<vmem>>, %arg2: memref<1x32xf32, #tpu.memory_space<vmem>>, %arg3: memref<1x32xf32, #tpu.memory_space<vmem>>, %arg4: memref<32x64xbf16, #tpu.memory_space<vmem>>, %arg5: memref<1x64xf32, #tpu.memory_space<vmem>>, %arg6: memref<1x64xf32, #tpu.memory_space<vmem>>, %arg7: memref<1x64xf32, #tpu.memory_space<vmem>>, %arg8: memref<64x32xbf16, #tpu.memory_space<vmem>>, %arg9: memref<1x32xf32, #tpu.memory_space<vmem>>, %arg10: memref<32x32xf32, #tpu.memory_space<vmem>>) attributes {dimension_semantics = [#tpu.dimension_semantics<parallel>], iteration_bounds = array<i64: 1>, scalar_prefetch = 0 : i64, scratch_operands = 0 : i64, tpu.core_type = #tpu.core_type<tc>, window_params = [{transform_indices = @transform_0, window_bounds = array<i64: 32, 32>}, {pipeline_mode = #tpu.pipeline_mode<synchronous>, transform_indices = @transform_1, window_bounds = array<i64: 1, 32>}, {pipeline_mode = #tpu.pipeline_mode<synchronous>, transform_indices = @transform_2, window_bounds = array<i64: 1, 32>}, {pipeline_mode = #tpu.pipeline_mode<synchronous>, transform_indices = @transform_3, window_bounds = array<i64: 32, 64>}, {pipeline_mode = #tpu.pipeline_mode<synchronous>, transform_indices = @transform_4, window_bounds = array<i64: 1, 64>}, {pipeline_mode = #tpu.pipeline_mode<synchronous>, transform_indices = @transform_5, window_bounds = array<i64: 1, 64>}, {pipeline_mode = #tpu.pipeline_mode<synchronous>, transform_indices = @transform_6, window_bounds = array<i64: 1, 64>}, {pipeline_mode = #tpu.pipeline_mode<synchronous>, transform_indices = @transform_7, window_bounds = array<i64: 64, 32>}, {pipeline_mode = #tpu.pipeline_mode<synchronous>, transform_indices = @transform_8, window_bounds = array<i64: 1, 32>}, {transform_indices = @transform_9, window_bounds = array<i64: 32, 32>}]} {
    %c0 = arith.constant 0 : index
    %c0_0 = arith.constant 0 : index
    %0 = vector.load %arg1[%c0, %c0_0] : memref<32x32xf32, #tpu.memory_space<vmem>>, vector<32x32xf32>
    %c0_1 = arith.constant 0 : index
    %c0_2 = arith.constant 0 : index
    %1 = vector.load %arg2[%c0_1, %c0_2] : memref<1x32xf32, #tpu.memory_space<vmem>>, vector<1x32xf32>
    %c0_3 = arith.constant 0 : index
    %c0_4 = arith.constant 0 : index
    %2 = vector.load %arg3[%c0_3, %c0_4] : memref<1x32xf32, #tpu.memory_space<vmem>>, vector<1x32xf32>
    %cst = arith.constant dense<0.000000e+00> : vector<32xf32>
    %3 = vector.multi_reduction <add>, %0, %cst [1] : vector<32x32xf32> to vector<32xf32>
    %4 = vector.shape_cast %3 : vector<32xf32> to vector<32x1xf32>
    %cst_5 = arith.constant 3.200000e+01 : f32
    %5 = vector.broadcast %cst_5 : f32 to vector<32x1xf32>
    %6 = arith.divf %4, %5 : vector<32x1xf32>
    %7 = vector.broadcast %6 : vector<32x1xf32> to vector<32x32xf32>
    %8 = arith.subf %0, %7 : vector<32x32xf32>
    %9 = arith.mulf %8, %8 : vector<32x32xf32>
    %cst_6 = arith.constant dense<0.000000e+00> : vector<32xf32>
    %10 = vector.multi_reduction <add>, %9, %cst_6 [1] : vector<32x32xf32> to vector<32xf32>
    %11 = vector.shape_cast %10 : vector<32xf32> to vector<32x1xf32>
    %cst_7 = arith.constant 3.200000e+01 : f32
    %12 = vector.broadcast %cst_7 : f32 to vector<32x1xf32>
    %13 = arith.divf %11, %12 : vector<32x1xf32>
    %14 = vector.broadcast %6 : vector<32x1xf32> to vector<32x32xf32>
    %15 = arith.subf %0, %14 : vector<32x32xf32>
    %cst_8 = arith.constant 9.99999974E-6 : f32
    %16 = vector.broadcast %cst_8 : f32 to vector<32x1xf32>
    %17 = arith.addf %13, %16 : vector<32x1xf32>
    %18 = math.rsqrt %17 : vector<32x1xf32>
    %19 = vector.broadcast %18 : vector<32x1xf32> to vector<32x32xf32>
    %20 = arith.mulf %15, %19 : vector<32x32xf32>
    %21 = vector.broadcast %1 : vector<1x32xf32> to vector<32x32xf32>
    %22 = arith.mulf %20, %21 : vector<32x32xf32>
    %23 = vector.broadcast %2 : vector<1x32xf32> to vector<32x32xf32>
    %24 = arith.addf %22, %23 : vector<32x32xf32>
    %25 = arith.truncf %24 : vector<32x32xf32> to vector<32x32xbf16>
    %c0_9 = arith.constant 0 : index
    %c0_10 = arith.constant 0 : index
    %26 = vector.load %arg4[%c0_9, %c0_10] : memref<32x64xbf16, #tpu.memory_space<vmem>>, vector<32x64xbf16>
    %cst_11 = arith.constant dense<0.000000e+00> : vector<32x64xf32>
    %27 = tpu.matmul %25, %26, %cst_11 {dimension_numbers = #tpu.dot_dimension_numbers<[1], [0], [0], [1], [0, 0, 1, 1], [], []>} : vector<32x32xbf16>, vector<32x64xbf16>, vector<32x64xf32> -> vector<32x64xf32>
    %c0_12 = arith.constant 0 : index
    %c0_13 = arith.constant 0 : index
    %28 = vector.load %arg5[%c0_12, %c0_13] : memref<1x64xf32, #tpu.memory_space<vmem>>, vector<1x64xf32>
    %29 = vector.broadcast %28 : vector<1x64xf32> to vector<32x64xf32>
    %30 = arith.addf %27, %29 : vector<32x64xf32>
    %cst_14 = arith.constant 0.000000e+00 : f32
    %31 = vector.broadcast %cst_14 : f32 to vector<32x64xf32>
    %32 = arith.maximumf %30, %31 : vector<32x64xf32>
    %c0_15 = arith.constant 0 : index
    %c0_16 = arith.constant 0 : index
    %33 = vector.load %arg6[%c0_15, %c0_16] : memref<1x64xf32, #tpu.memory_space<vmem>>, vector<1x64xf32>
    %c0_17 = arith.constant 0 : index
    %c0_18 = arith.constant 0 : index
    %34 = vector.load %arg7[%c0_17, %c0_18] : memref<1x64xf32, #tpu.memory_space<vmem>>, vector<1x64xf32>
    %cst_19 = arith.constant dense<0.000000e+00> : vector<32xf32>
    %35 = vector.multi_reduction <add>, %32, %cst_19 [1] : vector<32x64xf32> to vector<32xf32>
    %36 = vector.shape_cast %35 : vector<32xf32> to vector<32x1xf32>
    %cst_20 = arith.constant 6.400000e+01 : f32
    %37 = vector.broadcast %cst_20 : f32 to vector<32x1xf32>
    %38 = arith.divf %36, %37 : vector<32x1xf32>
    %39 = vector.broadcast %38 : vector<32x1xf32> to vector<32x64xf32>
    %40 = arith.subf %32, %39 : vector<32x64xf32>
    %41 = arith.mulf %40, %40 : vector<32x64xf32>
    %cst_21 = arith.constant dense<0.000000e+00> : vector<32xf32>
    %42 = vector.multi_reduction <add>, %41, %cst_21 [1] : vector<32x64xf32> to vector<32xf32>
    %43 = vector.shape_cast %42 : vector<32xf32> to vector<32x1xf32>
    %cst_22 = arith.constant 6.400000e+01 : f32
    %44 = vector.broadcast %cst_22 : f32 to vector<32x1xf32>
    %45 = arith.divf %43, %44 : vector<32x1xf32>
    %46 = vector.broadcast %38 : vector<32x1xf32> to vector<32x64xf32>
    %47 = arith.subf %32, %46 : vector<32x64xf32>
    %cst_23 = arith.constant 9.99999974E-6 : f32
    %48 = vector.broadcast %cst_23 : f32 to vector<32x1xf32>
    %49 = arith.addf %45, %48 : vector<32x1xf32>
    %50 = math.rsqrt %49 : vector<32x1xf32>
    %51 = vector.broadcast %50 : vector<32x1xf32> to vector<32x64xf32>
    %52 = arith.mulf %47, %51 : vector<32x64xf32>
    %53 = vector.broadcast %33 : vector<1x64xf32> to vector<32x64xf32>
    %54 = arith.mulf %52, %53 : vector<32x64xf32>
    %55 = vector.broadcast %34 : vector<1x64xf32> to vector<32x64xf32>
    %56 = arith.addf %54, %55 : vector<32x64xf32>
    %57 = arith.truncf %56 : vector<32x64xf32> to vector<32x64xbf16>
    %c0_24 = arith.constant 0 : index
    %c0_25 = arith.constant 0 : index
    %58 = vector.load %arg8[%c0_24, %c0_25] : memref<64x32xbf16, #tpu.memory_space<vmem>>, vector<64x32xbf16>
    %cst_26 = arith.constant dense<0.000000e+00> : vector<32x32xf32>
    %59 = tpu.matmul %57, %58, %cst_26 {dimension_numbers = #tpu.dot_dimension_numbers<[1], [0], [0], [1], [0, 0, 1, 1], [], []>} : vector<32x64xbf16>, vector<64x32xbf16>, vector<32x32xf32> -> vector<32x32xf32>
    %c0_27 = arith.constant 0 : index
    %c0_28 = arith.constant 0 : index
    %60 = vector.load %arg9[%c0_27, %c0_28] : memref<1x32xf32, #tpu.memory_space<vmem>>, vector<1x32xf32>
    %61 = vector.broadcast %60 : vector<1x32xf32> to vector<32x32xf32>
    %62 = arith.addf %59, %61 : vector<32x32xf32>
    %63 = arith.addf %0, %62 : vector<32x32xf32>
    %c0_29 = arith.constant 0 : index
    %c0_30 = arith.constant 0 : index
    %64 = vector.load %arg10[%c0_29, %c0_30] : memref<32x32xf32, #tpu.memory_space<vmem>>, vector<32x32xf32>
    tpu.vector_store %arg10[%c0_29, %c0_30], %63 {strides = array<i32>} : memref<32x32xf32, #tpu.memory_space<vmem>>, vector<32x32xf32>,
    return
  }
  func.func @transform_0(%arg0: i32) -> (i32, i32) {
    %c0_i32 = arith.constant 0 : i32
    %c0_i32_0 = arith.constant 0 : i32
    return %arg0, %c0_i32 : i32, i32
  }
  func.func @transform_1(%arg0: i32) -> (i32, i32) {
    %c0_i32 = arith.constant 0 : i32
    %c0_i32_0 = arith.constant 0 : i32
    %c0_i32_1 = arith.constant 0 : i32
    return %c0_i32, %c0_i32_0 : i32, i32
  }
  func.func @transform_2(%arg0: i32) -> (i32, i32) {
    %c0_i32 = arith.constant 0 : i32
    %c0_i32_0 = arith.constant 0 : i32
    %c0_i32_1 = arith.constant 0 : i32
    return %c0_i32, %c0_i32_0 : i32, i32
  }
  func.func @transform_3(%arg0: i32) -> (i32, i32) {
    %c0_i32 = arith.constant 0 : i32
    %c0_i32_0 = arith.constant 0 : i32
    %c0_i32_1 = arith.constant 0 : i32
    return %c0_i32, %c0_i32_0 : i32, i32
  }
  func.func @transform_4(%arg0: i32) -> (i32, i32) {
    %c0_i32 = arith.constant 0 : i32
    %c0_i32_0 = arith.constant 0 : i32
    %c0_i32_1 = arith.constant 0 : i32
    return %c0_i32, %c0_i32_0 : i32, i32
  }
  func.func @transform_5(%arg0: i32) -> (i32, i32) {
    %c0_i32 = arith.constant 0 : i32
    %c0_i32_0 = arith.constant 0 : i32
    %c0_i32_1 = arith.constant 0 : i32
    return %c0_i32, %c0_i32_0 : i32, i32
  }
  func.func @transform_6(%arg0: i32) -> (i32, i32) {
    %c0_i32 = arith.constant 0 : i32
    %c0_i32_0 = arith.constant 0 : i32
    %c0_i32_1 = arith.constant 0 : i32
    return %c0_i32, %c0_i32_0 : i32, i32
  }
  func.func @transform_7(%arg0: i32) -> (i32, i32) {
    %c0_i32 = arith.constant 0 : i32
    %c0_i32_0 = arith.constant 0 : i32
    %c0_i32_1 = arith.constant 0 : i32
    return %c0_i32, %c0_i32_0 : i32, i32
  }
  func.func @transform_8(%arg0: i32) -> (i32, i32) {
    %c0_i32 = arith.constant 0 : i32
    %c0_i32_0 = arith.constant 0 : i32
    %c0_i32_1 = arith.constant 0 : i32
    return %c0_i32, %c0_i32_0 : i32, i32
  }
  func.func @transform_9(%arg0: i32) -> (i32, i32) {
    %c0_i32 = arith.constant 0 : i32
    %c0_i32_0 = arith.constant 0 : i32
    return %arg0, %c0_i32 : i32, i32
  }
}

</mosaic_0001>

<bundles_post_ra>
// kernel: decoder_layer.4
= control target key start
LH: loop header
LB: loop body
LE: loop exit
PB: predicated region body
PF: predicated region fallthrough
CT: control target
= control target key end

     0   :  { %s2162_s24 = smov 0   ;;  %s2164_s25 = smov 0   ;;  %s2446_s0 = inlined_call_operand.vmem [shape: f32[2,16,32], index: 0, kind: input, shape index: {}]   ;;  %s2447_s1 = inlined_call_operand.vmem [shape: f32[16,32], index: 1, kind: input, shape index: {}]   ;;  %s2448_s2 = inlined_call_operand.vmem [shape: f32[2,8,32], index: 2, kind: input, shape index: {}]   ;;  %s2449_s3 = inlined_call_operand.vmem [shape: f32[8,32], index: 3, kind: input, shape index: {}]   ;;  %s2450_s4 = inlined_call_operand.vmem [shape: f32[2,1,8], index: 4, kind: input, shape index: {}]   ;;  %s2451_s5 = inlined_call_operand.vmem [shape: f32[1,32], index: 5, kind: input, shape index: {}]   ;;  %s2452_s6 = inlined_call_operand.vmem [shape: f32[1,32], index: 6, kind: input, shape index: {}]   ;;  %s2453_s7 = inlined_call_operand.vmem [shape: bf16[4,32,8], index: 7, kind: input, shape index: {}]   ;;  %s2454_s8 = inlined_call_operand.vmem [shape: f32[4,1,8], index: 8, kind: input, shape index: {}]   ;;  %s2455_s9 = inlined_call_operand.vmem [shape: bf16[4,32,8], index: 9, kind: input, shape index: {}]   ;;  %s2456_s10 = inlined_call_operand.vmem [shape: f32[4,1,8], index: 10, kind: input, shape index: {}]   ;;  %s2457_s11 = inlined_call_operand.vmem [shape: bf16[4,32,8], index: 11, kind: input, shape index: {}]   ;;  %s2458_s12 = inlined_call_operand.vmem [shape: f32[4,1,8], index: 12, kind: input, shape index: {}]   ;;  %s2459_s13 = inlined_call_operand.vmem [shape: bf16[4,8,32], index: 13, kind: input, shape index: {}]   ;;  %s2460_s14 = inlined_call_operand.vmem [shape: f32[1,32], index: 14, kind: input, shape index: {}]   ;;  %s2461_s15 = inlined_call_operand.vmem [shape: f32[1,32], index: 15, kind: input, shape index: {}]   ;;  %s2462_s16 = inlined_call_operand.vmem [shape: f32[1,32], index: 16, kind: input, shape index: {}]   ;;  %s2463_s17 = inlined_call_operand.vmem [shape: f32[2,16,32], index: 17, kind: output, shape index: {}]  }
   0x1   :  { %2466 = sst [smem:[#allocation6_spill]] %s2446_s0  ;;  %s2166_s26 = smov 0  }
   0x2   :  { %2467 = sst [smem:[#allocation7_spill]] %s2447_s1 }
   0x3 LB: > { %2468 = sst [smem:[#allocation4_spill]] %s2050_s25  ;;  %s39_s27 = sadd.s32 1, %s2050_s25  ;;  %s2054_s26 = sphi %s2166_s26, %s27_s26   ;;  %s2050_s25 = sphi %s2164_s25, %s2475_s25   ;;  %s2046_s24 = sphi %s2162_s24, %s2474_s24  }
   0x4   : > { %p1720_p0 = scmp.ge.s32.totalorder %s2054_s26, 1  ;;  %p41_p1 = scmp.ge.s32.totalorder %s39_s27, 2 }
   0x5   : > { %p536_p2 = scmp.lt.s32.totalorder %s2054_s26, 3 }
   0x6   : > { %s2477_s27 = smov (%p41_p1, %s39_s27), 0 }
   0x7   : > { %2469 = sst [smem:[#allocation5_spill]] %s2477_s27  ;;  %p537_p3 = pnand %p1720_p0, %p536_p2 }
   0x8   : > { %p609_p4 = scmp.lt.s32.totalorder (!%p537_p3), %s2046_s24, 1  ;;  %v1986_v0 = vld [vmem:[%s2455_s9] sm:$0xff] (!%p537_p3)   ;;  %v2068_v1 = vmov (!%p537_p3), 0.0   ;;  %v1988_v3 = vld [vmem:[%s2455_s9 + $0x8] sm:$0xff] (!%p537_p3)   ;;  %vm674_vm0 = vcmask (!%p537_p3), 261120   ;;  %vm2069_vm1 = vmmov (!%p537_p3), 0  }
   0x9   : > { %540 = sbr.rel (%p537_p3) target bundleno = 1854 (0x73e), region = 88  ;;  %1844 = vmatprep.subr.bf16.mxu0 (!%p537_p3), %v2068_v1  ;;  %1852 = vmatprep.subr.bf16.mxu1 (!%p537_p3), %v2068_v1  ;;  %v1987_v2 = vld [vmem:[%s2457_s11] sm:$0xff] (!%p537_p3)   ;;  %v1989_v4 = vld [vmem:[%s2457_s11 + $0x8] sm:$0xff] (!%p537_p3)   ;;  %s2470_s30 = sld [smem:[#allocation6_spill]] (!%p537_p3)  ;;  %v1991_v10 = vld [vmem:[%s2457_s11 + $0x10] sm:$0xff] (!%p537_p3)   ;;  %vm719_vm2 = vcmask (!%p537_p3), 60416  }
   0xa   : > { %1845 = vmatpush3.bf16.msra.mxu0 (!%p537_p3), %v1986_v0  ;;  %1853 = vmatpush3.bf16.msra.mxu1 (!%p537_p3), %v1987_v2  ;;  %v647_v6 = vld [vmem:[%s2449_s3] sm:$0xff] (!%p537_p3)  ;;  %v1990_v15 = vld [vmem:[%s2455_s9 + $0x10] sm:$0xff] (!%p537_p3)   ;;  %v1993_v17 = vld [vmem:[%s2457_s11 + $0x18] sm:$0xff] (!%p537_p3)   ;;  %s2471_s20 = sld [smem:[#allocation7_spill]] (!%p537_p3)  ;;  %s2363_s27 = smov (!%p537_p3), 0  }
   0xb   : > { %1846 = vmatprep.subr.bf16.mxu0 (!%p537_p3), %v2068_v1  ;;  %1848 = vmatprep.mubr.msk.bf16.mxu0 (!%p537_p3), %vm2069_vm1, %v2068_v1  ;;  %v1992_v18 = vld [vmem:[%s2455_s9 + $0x18] sm:$0xff] (!%p537_p3)   ;;  %v1995_v19 = vld [vmem:[%s2457_s11 + $0x20] sm:$0xff] (!%p537_p3)   ;;  %v1997_v21 = vld [vmem:[%s2457_s11 + $0x28] sm:$0xff] (!%p537_p3)  }
   0xc   : > { %1854 = vmatprep.subr.bf16.mxu1 (!%p537_p3), %v2068_v1  ;;  %1856 = vmatprep.mubr.msk.bf16.mxu1 (!%p537_p3), %vm2069_vm1, %v2068_v1  ;;  %v1994_v20 = vld [vmem:[%s2455_s9 + $0x20] sm:$0xff] (!%p537_p3)   ;;  %v1996_v22 = vld [vmem:[%s2455_s9 + $0x28] sm:$0xff] (!%p537_p3)   ;;  %v1999_v23 = vld [vmem:[%s2457_s11 + $0x30] sm:$0xff] (!%p537_p3)  }
   0xd   : > { %v1998_v24 = vld [vmem:[%s2455_s9 + $0x30] sm:$0xff] (!%p537_p3)   ;;  %v2001_v25 = vld [vmem:[%s2457_s11 + $0x38] sm:$0xff] (!%p537_p3)   ;;  %v1730_v37 = vld [vmem:[%s2458_s12] ss:$0 sm:$0xff] (!%p537_p3) }
   0xe   : > { %1847 = vmatpush3.bf16.msra.mxu0 (!%p537_p3), %v1988_v3  ;;  %1855 = vmatpush3.bf16.msra.mxu1 (!%p537_p3), %v1989_v4  ;;  %v2000_v26 = vld [vmem:[%s2455_s9 + $0x38] sm:$0xff] (!%p537_p3)   ;;  %v1726_v38 = vld [vmem:[%s2456_s10] ss:$0 sm:$0xff] (!%p537_p3)  ;;  %v1748_v51 = vld [vmem:[%s2458_s12 + $0x1] ss:$0 sm:$0xff] (!%p537_p3) }
   0xf   : > { %1860 = vmatprep.subr.bf16.mxu0 (!%p537_p3), %v2068_v1  ;;  %1868 = vmatprep.subr.bf16.mxu1 (!%p537_p3), %v2068_v1  ;;  %v1739_v52 = vld [vmem:[%s2456_s10 + $0x1] ss:$0 sm:$0xff] (!%p537_p3)  ;;  %v1757_v2 = vld [vmem:[%s2456_s10 + $0x2] ss:$0 sm:$0xff] (!%p537_p3) }
  0x10   : > { %s2479_s24 = smov (!%p609_p4, %s2046_s24), 1 }
  0x11   : > { %s1808_s1 = sshll.u32 %s2479_s24, 4  ;;  %s630_s22 = scalar_lea.vmem %s2450_s4, %s2479_s24 }
  0x12   : > { %s616_s18 = scalar_lea.vmem %s2470_s30, %s1808_s1  ;;  %s2206_s25 = scalar_lea.vmem %s2463_s17, %s1808_s1  ;;  %v2208_v5 = vld [vmem:[%s630_s22] ss:$0 sm:$0xff] }
  0x13   : > { %v2216_v7 = vld [vmem:[%s616_s18] sm:$0xff]  ;;  %v2218_v8 = vld [vmem:[%s616_s18 + $0x8] sm:$0xff]  ;;  %s1723_s23 = sshll.u32 %s2479_s24, 3 }
  0x14   : > { %v1202_v9 = vsel %vm674_vm0, %v2216_v7, 0.0  ;;  %s627_s22 = scalar_lea.vmem %s2448_s2, %s1723_s23  ;;  %v1205_v12 = vsel %vm674_vm0, %v2218_v8, 0.0 }
  0x15   : > { %1203 = vadd.xlane.f32.xlu0 %v1202_v9  ;;  %v646_v11 = vld [vmem:[%s627_s22] sm:$0xff] }
  0x16   : > { %v648_v13 = vadd.f32 %v647_v6, %v646_v11  ;;  %v650_v14 = vpack.c.bf16 %v646_v11, %v646_v11 }
  0x18   : > { %v649_v16 = vpack.c.bf16 %v648_v13, %v648_v13  ;;  %1857 = vmatmul.mubr.msk.bf16.vlgmr.msra.gmra.mrb[0].mxu1 %vm674_vm0, %v650_v14 }
  0x19   : > { %1206 = vadd.xlane.f32.xlu0 %v1205_v12  ;;  %1869 = vmatpush3.bf16.msra.mxu1 %v1991_v10 }
  0x1a   : > { %1849 = vmatmul.mubr.msk.bf16.vlgmr.msra.gmra.mrb[0].mxu0 %vm674_vm0, %v649_v16  ;;  %1870 = vmatprep.subr.bf16.mxu1 %v2068_v1 }
  0x1b   : > { %1861 = vmatpush3.bf16.msra.mxu0 %v1990_v15  ;;  %1864 = vmatprep.mubr.msk.bf16.mxu0 %vm2069_vm1, %v2068_v1 }
  0x1c   : > { %1862 = vmatprep.subr.bf16.mxu0 %v2068_v1  ;;  %1872 = vmatprep.mubr.msk.bf16.mxu1 %vm2069_vm1, %v2068_v1 }
  0x1d   : > { %1871 = vmatpush3.bf16.msra.mxu1 %v1993_v17 }
  0x1e   : > { %1884 = vmatprep.subr.bf16.mxu1 %v2068_v1 }
  0x1f   : > { %1863 = vmatpush3.bf16.msra.mxu0 %v1992_v18  ;;  %v1784_v18 = vld [vmem:[%s2458_s12 + $0x3] ss:$0 sm:$0xff] }
  0x20   : > { %1873 = vmatmul.mubr.msk.bf16.vlgmr.msra.gmra.mrb[4].mxu1 %vm674_vm0, %v650_v14  ;;  %1876 = vmatprep.subr.bf16.mxu0 %v2068_v1 }
  0x21   : > { %1885 = vmatpush3.bf16.msra.mxu1 %v1995_v19  ;;  %1888 = vmatprep.mubr.msk.bf16.mxu1 %vm2069_vm1, %v2068_v1  ;;  %v1775_v19 = vld [vmem:[%s2456_s10 + $0x3] ss:$0 sm:$0xff] }
  0x22   : > { %1865 = vmatmul.mubr.msk.bf16.vlgmr.msra.gmra.mrb[4].mxu0 %vm674_vm0, %v649_v16  ;;  %1886 = vmatprep.subr.bf16.mxu1 %v2068_v1 }
  0x23   : > { %1877 = vmatpush3.bf16.msra.mxu0 %v1994_v20  ;;  %1880 = vmatprep.mubr.msk.bf16.mxu0 %vm2069_vm1, %v2068_v1 }
  0x24   : > { %1878 = vmatprep.subr.bf16.mxu0 %v2068_v1 }
  0x25   : > { %1887 = vmatpush3.bf16.msra.mxu1 %v1997_v21 }
  0x26   : > { %1900 = vmatprep.subr.bf16.mxu1 %v2068_v1 }
  0x27   : > { %1879 = vmatpush3.bf16.msra.mxu0 %v1996_v22 }
  0x28   : > { %1889 = vmatmul.mubr.msk.bf16.vlgmr.msra.gmra.mrb[8].mxu1 %vm674_vm0, %v650_v14  ;;  %1892 = vmatprep.subr.bf16.mxu0 %v2068_v1 }
  0x29   : > { %1901 = vmatpush3.bf16.msra.mxu1 %v1999_v23  ;;  %1904 = vmatprep.mubr.msk.bf16.mxu1 %vm2069_vm1, %v2068_v1 }
  0x2a   : > { %1881 = vmatmul.mubr.msk.bf16.vlgmr.msra.gmra.mrb[8].mxu0 %vm674_vm0, %v649_v16  ;;  %1902 = vmatprep.subr.bf16.mxu1 %v2068_v1 }
  0x2b   : > { %1893 = vmatpush3.bf16.msra.mxu0 %v1998_v24  ;;  %1896 = vmatprep.mubr.msk.bf16.mxu0 %vm2069_vm1, %v2068_v1 }
  0x2c   : > { %1894 = vmatprep.subr.bf16.mxu0 %v2068_v1  ;;  %v1766_v1 = vld [vmem:[%s2458_s12 + $0x2] ss:$0 sm:$0xff] }
  0x2d   : > { %1903 = vmatpush3.bf16.msra.mxu1 %v2001_v25 }
  0x2f   : > { %1895 = vmatpush3.bf16.msra.mxu0 %v2000_v26 }
  0x30   : > { %1905 = vmatmul.mubr.msk.bf16.vlgmr.msra.gmra.mrb[12].mxu1 %vm674_vm0, %v650_v14 }
  0x32   : > { %1897 = vmatmul.mubr.msk.bf16.vlgmr.msra.gmra.mrb[12].mxu0 %vm674_vm0, %v649_v16 }
  0xa2   : > { %v1204_v27 = vpop.xlane.xlu0 %1203 }
  0xa3   : > { %v1209_v28 = vmul.f32 0.03125, %v1204_v27 }
  0xa5   : > { %v2296_v29 = vsub.f32 %v2216_v7, %v1209_v28 }
  0xa6   : > { %v1207_v30 = vpop.xlane.xlu0 %1206 }
  0xa7   : > { %v1210_v31 = vmul.f32 0.03125, %v1207_v30  ;;  %v1213_v32 = vmul.f32 %v2296_v29, %v2296_v29 }
  0xa9   : > { %v2301_v33 = vsub.f32 %v2218_v8, %v1210_v31  ;;  %v1215_v34 = vsel %vm674_vm0, %v1213_v32, 0.0 }
  0xaa   : > { %1216 = vadd.xlane.f32.xlu1 %v1215_v34 }
  0xab   : > { %v1214_v35 = vmul.f32 %v2301_v33, %v2301_v33 }
  0xad   : > { %v1218_v36 = vsel %vm674_vm0, %v1214_v35, 0.0 }
  0xae   : > { %1219 = vadd.xlane.f32.xlu1 %v1218_v36 }
  0xeb   : > { %v781_v39 = vpop.f32.mrb[0].mxu1 }
  0xec   : > { %v782_v40 = vadd.f32 %v1730_v37, %v781_v39  ;;  %v1858_v41 = vpop.f32.mrb[1].mxu1 }
  0xed   : > { %v712_v42 = vpop.f32.mrb[0].mxu0  ;;  %v784_v43 = vpop.f32.mrb[2].mxu1  ;;  %v1788_v41 = vld [vmem:[%s2451_s5] ss:$0 sm:$0xff] }
  0xee   : > { %v713_v44 = vadd.f32 %v1726_v38, %v712_v42  ;;  %v787_v45 = vpack.c.bf16 %v782_v40, %v782_v40  ;;  %v1850_v46 = vpop.f32.mrb[1].mxu0  ;;  %v1859_v47 = vpop.f32.mrb[3].mxu1 }
  0xef   : > { %v715_v48 = vpop.f32.mrb[2].mxu0 }
  0xf0   : > { %v718_v49 = vpack.c.bf16 %v713_v44, %v713_v44  ;;  %788 = vst.msk [vmem:[#allocation3] sm:$0xf] %vm719_vm2, %v787_v45  ;;  %v1851_v50 = vpop.f32.mrb[3].mxu0  ;;  %v1789_v45 = vld [vmem:[%s2452_s6] ss:$0 sm:$0xff] }
  0xf1   : > { %v1246_v50 = vld [vmem:[%s2471_s20 + $0x8] sm:$0xff] }
  0xf2   : > { %720 = vst.msk [vmem:[#allocation2] sm:$0xf] %vm719_vm2, %v718_v49  ;;  %v1245_v49 = vld [vmem:[%s2471_s20] sm:$0xff] }
  0xf3   : > { %v916_v53 = vpop.f32.mrb[4].mxu1 }
  0xf4   : > { %v917_v54 = vadd.f32 %v1748_v51, %v916_v53  ;;  %v1874_v55 = vpop.f32.mrb[5].mxu1 }
  0xf5   : > { %v848_v56 = vpop.f32.mrb[4].mxu0  ;;  %v919_v57 = vpop.f32.mrb[6].mxu1 }
  0xf6   : > { %v849_v58 = vadd.f32 %v1739_v52, %v848_v56  ;;  %v922_v59 = vpack.c.bf16 %v917_v54, %v917_v54  ;;  %v1866_v60 = vpop.f32.mrb[5].mxu0  ;;  %v1875_v61 = vpop.f32.mrb[7].mxu1  ;;  %v2359_v54 = vmov 0.0  }
  0xf7   : > { %v851_v62 = vpop.f32.mrb[6].mxu0 }
  0xf8   : > { %v854_v63 = vpack.c.bf16 %v849_v58, %v849_v58  ;;  %924 = vst.msk [vmem:[#allocation3 + $0x4] sm:$0xf] %vm719_vm2, %v922_v59  ;;  %v1867_v0 = vpop.f32.mrb[7].mxu0 }
  0xfa   : > { %856 = vst.msk [vmem:[#allocation2 + $0x4] sm:$0xf] %vm719_vm2, %v854_v63 }
  0xfb   : > { %v1052_v3 = vpop.f32.mrb[8].mxu1 }
  0xfc   : > { %v1053_v4 = vadd.f32 %v1766_v1, %v1052_v3  ;;  %v1890_v6 = vpop.f32.mrb[9].mxu1 }
  0xfd   : > { %v984_v9 = vpop.f32.mrb[8].mxu0  ;;  %v1055_v10 = vpop.f32.mrb[10].mxu1 }
  0xfe   : > { %v985_v11 = vadd.f32 %v1757_v2, %v984_v9  ;;  %v1058_v12 = vpack.c.bf16 %v1053_v4, %v1053_v4  ;;  %v1882_v13 = vpop.f32.mrb[9].mxu0  ;;  %v1891_v14 = vpop.f32.mrb[11].mxu1 }
  0xff   : > { %v987_v15 = vpop.f32.mrb[10].mxu0 }
 0x100   : > { %v990_v16 = vpack.c.bf16 %v985_v11, %v985_v11  ;;  %1060 = vst.msk [vmem:[#allocation3 + $0x8] sm:$0xf] %vm719_vm2, %v1058_v12  ;;  %v1883_v17 = vpop.f32.mrb[11].mxu0 }
 0x102   : > { %992 = vst.msk [vmem:[#allocation2 + $0x8] sm:$0xf] %vm719_vm2, %v990_v16 }
 0x103   : > { %v1188_v20 = vpop.f32.mrb[12].mxu1 }
 0x104   : > { %v1189_v21 = vadd.f32 %v1784_v18, %v1188_v20  ;;  %v1906_v22 = vpop.f32.mrb[13].mxu1 }
 0x105   : > { %v1120_v23 = vpop.f32.mrb[12].mxu0  ;;  %v1191_v24 = vpop.f32.mrb[14].mxu1 }
 0x106   : > { %v1121_v25 = vadd.f32 %v1775_v19, %v1120_v23  ;;  %v1194_v26 = vpack.c.bf16 %v1189_v21, %v1189_v21  ;;  %v1898_v27 = vpop.f32.mrb[13].mxu0  ;;  %v1907_v28 = vpop.f32.mrb[15].mxu1 }
 0x107   : > { %v1123_v30 = vpop.f32.mrb[14].mxu0 }
 0x108   : > { %v1126_v31 = vpack.c.bf16 %v1121_v25, %v1121_v25  ;;  %1196 = vst.msk [vmem:[#allocation3 + $0xc] sm:$0xf] %vm719_vm2, %v1194_v26  ;;  %v1899_v32 = vpop.f32.mrb[15].mxu0 }
 0x10a   : > { %1128 = vst.msk [vmem:[#allocation2 + $0xc] sm:$0xf] %vm719_vm2, %v1126_v31 }
 0x137   : > { %v1217_v34 = vpop.xlane.xlu1 %1216 }
 0x138   : > { %v1221_v35 = vmul.f32 0.03125, %v1217_v34 }
 0x13a   : > { %v1223_v36 = vadd.f32 1e-05, %v1221_v35 }
 0x13b   : > { %v1220_v37 = vpop.xlane.xlu1 %1219 }
 0x13c   : > { %2002 = vrsqrt.f32 %v1223_v36  ;;  %v1222_v38 = vmul.f32 0.03125, %v1220_v37 }
 0x13e   : > { %v1224_v39 = vadd.f32 1e-05, %v1222_v38 }
 0x140   : > { %2004 = vrsqrt.f32 %v1224_v39 }
 0x146   : > { %v2003_v40 = vpop.eup %2002 }
 0x147   : > { %v1227_v42 = vmul.f32 %v2003_v40, %v2296_v29 }
 0x149   : > { %v1235_v43 = vmul.f32 %v1788_v41, %v1227_v42 }
 0x14a   : > { %v2005_v44 = vpop.eup %2004 }
 0x14b   : > { %v1228_v46 = vmul.f32 %v2005_v44, %v2301_v33  ;;  %v1243_v47 = vadd.f32 %v1789_v45, %v1235_v43  ;;  %v2361_v33 = vmov 0.0  }
 0x14d   : > { %v1236_v48 = vmul.f32 %v1788_v41, %v1228_v46  ;;  %v2353_v29 = vadd.f32 %v1245_v49, %v1243_v47 }
 0x14f   : > { %v1244_v51 = vadd.f32 %v1789_v45, %v1236_v48 }
 0x151   : > { %v2355_v52 = vadd.f32 %v1246_v50, %v1244_v51 }
 0x153   : > { %v1249_v53 = vpack.c.bf16 %v2355_v52, %v2353_v29 }
 0x154 LB: >> { %v2070_v55 = vmov 0.0   ;;  %vm2071_vm3 = vmmov 0   ;;  %s1810_s1 = sshll.u32 %s2066_s27, 4  ;;  %s2386_s24 = sshll.u32 %s2066_s27, 2  ;;  %vm1340_vm4 = vcmask 64512   ;;  %vm1417_vm5 = vcmask 1043456   ;;  %s2066_s27 = sphi %s2363_s27, %s1256_s27   ;;  %v2062_v33 = vphi %v2361_v33, %v2473_v33   ;;  %v2058_v54 = vphi %v2359_v54, %v2472_v54  }
 0x155   : >> { %1908 = vmatprep.subr.bf16.mxu0 %v2070_v55  ;;  %1912 = vmatprep.mubr.msk.bf16.mxu0 %vm2071_vm3, %v2070_v55  ;;  %s1261_s29 = scalar_lea.vmem %s2453_s7, %s1810_s1  ;;  %s1332_s0 = scalar_lea.vmem [#allocation2], %s2386_s24 }
 0x156   : >> { %1916 = vmatprep.subr.bf16.mxu1 %v2070_v55  ;;  %1918 = vmatprep.mubr.msk.bf16.mxu1 %vm2071_vm3, %v2070_v55  ;;  %v2006_v56 = vld [vmem:[%s1261_s29] sm:$0xff]   ;;  %v2007_v57 = vld [vmem:[%s1261_s29 + $0x8] sm:$0xff]   ;;  %s1266_s19 = scalar_lea.vmem %s2454_s8, %s2066_s27  ;;  %s1412_s21 = scalar_lea.vmem [#allocation3], %s2386_s24 }
 0x157   : >> { %1909 = vmatpush3.bf16.msra.mxu0 %v2006_v56  ;;  %v1333_v58 = vld [vmem:[%s1332_s0] sm:$0xf]  ;;  %s1464_s22 = scalar_lea.vmem %s2459_s13, %s2386_s24  ;;  %s1256_s27 = sadd.s32 1, %s2066_s27  }
 0x158   : >> { %1910 = vmatprep.subr.bf16.mxu0 %v2070_v55  ;;  %v1345_v59 = vsel %vm1340_vm4, %v1333_v58, 0  ;;  %v1792_v60 = vld [vmem:[%s1266_s19] ss:$0 sm:$0xff]  ;;  %p1253_p5 = scmp.ge.s32.totalorder %s1256_s27, 4  }
 0x159   : >> { %1917 = vmatpush3.bf16.xpose.msra.mxu1 %v1345_v59  ;;  %v1413_v25 = vld [vmem:[%s1412_s21] sm:$0xf] }
 0x15a   : >> { %1928 = vmatprep.subr.bf16.mxu1 %v2070_v55  ;;  %v1419_v26 = vsel %vm1417_vm5, %v1413_v25, 0  ;;  %v1465_v27 = vld [vmem:[%s1464_s22] sm:$0xf] }
 0x15b   : >> { %1911 = vmatpush3.bf16.msra.mxu0 %v2007_v57  ;;  %v1470_v28 = vsel %vm1417_vm5, %v1465_v27, 0  ;;  %v1803_v49 = vld [vmem:[%s2460_s14] ss:$0 sm:$0xff] (%p1253_p5) }
 0x15c   : >> { %1922 = vmatprep.subr.bf16.mxu0 %v2070_v55 }
 0x15e   : >> { %1913 = vmatmul.mubr.msk.bf16.vlgmr.msra.gmra.mrb[0].mxu0 %vm674_vm0, %v1249_v53 }
 0x15f   : >> { %1924 = vmatprep.mubr.msk.bf16.mxu0 %vm2071_vm3, %v2070_v55  ;;  %1923 = vmatpush3.bf16.msra.mxu0 %v1419_v26 }
 0x231   : >> { %v1323_v61 = vpop.f32.mrb[0].mxu0 }
 0x232   : >> { %v1914_v62 = vpop.f32.mrb[1].mxu0  ;;  %v1324_v0 = vadd.f32 %v1792_v60, %v1323_v61 }
 0x233   : >> { %v1326_v63 = vpop.f32.mrb[2].mxu0 }
 0x234   : >> { %v1327_v1 = vadd.f32 %v1792_v60, %v1326_v63  ;;  %v1915_v2 = vpop.f32.mrb[3].mxu0 }
 0x236   : >> { %v1330_v3 = vpack.c.bf16 %v1327_v1, %v1324_v0 }
 0x238   : >> { %1919 = vmatmul.mubr.msk.bf16.vlgmr.msra.gmra.mrb[0].mxu1 %vm1340_vm4, %v1330_v3 }
 0x239   : >> { %1930 = vmatprep.mubr.msk.bf16.mxu1 %vm2071_vm3, %v2070_v55  ;;  %1929 = vmatpush3.bf16.msra.mxu1 %v1470_v28 }
 0x30b   : >> { %v1381_v4 = vpop.f32.mrb[0].mxu1 }
 0x30c   : >> { %v1382_v6 = vadd.f32 %v2208_v5, %v1381_v4  ;;  %v1920_v9 = vpop.f32.mrb[1].mxu1  ;;  %v1804_v4 = vld [vmem:[%s2461_s15] ss:$0 sm:$0xff] (%p1253_p5) }
 0x30d   : >> { %v1384_v10 = vpop.f32.mrb[2].mxu1  ;;  %v1805_v9 = vld [vmem:[%s2462_s16] ss:$0 sm:$0xff] (%p1253_p5) }
 0x30e   : >> { %v1385_v11 = vadd.f32 %v2208_v5, %v1384_v10  ;;  %v1921_v12 = vpop.f32.mrb[3].mxu1  ;;  %v1388_v13 = vsel %vm1340_vm4, %v1382_v6, -inf }
 0x30f   : >> { %1389 = vmax.xlane.f32.xlu0 %v1388_v13 }
 0x310   : >> { %v1391_v14 = vsel %vm1340_vm4, %v1385_v11, -inf }
 0x313   : >> { %1392 = vmax.xlane.f32.xlu0 %v1391_v14 }
 0x39c   : >> { %v1390_v15 = vpop.xlane.xlu0 %1389 }
 0x39d   : >> { %v1394_v16 = vsub.f32 %v1382_v6, %v1390_v15 }
 0x39f   : >> { %v1396_v17 = vmul.f32 1.442695, %v1394_v16 }
 0x3a0   : >> { %v1393_v18 = vpop.xlane.xlu0 %1392 }
 0x3a1   : >> { %2008 = vpow2.f32 %v1396_v17  ;;  %v1395_v19 = vsub.f32 %v1385_v11, %v1393_v18 }
 0x3a3   : >> { %v1398_v20 = vmul.f32 1.442695, %v1395_v19 }
 0x3a5   : >> { %2010 = vpow2.f32 %v1398_v20 }
 0x3ab   : >> { %v2009_v21 = vpop.eup %2008 }
 0x3ac   : >> { %v1400_v22 = vsel %vm1340_vm4, %v2009_v21, 0.0 }
 0x3ad   : >> { %1401 = vadd.xlane.f32.xlu1 %v1400_v22 }
 0x3af   : >> { %v2011_v23 = vpop.eup %2010 }
 0x3b0   : >> { %v1403_v24 = vsel %vm1340_vm4, %v2011_v23, 0.0 }
 0x3b1   : >> { %1404 = vadd.xlane.f32.xlu1 %v1403_v24 }
 0x43a   : >> { %v1402_v30 = vpop.xlane.xlu1 %1401 }
 0x43b   : >> { %2012 = vrcp.f32 %v1402_v30 }
 0x43e   : >> { %v1405_v31 = vpop.xlane.xlu1 %1404 }
 0x43f   : >> { %2014 = vrcp.f32 %v1405_v31 }
 0x445   : >> { %v2013_v32 = vpop.eup %2012 }
 0x446   : >> { %v1408_v35 = vmul.f32 %v2013_v32, %v2009_v21 }
 0x449   : >> { %v2015_v34 = vpop.eup %2014 }
 0x44a   : >> { %v1409_v36 = vmul.f32 %v2015_v34, %v2011_v23 }
 0x44c   : >> { %v1410_v37 = vpack.c.bf16 %v1409_v36, %v1408_v35 }
 0x44e   : >> { %1925 = vmatmul.mubr.msk.bf16.vlgmr.msra.gmra.mrb[4].mxu0 %vm1340_vm4, %v1410_v37 }
 0x521   : >> { %v1455_v38 = vpop.f32.mrb[4].mxu0 }
 0x522   : >> { %v1926_v39 = vpop.f32.mrb[5].mxu0 }
 0x523   : >> { %v1458_v40 = vpop.f32.mrb[6].mxu0 }
 0x524   : >> { %v1462_v41 = vpack.c.bf16 %v1458_v40, %v1455_v38  ;;  %v1927_v42 = vpop.f32.mrb[7].mxu0 }
 0x526   : >> { %1931 = vmatmul.mubr.msk.bf16.vlgmr.msra.gmra.mrb[4].mxu1 %vm1340_vm4, %v1462_v41 }
 0x5f8   : > { %1255 = sbr.rel (!%p1253_p5) target bundleno = 340 (0x154), region = 161 }
 0x5f9   : >> { %v1506_v43 = vpop.f32.mrb[4].mxu1 }
 0x5fa   : >> { %v1513_v44 = vadd.f32 %v2062_v33, %v1506_v43   ;;  %v1932_v45 = vpop.f32.mrb[5].mxu1 }
 0x5fb   : >> { %v1509_v46 = vpop.f32.mrb[6].mxu1 }
 0x5fc   : >> { %v1514_v47 = vadd.f32 %v2058_v54, %v1509_v46   ;;  %v1933_v48 = vpop.f32.mrb[7].mxu1  ;;  %v2473_v33 = vmov %v1513_v44  ;;  %v1522_v50 = vadd.f32 (%p1253_p5), %v1803_v49, %v1513_v44 }
 0x5fe   : >> { %v2472_v54 = vmov %v1514_v47  ;;  %v1523_v51 = vadd.f32 (%p1253_p5), %v1803_v49, %v1514_v47  ;;  %v1526_v33 = vsel (%p1253_p5), %vm674_vm0, %v1522_v50, 0.0 }
 0x5ff   : > { %1527 = vadd.xlane.f32.xlu0 %v1526_v33 }
 0x600   : > { %v1529_v55 = vsel %vm674_vm0, %v1523_v51, 0.0 }
 0x603   : > { %1530 = vadd.xlane.f32.xlu0 %v1529_v55 }
 0x68c   : > { %v1528_v56 = vpop.xlane.xlu0 %1527 }
 0x68d   : > { %v1532_v57 = vmul.f32 0.03125, %v1528_v56 }
 0x68f   : > { %v1534_v58 = vsub.f32 %v1522_v50, %v1532_v57 }
 0x690   : > { %v1531_v59 = vpop.xlane.xlu0 %1530 }
 0x691   : > { %v1533_v60 = vmul.f32 0.03125, %v1531_v59  ;;  %v1536_v61 = vmul.f32 %v1534_v58, %v1534_v58 }
 0x693   : > { %v1535_v62 = vsub.f32 %v1523_v51, %v1533_v60  ;;  %v1538_v5 = vsel %vm674_vm0, %v1536_v61, 0.0 }
 0x694   : > { %1539 = vadd.xlane.f32.xlu1 %v1538_v5 }
 0x695   : > { %v1537_v29 = vmul.f32 %v1535_v62, %v1535_v62 }
 0x697   : > { %v1541_v52 = vsel %vm674_vm0, %v1537_v29, 0.0 }
 0x698   : > { %1542 = vadd.xlane.f32.xlu1 %v1541_v52 }
 0x721   : > { %v1540_v53 = vpop.xlane.xlu1 %1539 }
 0x722   : > { %v1544_v54 = vmul.f32 0.03125, %v1540_v53 }
 0x724   : > { %v1546_v63 = vadd.f32 1e-05, %v1544_v54 }
 0x725   : > { %v1543_v0 = vpop.xlane.xlu1 %1542 }
 0x726   : > { %2016 = vrsqrt.f32 %v1546_v63  ;;  %v1545_v1 = vmul.f32 0.03125, %v1543_v0 }
 0x728   : > { %v1547_v2 = vadd.f32 1e-05, %v1545_v1 }
 0x72a   : > { %2018 = vrsqrt.f32 %v1547_v2 }
 0x730   : > { %v2017_v3 = vpop.eup %2016 }
 0x731   : > { %v1550_v6 = vmul.f32 %v2017_v3, %v1534_v58 }
 0x733   : > { %v1558_v10 = vmul.f32 %v1804_v4, %v1550_v6 }
 0x734   : > { %v2019_v11 = vpop.eup %2018 }
 0x735   : > { %v1566_v12 = vadd.f32 %v1805_v9, %v1558_v10  ;;  %v1551_v13 = vmul.f32 %v2019_v11, %v1535_v62 }
 0x737   : > { %v1568_v14 = vadd.f32 %v1566_v12, %v2216_v7  ;;  %v1559_v15 = vmul.f32 %v1804_v4, %v1551_v13 }
 0x739   : > { %1570 = vst.msk [vmem:[%s2206_s25] sm:$0xff] %vm674_vm0, %v1568_v14  ;;  %v1567_v16 = vadd.f32 %v1805_v9, %v1559_v15 }
 0x73b   : > { %v1569_v17 = vadd.f32 %v1567_v16, %v2218_v8 }
 0x73d   : > { %1571 = vst.msk [vmem:[%s2206_s25 + $0x8] sm:$0xff] %vm674_vm0, %v1569_v17 }
 0x73e PF: > { %s27_s26 = sadd.s32 1, %s2054_s26   ;;  %s2474_s24 = sld [smem:[#allocation4_spill]] }
 0x73f   : > { %p24_p6 = scmp.ge.s32.totalorder %s27_s26, 4   ;;  %s2475_s25 = sld [smem:[#allocation5_spill]] }
 0x741   :  { %26 = sbr.rel (!%p24_p6) target bundleno = 3 (0x3), region = 172 }

// kernel: decoder_layer.3
= control target key start
LH: loop header
LB: loop body
LE: loop exit
PB: predicated region body
PF: predicated region fallthrough
CT: control target
= control target key end

     0   :  { %s2921_s0 = inlined_call_operand.vmem [shape: f32[2,16,32], index: 0, kind: input, shape index: {}, may-alias: {0,2}]   ;;  %s2922_s1 = inlined_call_operand.vmem [shape: f32[16,32], index: 1, kind: input, shape index: {}, may-alias: {1,3}]   ;;  %s2923_s2 = inlined_call_operand.vmem [shape: f32[2,16,32], index: 2, kind: input, shape index: {}, may-alias: {0,2}]   ;;  %s2924_s3 = inlined_call_operand.vmem [shape: f32[16,32], index: 3, kind: input, shape index: {}, may-alias: {1,3}]   ;;  %s2925_s4 = inlined_call_operand.hbm [shape: f32[1,32], index: 4, kind: input, shape index: {}]   ;;  %s2926_s5 = inlined_call_operand.hbm [shape: f32[1,32], index: 5, kind: input, shape index: {}]   ;;  %s2927_s6 = inlined_call_operand.vmem [shape: bf16[4,32,8], index: 6, kind: input, shape index: {}]   ;;  %s2928_s7 = inlined_call_operand.vmem [shape: f32[4,1,8], index: 7, kind: input, shape index: {}]   ;;  %s2929_s8 = inlined_call_operand.vmem [shape: bf16[4,32,8], index: 8, kind: input, shape index: {}]   ;;  %s2930_s9 = inlined_call_operand.vmem [shape: f32[4,1,8], index: 9, kind: input, shape index: {}]   ;;  %s2931_s10 = inlined_call_operand.vmem [shape: bf16[4,32,8], index: 10, kind: input, shape index: {}]   ;;  %s2932_s11 = inlined_call_operand.vmem [shape: f32[4,1,8], index: 11, kind: input, shape index: {}]   ;;  %s2933_s12 = inlined_call_operand.vmem [shape: bf16[4,8,32], index: 12, kind: input, shape index: {}]   ;;  %s2934_s13 = inlined_call_operand.hbm [shape: f32[1,32], index: 13, kind: input, shape index: {}]   ;;  %s2935_s14 = inlined_call_operand.hbm [shape: f32[1,32], index: 14, kind: input, shape index: {}]   ;;  %s2936_s15 = inlined_call_operand.hbm [shape: f32[1,32], index: 15, kind: input, shape index: {}]   ;;  %s2937_s16 = inlined_call_operand.vmem [shape: f32[2,16,32], index: 16, kind: output, shape index: {}]  }
   0x1   :  { %2944 = sst [smem:[#allocation16_spill]] %s2921_s0 }
   0x2   :  { %2945 = sst [smem:[#allocation17_spill]] %s2926_s5 }
   0x3   :  { %2946 = sst [smem:[#allocation18_spill]] %s2927_s6 }
   0x4   :  { %2947 = sst [smem:[#allocation19_spill]] %s2928_s7 }
   0x5   :  { %2948 = sst [smem:[#allocation20_spill]] %s2930_s9 }
   0x6   :  { %2949 = sst [smem:[#allocation21_spill]] %s2933_s12 }
   0x7   :  { %21 = vsyncpa [#allocation5], 0 }
   0x8   :  { %22 = vsyncpa [#allocation7], 0 }
   0x9   :  { %23 = vsyncpa [#allocation10], 0  ;;  %s2495_s21 = smov 0   ;;  %s2497_s22 = smov 0  }
   0xa   :  { %s2499_s23 = smov 0  }
   0xb LB: > { %2950 = sst [smem:[#allocation15_spill]] %s2387_s23  ;;  %s2401_s24 = smov [#allocation6]   ;;  %s2387_s23 = sphi %s2499_s23, %s29_s23   ;;  %s2383_s22 = sphi %s2497_s22, %s2970_s22   ;;  %s2379_s21 = sphi %s2495_s21, %s2969_s21  }
   0xc   : > { %s463_s25 = sshll.u32 %s2401_s24, 4  ;;  %s1828_s26 = sadd.s32 4294967295, %s2387_s23   ;;  %s464_s25 = int_to_ptr.vmem [resolvable:$true] %s463_s25 }
   0xd   : > { %p1830_p0 = scmp.ge.s32.totalorder %s2387_s23, 1  ;;  %p427_p1 = scmp.lt.s32.totalorder %s2387_s23, 3 }
   0xe   : > { %p2513_p2 = scmp.eq.s32.totalorder %s1828_s26, 0  ;;  %s2402_s29 = smov [#allocation9]  }
   0xf   : > { %p2517_p3 = pnand %p1830_p0, %p427_p1  ;;  %s506_s30 = sshll.u32 %s2402_s29, 4  ;;  %s2523_s30 = int_to_ptr.vmem [resolvable:$true] %s506_s30 }
  0x10   : > { %s2951_s27 = scalar_select %p2513_p2, 1, 0 }
  0x11   : > { %s2952_s28 = scalar_select %p2517_p3, 1, 0 }
  0x12   : > { %p2080_p4 = pneg %p2517_p3  ;;  %s2939_s17 = sadd.s32 1, %s2383_s22 }
  0x13   : > { %p2534_p6 = scmp.ge.s32.totalorder %s2939_s17, 2  ;;  %s2955_s5 = sld [smem:[#allocation17_spill]] }
  0x14   : > { %p2527_p5 = pnand %p2513_p2, %p2080_p4 }
  0x15   : > { %s2954_s18 = scalar_select %p2534_p6, 1, 0 }
  0x16   : > { %p2546_p8 = pneg %p2527_p5 }
  0x19   : > { %s2201_s24 = scalar_lea.hbm %s2955_s5, 16 }
  0x1a   : > { %p2202_p7 = scmp.ne.s32.totalorder %s2955_s5, %s2201_s24  ;;  %p2208_p11 = scmp.lt.u32.totalorder %s2201_s24, %s2955_s5 }
  0x1c   : > { %p2204_p9 = pnand %p2546_p8, %p2202_p7 }
  0x1e   : > { %p2205_p10 = pneg %p2204_p9 }
  0x20   : > { %p2210_p12 = pnand %p2208_p11, %p2205_p10 }
  0x22   : > { %2213 = shalt.err (!%p2210_p12)
}
  0x23   : > { %s2214_s19 = scalar_lea.vmem %s464_s25, 16  ;;  %s2221_s20 = scalar_lea.vmem %s464_s25, 32 }
  0x24   : > { %p2215_p13 = scmp.ne.s32.totalorder %s464_s25, %s2214_s19  ;;  %p2222_p4 = scmp.lt.s32.totalorder %s464_s25, %s464_s25 }
  0x25   : > { %p2223_p2 = scmp.lt.s32.totalorder %s2221_s20, %s2214_s19 }
  0x26   : > { %p2217_p0 = pnand %p2215_p13, %p2546_p8 }
  0x27   : > { %p2224_p3 = por %p2223_p2, %p2222_p4 }
  0x28   : > { %p2218_p1 = pneg %p2217_p0 }
  0x2a   : > { %p2225_p6 = pnand %p2224_p3, %p2218_p1 }
  0x2c   : > { %2228 = shalt.err (!%p2225_p6)
}
  0x2d   : > { %2086 = dma.hbm_to_vmem [thread:$0]  (!%p2527_p5), %s2955_s5, 16, %s464_s25, [#allocation7]  }
  0x2e   : > { %s2229_s24 = scalar_lea.hbm %s2935_s14, 16 }
  0x2f   : > { %p2230_p7 = scmp.ne.s32.totalorder %s2935_s14, %s2229_s24  ;;  %p2236_p3 = scmp.lt.u32.totalorder %s2229_s24, %s2935_s14 }
  0x31   : > { %p2232_p9 = pnand %p2230_p7, %p2546_p8 }
  0x33   : > { %p2233_p2 = pneg %p2232_p9 }
  0x35   : > { %p2238_p6 = pnand %p2236_p3, %p2233_p2 }
  0x37   : > { %2241 = shalt.err (!%p2238_p6)
}
  0x38   : > { %s2242_s25 = scalar_lea.vmem %s2523_s30, 16  ;;  %s2249_s6 = scalar_lea.vmem %s2523_s30, 32 }
  0x39   : > { %p2243_p10 = scmp.ne.s32.totalorder %s2523_s30, %s2242_s25  ;;  %p2250_p13 = scmp.lt.s32.totalorder %s2523_s30, %s2523_s30 }
  0x3a   : > { %p2251_p0 = scmp.lt.s32.totalorder %s2249_s6, %s2242_s25 }
  0x3b   : > { %p2245_p11 = pnand %p2243_p10, %p2546_p8 }
  0x3c   : > { %p2252_p1 = por %p2251_p0, %p2250_p13 }
  0x3d   : > { %p2246_p12 = pneg %p2245_p11 }
  0x3f   : > { %p2253_p4 = pnand %p2252_p1, %p2246_p12 }
  0x41   : > { %2256 = shalt.err (!%p2253_p4)
}
  0x42   : > { %2092 = dma.hbm_to_vmem [thread:$0]  (!%p2527_p5), %s2935_s14, 16, %s2523_s30, [#allocation10]  }
  0x43   : > { %s2957_s29 = sadd.s32 1, %s2383_s22  ;;  %p2958_p7 = scmp.ne.s32.totalorder %s2954_s18, 0 }
  0x44   : > { %s2403_s12 = smov [#allocation4]   ;;  %s2404_s24 = smov [#allocation8]  }
  0x45   : > { %s2972_s29 = smov (%p2958_p7, %s2957_s29), 0  ;;  %s452_s17 = sshll.u32 %s2403_s12, 4  ;;  %s453_s17 = int_to_ptr.vmem [resolvable:$true] %s452_s17 }
  0x46   : > { %s495_s19 = sshll.u32 %s2404_s24, 4  ;;  %s2257_s6 = scalar_lea.hbm %s2925_s4, 16  ;;  %s496_s19 = int_to_ptr.vmem [resolvable:$true] %s495_s19 }
  0x47   : > { %p2258_p9 = scmp.ne.s32.totalorder %s2925_s4, %s2257_s6  ;;  %p2264_p6 = scmp.lt.u32.totalorder %s2257_s6, %s2925_s4 }
  0x49   : > { %p2260_p2 = pnand %p2258_p9, %p2546_p8 }
  0x4b   : > { %p2261_p3 = pneg %p2260_p2 }
  0x4d   : > { %p2266_p10 = pnand %p2264_p6, %p2261_p3 }
  0x4f   : > { %2269 = shalt.err (!%p2266_p10)
}
  0x50   : > { %s2270_s7 = scalar_lea.vmem %s453_s17, 16  ;;  %s2277_s26 = scalar_lea.vmem %s453_s17, 32 }
  0x51   : > { %p2271_p11 = scmp.ne.s32.totalorder %s453_s17, %s2270_s7  ;;  %p2278_p0 = scmp.lt.s32.totalorder %s453_s17, %s453_s17 }
  0x52   : > { %p2279_p1 = scmp.lt.s32.totalorder %s2277_s26, %s2270_s7 }
  0x53   : > { %p2273_p12 = pnand %p2271_p11, %p2546_p8 }
  0x54   : > { %p2280_p4 = por %p2279_p1, %p2278_p0 }
  0x55   : > { %p2274_p13 = pneg %p2273_p12 }
  0x57   : > { %p2281_p7 = pnand %p2280_p4, %p2274_p13 }
  0x59   : > { %2284 = shalt.err (!%p2281_p7)
}
  0x5a   : > { %2083 = dma.hbm_to_vmem [thread:$0]  (!%p2527_p5), %s2925_s4, 16, %s453_s17, [#allocation5]  }
  0x5b   : > { %s2285_s20 = scalar_lea.hbm %s2934_s13, 16 }
  0x5c   : > { %p2286_p9 = scmp.ne.s32.totalorder %s2934_s13, %s2285_s20  ;;  %p2292_p6 = scmp.lt.u32.totalorder %s2285_s20, %s2934_s13 }
  0x5e   : > { %p2288_p2 = pnand %p2286_p9, %p2546_p8 }
  0x60   : > { %p2289_p3 = pneg %p2288_p2 }
  0x62   : > { %p2294_p10 = pnand %p2292_p6, %p2289_p3 }
  0x64   : > { %2297 = shalt.err (!%p2294_p10)
}
  0x65   : > { %s2298_s7 = scalar_lea.vmem %s496_s19, 16  ;;  %s2305_s17 = scalar_lea.vmem %s496_s19, 32 }
  0x66   : > { %p2299_p11 = scmp.ne.s32.totalorder %s496_s19, %s2298_s7  ;;  %p2306_p0 = scmp.lt.s32.totalorder %s496_s19, %s496_s19 }
  0x67   : > { %p2307_p1 = scmp.lt.s32.totalorder %s2305_s17, %s2298_s7 }
  0x68   : > { %p2301_p12 = pnand %p2299_p11, %p2546_p8 }
  0x69   : > { %p2308_p4 = por %p2307_p1, %p2306_p0 }
  0x6a   : > { %p2302_p13 = pneg %p2301_p12 }
  0x6c   : > { %p2309_p7 = pnand %p2308_p4, %p2302_p13 }
  0x6e   : > { %2312 = shalt.err (!%p2309_p7)
}
  0x6f   : > { %2089 = dma.hbm_to_vmem [thread:$0]  (!%p2527_p5), %s2934_s13, 16, %s496_s19, [#allocation7]  }
  0x70   : > { %s2405_s9 = smov [#allocation11]   ;;  %s2313_s25 = scalar_lea.hbm %s2936_s15, 16 }
  0x71   : > { %s517_s12 = sshll.u32 %s2405_s9, 4  ;;  %p2314_p9 = scmp.ne.s32.totalorder %s2936_s15, %s2313_s25  ;;  %s518_s12 = int_to_ptr.vmem [resolvable:$true] %s517_s12 }
  0x72   : > { %p2320_p6 = scmp.lt.u32.totalorder %s2313_s25, %s2936_s15 }
  0x73   : > { %p2316_p2 = pnand %p2314_p9, %p2546_p8 }
  0x75   : > { %p2317_p3 = pneg %p2316_p2 }
  0x77   : > { %p2322_p10 = pnand %p2320_p6, %p2317_p3 }
  0x79   : > { %2325 = shalt.err (!%p2322_p10)
}
  0x7a   : > { %s2326_s19 = scalar_lea.vmem %s518_s12, 16  ;;  %s2333_s17 = scalar_lea.vmem %s518_s12, 32 }
  0x7b   : > { %p2327_p11 = scmp.ne.s32.totalorder %s518_s12, %s2326_s19  ;;  %p2334_p0 = scmp.lt.s32.totalorder %s518_s12, %s518_s12 }
  0x7c   : > { %p2335_p1 = scmp.lt.s32.totalorder %s2333_s17, %s2326_s19 }
  0x7d   : > { %p2329_p12 = pnand %p2327_p11, %p2546_p8 }
  0x7e   : > { %p2336_p4 = por %p2335_p1, %p2334_p0 }
  0x7f   : > { %p2330_p13 = pneg %p2329_p12 }
  0x81   : > { %p2337_p7 = pnand %p2336_p4, %p2330_p13 }
  0x83   : > { %2340 = shalt.err (!%p2337_p7)
}
  0x84   : > { %2095 = dma.hbm_to_vmem [thread:$0]  (!%p2527_p5), %s2936_s15, 16, %s518_s12, [#allocation10]  }
  0x85   : > { %p2959_p9 = scmp.ne.s32.totalorder %s2952_s28, 0 }
  0x86   : > { %p2960_p2 = scmp.ne.s32.totalorder (!%p2959_p9), %s2951_s27, 0 }
  0x87   : > { %551 = sbr.rel (%p2959_p9) target bundleno = 2234 (0x8ba), region = 84 }
  0x8e   : > { %2366 = dma.done.wait (%p2960_p2), [#allocation5], 16  }
  0x8f   : > { %2368 = vsyncadd (%p2960_p2), [#allocation5], 4294967280 }
  0x90   : > { %2370 = dma.done.wait (%p2960_p2), [#allocation7], 32  }
  0x91   : > { %2372 = vsyncadd (%p2960_p2), [#allocation7], 4294967264 }
  0x92   : > { %2374 = dma.done.wait (%p2960_p2), [#allocation10], 32  }
  0x93   : > { %2376 = vsyncadd (%p2960_p2), [#allocation10], 4294967264  ;;  %p636_p5 = scmp.lt.s32.totalorder %s2379_s21, 1  ;;  %vm675_vm0 = vcmask 261120   ;;  %s2961_s30 = sld [smem:[#allocation16_spill]]  ;;  %v2163_v23 = vld [vmem:[%s2931_s10] sm:$0xff]  }
  0x94   : > { %v2406_v24 = vmov 0.0   ;;  %v2164_v25 = vld [vmem:[%s2929_s8] sm:$0xff]   ;;  %v2165_v26 = vld [vmem:[%s2931_s10 + $0x8] sm:$0xff]   ;;  %vm2407_vm1 = vmmov 0   ;;  %v2167_v51 = vld [vmem:[%s2931_s10 + $0x10] sm:$0xff]   ;;  %vm793_vm2 = vcmask 64512  }
  0x95   : > { %s2974_s21 = smov (!%p636_p5, %s2379_s21), 1  ;;  %1978 = vmatprep.subr.bf16.mxu1 %v2406_v24  ;;  %1970 = vmatprep.subr.bf16.mxu0 %v2406_v24  ;;  %v2166_v27 = vld [vmem:[%s2929_s8 + $0x8] sm:$0xff]   ;;  %v2719_v40 = vld [vmem:[#allocation4] ss:$0 sm:$0xff]  ;;  %v2722_v44 = vld [vmem:[#allocation6] ss:$0 sm:$0xff] }
  0x96   : > { %s1933_s23 = sshll.u32 %s2974_s21, 4  ;;  %1979 = vmatpush3.bf16.msra.mxu1 %v2163_v23  ;;  %1982 = vmatprep.mubr.msk.bf16.mxu1 %vm2407_vm1, %v2406_v24  ;;  %v719_v48 = vld [vmem:[%s2924_s3] sm:$0xff]  ;;  %v720_v49 = vld [vmem:[%s2924_s3 + $0x8] sm:$0xff]  ;;  %v2168_v55 = vld [vmem:[%s2929_s8 + $0x10] sm:$0xff]   ;;  %s2853_s5 = smov 0  }
  0x97   : > { %s655_s9 = scalar_lea.vmem %s2923_s2, %s1933_s23  ;;  %s2668_s20 = scalar_lea.vmem %s2937_s16, %s1933_s23  ;;  %1971 = vmatpush3.bf16.msra.mxu0 %v2164_v25  ;;  %1980 = vmatprep.subr.bf16.mxu1 %v2406_v24  ;;  %v2169_v57 = vld [vmem:[%s2931_s10 + $0x18] sm:$0xff]   ;;  %v2171_v59 = vld [vmem:[%s2931_s10 + $0x20] sm:$0xff]   ;;  %v2173_v61 = vld [vmem:[%s2931_s10 + $0x28] sm:$0xff]  }
  0x98   : > { %v671_v0 = vld [vmem:[%s655_s9] sm:$0xff]  ;;  %v672_v1 = vld [vmem:[%s655_s9 + $0x8] sm:$0xff]  ;;  %1972 = vmatprep.subr.bf16.mxu0 %v2406_v24  ;;  %1974 = vmatprep.mubr.msk.bf16.mxu0 %vm2407_vm1, %v2406_v24  ;;  %v2170_v58 = vld [vmem:[%s2929_s8 + $0x18] sm:$0xff]   ;;  %s2962_s9 = sld [smem:[#allocation20_spill]] }
  0x99   : > { %s643_s27 = scalar_lea.vmem %s2961_s30, %s1933_s23  ;;  %v676_v3 = vsel %vm675_vm0, %v671_v0, 0.0  ;;  %v679_v4 = vsel %vm675_vm0, %v672_v1, 0.0  ;;  %v2172_v60 = vld [vmem:[%s2929_s8 + $0x20] sm:$0xff]   ;;  %v2174_v62 = vld [vmem:[%s2929_s8 + $0x28] sm:$0xff]   ;;  %v2175_v63 = vld [vmem:[%s2931_s10 + $0x30] sm:$0xff]  }
  0x9a   : > { %v2673_v2 = vld [vmem:[%s643_s27] sm:$0xff]  ;;  %677 = vadd.xlane.f32.xlu0 %v676_v3  ;;  %v2680_v17 = vld [vmem:[%s643_s27 + $0x8] sm:$0xff]  ;;  %1981 = vmatpush3.bf16.msra.mxu1 %v2165_v26  ;;  %v2178_v3 = vld [vmem:[%s2929_s8 + $0x38] sm:$0xff]  }
  0x9b   : > { %v1283_v5 = vsel %vm675_vm0, %v2673_v2, 0.0  ;;  %v1286_v20 = vsel %vm675_vm0, %v2680_v17, 0.0  ;;  %1973 = vmatpush3.bf16.msra.mxu0 %v2166_v27  ;;  %1994 = vmatprep.subr.bf16.mxu1 %v2406_v24 }
  0x9c   : > { %1986 = vmatprep.subr.bf16.mxu0 %v2406_v24 }
  0x9e   : > { %680 = vadd.xlane.f32.xlu0 %v679_v4  ;;  %v1852_v27 = vld [vmem:[%s2962_s9] ss:$0 sm:$0xff] }
  0xa2   : > { %1284 = vadd.xlane.f32.xlu0 %v1283_v5 }
 0x127   : > { %v678_v6 = vpop.xlane.xlu0 %677 }
 0x128   : > { %v683_v7 = vmul.f32 0.03125, %v678_v6 }
 0x12a   : > { %v685_v8 = vsub.f32 %v671_v0, %v683_v7  ;;  %v2176_v0 = vld [vmem:[%s2929_s8 + $0x30] sm:$0xff]  }
 0x12b   : > { %v681_v9 = vpop.xlane.xlu0 %680 }
 0x12c   : > { %v684_v10 = vmul.f32 0.03125, %v681_v9  ;;  %v687_v11 = vmul.f32 %v685_v8, %v685_v8 }
 0x12e   : > { %v686_v12 = vsub.f32 %v672_v1, %v684_v10  ;;  %v689_v13 = vsel %vm675_vm0, %v687_v11, 0.0  ;;  %v2177_v1 = vld [vmem:[%s2931_s10 + $0x38] sm:$0xff]  }
 0x12f   : > { %690 = vadd.xlane.f32.xlu1 %v689_v13  ;;  %v1285_v14 = vpop.xlane.xlu0 %1284 }
 0x130   : > { %v688_v15 = vmul.f32 %v686_v12, %v686_v12  ;;  %v1290_v16 = vmul.f32 0.03125, %v1285_v14 }
 0x132   : > { %v692_v18 = vsel %vm675_vm0, %v688_v15, 0.0  ;;  %v2684_v19 = vsub.f32 %v2673_v2, %v1290_v16 }
 0x133   : > { %693 = vadd.xlane.f32.xlu1 %v692_v18  ;;  %v1326_v18 = vld [vmem:[%s2922_s1] sm:$0xff] }
 0x134   : > { %v1294_v21 = vmul.f32 %v2684_v19, %v2684_v19 }
 0x136   : > { %v1296_v22 = vsel %vm675_vm0, %v1294_v21, 0.0 }
 0x137   : > { %1287 = vadd.xlane.f32.xlu1 %v1286_v20  ;;  %1297 = vadd.xlane.f32.xlu0 %v1296_v22  ;;  %v1327_v20 = vld [vmem:[%s2922_s1 + $0x8] sm:$0xff] }
 0x1bc   : > { %v691_v28 = vpop.xlane.xlu1 %690 }
 0x1bd   : > { %v695_v29 = vmul.f32 0.03125, %v691_v28 }
 0x1bf   : > { %v697_v30 = vadd.f32 1e-05, %v695_v29 }
 0x1c0   : > { %v694_v31 = vpop.xlane.xlu1 %693 }
 0x1c1   : > { %2179 = vrsqrt.f32 %v697_v30  ;;  %v696_v32 = vmul.f32 0.03125, %v694_v31 }
 0x1c3   : > { %v698_v33 = vadd.f32 1e-05, %v696_v32 }
 0x1c4   : > { %v1288_v34 = vpop.xlane.xlu1 %1287  ;;  %v1298_v4 = vpop.xlane.xlu0 %1297 }
 0x1c5   : > { %2181 = vrsqrt.f32 %v698_v33  ;;  %v1291_v35 = vmul.f32 0.03125, %v1288_v34  ;;  %v1302_v5 = vmul.f32 0.03125, %v1298_v4 }
 0x1c7   : > { %v2714_v36 = vsub.f32 %v2680_v17, %v1291_v35  ;;  %v1304_v6 = vadd.f32 1e-05, %v1302_v5 }
 0x1c9   : > { %v1295_v37 = vmul.f32 %v2714_v36, %v2714_v36  ;;  %2183 = vrsqrt.f32 %v1304_v6 }
 0x1cb   : > { %v2180_v38 = vpop.eup %2179  ;;  %v1299_v39 = vsel %vm675_vm0, %v1295_v37, 0.0 }
 0x1cc   : > { %v701_v41 = vmul.f32 %v2180_v38, %v685_v8  ;;  %1300 = vadd.xlane.f32.xlu1 %v1299_v39 }
 0x1ce   : > { %v709_v42 = vmul.f32 %v2719_v40, %v701_v41 }
 0x1cf   : > { %v2182_v43 = vpop.eup %2181 }
 0x1d0   : > { %v702_v45 = vmul.f32 %v2182_v43, %v686_v12  ;;  %v717_v47 = vadd.f32 %v2722_v44, %v709_v42  ;;  %v1865_v43 = vld [vmem:[%s2962_s9 + $0x1] ss:$0 sm:$0xff] }
 0x1d2   : > { %v710_v46 = vmul.f32 %v2719_v40, %v702_v45  ;;  %v721_v53 = vadd.f32 %v719_v48, %v717_v47 }
 0x1d3   : > { %v2184_v10 = vpop.eup %2183 }
 0x1d4   : > { %v718_v50 = vadd.f32 %v2722_v44, %v710_v46  ;;  %v1308_v11 = vmul.f32 %v2184_v10, %v2684_v19 }
 0x1d6   : > { %v724_v52 = vpack.c.bf16 %v718_v50, %v717_v47  ;;  %v722_v54 = vadd.f32 %v720_v49, %v718_v50  ;;  %v1316_v12 = vmul.f32 %v2719_v40, %v1308_v11 }
 0x1d8   : > { %1983 = vmatmul.mubr.msk.bf16.vlgmr.msra.gmra.mrb[0].mxu1 %vm675_vm0, %v724_v52  ;;  %v723_v56 = vpack.c.bf16 %v722_v54, %v721_v53  ;;  %v1324_v15 = vadd.f32 %v2722_v44, %v1316_v12  ;;  %v1901_v12 = vld [vmem:[%s2962_s9 + $0x3] ss:$0 sm:$0xff] }
 0x1d9   : > { %1995 = vmatpush3.bf16.msra.mxu1 %v2167_v51  ;;  %1998 = vmatprep.mubr.msk.bf16.mxu1 %vm2407_vm1, %v2406_v24 }
 0x1da   : > { %1975 = vmatmul.mubr.msk.bf16.vlgmr.msra.gmra.mrb[0].mxu0 %vm675_vm0, %v723_v56  ;;  %1996 = vmatprep.subr.bf16.mxu1 %v2406_v24  ;;  %v2811_v19 = vadd.f32 %v1326_v18, %v1324_v15 }
 0x1db   : > { %1987 = vmatpush3.bf16.msra.mxu0 %v2168_v55  ;;  %1990 = vmatprep.mubr.msk.bf16.mxu0 %vm2407_vm1, %v2406_v24 }
 0x1dc   : > { %1988 = vmatprep.subr.bf16.mxu0 %v2406_v24 }
 0x1dd   : > { %1997 = vmatpush3.bf16.msra.mxu1 %v2169_v57 }
 0x1de   : > { %2010 = vmatprep.subr.bf16.mxu1 %v2406_v24 }
 0x1df   : > { %1989 = vmatpush3.bf16.msra.mxu0 %v2170_v58 }
 0x1e0   : > { %1999 = vmatmul.mubr.msk.bf16.vlgmr.msra.gmra.mrb[4].mxu1 %vm675_vm0, %v724_v52  ;;  %2002 = vmatprep.subr.bf16.mxu0 %v2406_v24 }
 0x1e1   : > { %2011 = vmatpush3.bf16.msra.mxu1 %v2171_v59  ;;  %2014 = vmatprep.mubr.msk.bf16.mxu1 %vm2407_vm1, %v2406_v24  ;;  %v1883_v59 = vld [vmem:[%s2962_s9 + $0x2] ss:$0 sm:$0xff] }
 0x1e2   : > { %1991 = vmatmul.mubr.msk.bf16.vlgmr.msra.gmra.mrb[4].mxu0 %vm675_vm0, %v723_v56  ;;  %2012 = vmatprep.subr.bf16.mxu1 %v2406_v24 }
 0x1e3   : > { %2003 = vmatpush3.bf16.msra.mxu0 %v2172_v60  ;;  %2006 = vmatprep.mubr.msk.bf16.mxu0 %vm2407_vm1, %v2406_v24 }
 0x1e4   : > { %2004 = vmatprep.subr.bf16.mxu0 %v2406_v24 }
 0x1e5   : > { %2013 = vmatpush3.bf16.msra.mxu1 %v2173_v61 }
 0x1e6   : > { %2026 = vmatprep.subr.bf16.mxu1 %v2406_v24 }
 0x1e7   : > { %2005 = vmatpush3.bf16.msra.mxu0 %v2174_v62 }
 0x1e8   : > { %2015 = vmatmul.mubr.msk.bf16.vlgmr.msra.gmra.mrb[8].mxu1 %vm675_vm0, %v724_v52  ;;  %2018 = vmatprep.subr.bf16.mxu0 %v2406_v24 }
 0x1e9   : > { %2027 = vmatpush3.bf16.msra.mxu1 %v2175_v63  ;;  %2030 = vmatprep.mubr.msk.bf16.mxu1 %vm2407_vm1, %v2406_v24 }
 0x1ea   : > { %2007 = vmatmul.mubr.msk.bf16.vlgmr.msra.gmra.mrb[8].mxu0 %vm675_vm0, %v723_v56  ;;  %2028 = vmatprep.subr.bf16.mxu1 %v2406_v24 }
 0x1eb   : > { %2019 = vmatpush3.bf16.msra.mxu0 %v2176_v0  ;;  %2022 = vmatprep.mubr.msk.bf16.mxu0 %vm2407_vm1, %v2406_v24 }
 0x1ec   : > { %2020 = vmatprep.subr.bf16.mxu0 %v2406_v24  ;;  %v1856_v24 = vld [vmem:[%s2932_s11] ss:$0 sm:$0xff] }
 0x1ed   : > { %2029 = vmatpush3.bf16.msra.mxu1 %v2177_v1 }
 0x1ef   : > { %2021 = vmatpush3.bf16.msra.mxu0 %v2178_v3 }
 0x1f0   : > { %2031 = vmatmul.mubr.msk.bf16.vlgmr.msra.gmra.mrb[12].mxu1 %vm675_vm0, %v724_v52 }
 0x1f2   : > { %2023 = vmatmul.mubr.msk.bf16.vlgmr.msra.gmra.mrb[12].mxu0 %vm675_vm0, %v723_v56  ;;  %v1892_v56 = vld [vmem:[%s2932_s11 + $0x2] ss:$0 sm:$0xff] }
 0x259   : > { %v1301_v7 = vpop.xlane.xlu1 %1300 }
 0x25a   : > { %v1303_v8 = vmul.f32 0.03125, %v1301_v7 }
 0x25c   : > { %v1305_v9 = vadd.f32 1e-05, %v1303_v8 }
 0x25e   : > { %2185 = vrsqrt.f32 %v1305_v9  ;;  %v1910_v9 = vld [vmem:[%s2932_s11 + $0x3] ss:$0 sm:$0xff] }
 0x268   : > { %v2186_v13 = vpop.eup %2185 }
 0x269   : > { %v1309_v14 = vmul.f32 %v2186_v13, %v2714_v36 }
 0x26b   : > { %v1317_v16 = vmul.f32 %v2719_v40, %v1309_v14  ;;  %v1874_v40 = vld [vmem:[%s2932_s11 + $0x1] ss:$0 sm:$0xff] }
 0x26d   : > { %v1325_v21 = vadd.f32 %v2722_v44, %v1317_v16 }
 0x26f   : > { %v2813_v22 = vadd.f32 %v1327_v20, %v1325_v21 }
 0x271   : > { %v1330_v23 = vpack.c.bf16 %v2813_v22, %v2811_v19 }
 0x2ab   : > { %v855_v25 = vpop.f32.mrb[0].mxu1 }
 0x2ac   : > { %v1984_v26 = vpop.f32.mrb[1].mxu1  ;;  %v856_v30 = vadd.f32 %v1856_v24, %v855_v25 }
 0x2ad   : > { %v785_v28 = vpop.f32.mrb[0].mxu0  ;;  %v858_v29 = vpop.f32.mrb[2].mxu1 }
 0x2ae   : > { %v859_v31 = vadd.f32 %v1856_v24, %v858_v29  ;;  %v1976_v32 = vpop.f32.mrb[1].mxu0  ;;  %v1985_v33 = vpop.f32.mrb[3].mxu1  ;;  %v786_v35 = vadd.f32 %v1852_v27, %v785_v28  ;;  %v2849_v29 = vmov 0.0  }
 0x2af   : > { %v788_v34 = vpop.f32.mrb[2].mxu0 }
 0x2b0   : > { %v862_v36 = vpack.c.bf16 %v859_v31, %v856_v30  ;;  %v789_v37 = vadd.f32 %v1852_v27, %v788_v34  ;;  %v1977_v38 = vpop.f32.mrb[3].mxu0  ;;  %v2851_v30 = vmov 0.0  }
 0x2b2   : > { %863 = vst.msk [vmem:[#allocation3] sm:$0xff] %vm793_vm2, %v862_v36  ;;  %v792_v39 = vpack.c.bf16 %v789_v37, %v786_v35 }
 0x2b3   : > { %v992_v41 = vpop.f32.mrb[4].mxu1 }
 0x2b4   : > { %794 = vst.msk [vmem:[#allocation2] sm:$0xff] %vm793_vm2, %v792_v39  ;;  %v2000_v42 = vpop.f32.mrb[5].mxu1  ;;  %v993_v46 = vadd.f32 %v1874_v40, %v992_v41 }
 0x2b5   : > { %v923_v44 = vpop.f32.mrb[4].mxu0  ;;  %v995_v45 = vpop.f32.mrb[6].mxu1 }
 0x2b6   : > { %v996_v47 = vadd.f32 %v1874_v40, %v995_v45  ;;  %v1992_v48 = vpop.f32.mrb[5].mxu0  ;;  %v2001_v49 = vpop.f32.mrb[7].mxu1  ;;  %v924_v51 = vadd.f32 %v1865_v43, %v923_v44 }
 0x2b7   : > { %v926_v50 = vpop.f32.mrb[6].mxu0 }
 0x2b8   : > { %v999_v52 = vpack.c.bf16 %v996_v47, %v993_v46  ;;  %v927_v53 = vadd.f32 %v1865_v43, %v926_v50  ;;  %v1993_v54 = vpop.f32.mrb[7].mxu0 }
 0x2ba   : > { %1001 = vst.msk [vmem:[#allocation3 + $0x8] sm:$0xff] %vm793_vm2, %v999_v52  ;;  %v930_v55 = vpack.c.bf16 %v927_v53, %v924_v51 }
 0x2bb   : > { %v1130_v57 = vpop.f32.mrb[8].mxu1 }
 0x2bc   : > { %932 = vst.msk [vmem:[#allocation2 + $0x8] sm:$0xff] %vm793_vm2, %v930_v55  ;;  %v2016_v58 = vpop.f32.mrb[9].mxu1  ;;  %v1131_v62 = vadd.f32 %v1892_v56, %v1130_v57 }
 0x2bd   : > { %v1061_v60 = vpop.f32.mrb[8].mxu0  ;;  %v1133_v61 = vpop.f32.mrb[10].mxu1 }
 0x2be   : > { %v1134_v63 = vadd.f32 %v1892_v56, %v1133_v61  ;;  %v2008_v0 = vpop.f32.mrb[9].mxu0  ;;  %v2017_v1 = vpop.f32.mrb[11].mxu1  ;;  %v1062_v4 = vadd.f32 %v1883_v59, %v1061_v60 }
 0x2bf   : > { %v1064_v3 = vpop.f32.mrb[10].mxu0 }
 0x2c0   : > { %v1137_v5 = vpack.c.bf16 %v1134_v63, %v1131_v62  ;;  %v1065_v6 = vadd.f32 %v1883_v59, %v1064_v3  ;;  %v2009_v7 = vpop.f32.mrb[11].mxu0 }
 0x2c2   : > { %1139 = vst.msk [vmem:[#allocation3 + $0x10] sm:$0xff] %vm793_vm2, %v1137_v5  ;;  %v1068_v8 = vpack.c.bf16 %v1065_v6, %v1062_v4 }
 0x2c3   : > { %v1268_v10 = vpop.f32.mrb[12].mxu1 }
 0x2c4   : > { %1070 = vst.msk [vmem:[#allocation2 + $0x10] sm:$0xff] %vm793_vm2, %v1068_v8  ;;  %v2032_v11 = vpop.f32.mrb[13].mxu1  ;;  %v1269_v15 = vadd.f32 %v1910_v9, %v1268_v10 }
 0x2c5   : > { %v1199_v13 = vpop.f32.mrb[12].mxu0  ;;  %v1271_v14 = vpop.f32.mrb[14].mxu1 }
 0x2c6   : > { %v1272_v16 = vadd.f32 %v1910_v9, %v1271_v14  ;;  %v2024_v18 = vpop.f32.mrb[13].mxu0  ;;  %v2033_v20 = vpop.f32.mrb[15].mxu1  ;;  %v1200_v24 = vadd.f32 %v1901_v12, %v1199_v13 }
 0x2c7   : > { %v1202_v21 = vpop.f32.mrb[14].mxu0 }
 0x2c8   : > { %v1275_v25 = vpack.c.bf16 %v1272_v16, %v1269_v15  ;;  %v1203_v26 = vadd.f32 %v1901_v12, %v1202_v21  ;;  %v2025_v27 = vpop.f32.mrb[15].mxu0 }
 0x2ca   : > { %1277 = vst.msk [vmem:[#allocation3 + $0x18] sm:$0xff] %vm793_vm2, %v1275_v25  ;;  %v1206_v28 = vpack.c.bf16 %v1203_v26, %v1200_v24 }
 0x2cc   : > { %1208 = vst.msk [vmem:[#allocation2 + $0x18] sm:$0xff] %vm793_vm2, %v1206_v28 }
 0x2cd LB: >> { %v2408_v31 = vmov 0.0   ;;  %vm2409_vm3 = vmmov 0   ;;  %s1936_s23 = sshll.u32 %s2399_s5, 4  ;;  %s2963_s12 = sld [smem:[#allocation18_spill]]  ;;  %vm1462_vm4 = vcmask 130048   ;;  %vm1540_vm5 = vcmask 1043456   ;;  %s2399_s5 = sphi %s2853_s5, %s1336_s5   ;;  %v2395_v30 = vphi %v2851_v30, %v2967_v30   ;;  %v2391_v29 = vphi %v2849_v29, %v2966_v29  }
 0x2ce   : >> { %2034 = vmatprep.subr.bf16.mxu0 %v2408_v31  ;;  %2038 = vmatprep.mubr.msk.bf16.mxu0 %vm2409_vm3, %v2408_v31  ;;  %s1922_s25 = sshll.u32 %s2399_s5, 3  ;;  %s2964_s18 = sld [smem:[#allocation19_spill]] }
 0x2cf   : >> { %2042 = vmatprep.subr.bf16.mxu1 %v2408_v31  ;;  %2044 = vmatprep.mubr.msk.bf16.mxu1 %vm2409_vm3, %v2408_v31  ;;  %s1412_s6 = scalar_lea.vmem [#allocation2], %s1922_s25  ;;  %s1487_s30 = scalar_lea.vmem [#allocation3], %s1922_s25 }
 0x2d0   : >> { %s1926_s19 = sshll.u32 %s2399_s5, 2 }
 0x2d1   : >> { %v1488_v36 = vld [vmem:[%s1487_s30] sm:$0xff] }
 0x2d3   : >> { %s1341_s24 = scalar_lea.vmem %s2963_s12, %s1936_s23  ;;  %v1413_v34 = vld [vmem:[%s1412_s6] sm:$0xff]  ;;  %s2965_s23 = sld [smem:[#allocation21_spill]] }
 0x2d4   : >> { %v2187_v32 = vld [vmem:[%s1341_s24] sm:$0xff]   ;;  %v2188_v33 = vld [vmem:[%s1341_s24 + $0x8] sm:$0xff]   ;;  %v1419_v35 = vsel %vm793_vm2, %v1413_v34, 0  ;;  %s1346_s7 = scalar_lea.vmem %s2964_s18, %s2399_s5  ;;  %s1336_s5 = sadd.s32 1, %s2399_s5  }
 0x2d5   : >> { %2035 = vmatpush3.bf16.msra.mxu0 %v2187_v32  ;;  %2043 = vmatpush3.bf16.xpose.msra.mxu1 %v1419_v35  ;;  %v1918_v37 = vld [vmem:[%s1346_s7] ss:$0 sm:$0xff]  ;;  %p1333_p8 = scmp.ge.s32.totalorder %s1336_s5, 4  }
 0x2d6   : >> { %2036 = vmatprep.subr.bf16.mxu0 %v2408_v31  ;;  %2054 = vmatprep.subr.bf16.mxu1 %v2408_v31  ;;  %v1928_v20 = vld [vmem:[#allocation8] ss:$0 sm:$0xff] (%p1333_p8) }
 0x2d9   : >> { %2037 = vmatpush3.bf16.msra.mxu0 %v2188_v33  ;;  %s1535_s28 = scalar_lea.vmem %s2965_s23, %s1926_s19 }
 0x2da   : >> { %2048 = vmatprep.subr.bf16.mxu0 %v2408_v31  ;;  %v1536_v61 = vld [vmem:[%s1535_s28] sm:$0xf] }
 0x2db   : >> { %v1542_v62 = vsel %vm1540_vm5, %v1536_v61, 0 }
 0x2dc   : >> { %2039 = vmatmul.mubr.msk.bf16.vlgmr.msra.gmra.mrb[0].mxu0 %vm675_vm0, %v1330_v23 }
 0x2dd   : >> { %2050 = vmatprep.mubr.msk.bf16.mxu0 %vm2409_vm3, %v2408_v31  ;;  %2049 = vmatpush3.bf16.msra.mxu0 %v1488_v36 }
 0x3af   : >> { %v1403_v38 = vpop.f32.mrb[0].mxu0 }
 0x3b0   : >> { %v2040_v39 = vpop.f32.mrb[1].mxu0  ;;  %v1404_v41 = vadd.f32 %v1918_v37, %v1403_v38 }
 0x3b1   : >> { %v1406_v40 = vpop.f32.mrb[2].mxu0 }
 0x3b2   : >> { %v1407_v42 = vadd.f32 %v1918_v37, %v1406_v40  ;;  %v2041_v43 = vpop.f32.mrb[3].mxu0 }
 0x3b3   : > { %v1930_v43 = vld [vmem:[#allocation11] ss:$0 sm:$0xff] (%p1333_p8) }
 0x3b4   : >> { %v1410_v44 = vpack.c.bf16 %v1407_v42, %v1404_v41  ;;  %v1929_v41 = vld [vmem:[#allocation9] ss:$0 sm:$0xff] (%p1333_p8) }
 0x3b6   : >> { %2045 = vmatmul.mubr.msk.bf16.vlgmr.msra.gmra.mrb[0].mxu1 %vm793_vm2, %v1410_v44 }
 0x3b7   : >> { %2056 = vmatprep.mubr.msk.bf16.mxu1 %vm2409_vm3, %v2408_v31  ;;  %2055 = vmatpush3.bf16.msra.mxu1 %v1542_v62 }
 0x489   : >> { %v1455_v45 = vpop.f32.mrb[0].mxu1 }
 0x48a   : >> { %v2046_v46 = vpop.f32.mrb[1].mxu1  ;;  %v1463_v47 = vsel %vm1462_vm4, %v1455_v45, -inf }
 0x48b   : >> { %1464 = vmax.xlane.f32.xlu0 %v1463_v47  ;;  %v1458_v48 = vpop.f32.mrb[2].mxu1 }
 0x48c   : >> { %v2047_v49 = vpop.f32.mrb[3].mxu1  ;;  %v1466_v50 = vsel %vm1462_vm4, %v1458_v48, -inf }
 0x48f   : >> { %1467 = vmax.xlane.f32.xlu0 %v1466_v50 }
 0x518   : >> { %v1465_v51 = vpop.xlane.xlu0 %1464 }
 0x519   : >> { %v1469_v52 = vsub.f32 %v1455_v45, %v1465_v51 }
 0x51b   : >> { %v1471_v53 = vmul.f32 1.442695, %v1469_v52 }
 0x51c   : >> { %v1468_v54 = vpop.xlane.xlu0 %1467 }
 0x51d   : >> { %2189 = vpow2.f32 %v1471_v53  ;;  %v1470_v55 = vsub.f32 %v1458_v48, %v1468_v54 }
 0x51f   : >> { %v1473_v56 = vmul.f32 1.442695, %v1470_v55 }
 0x521   : >> { %2191 = vpow2.f32 %v1473_v56 }
 0x527   : >> { %v2190_v57 = vpop.eup %2189 }
 0x528   : >> { %v1475_v58 = vsel %vm1462_vm4, %v2190_v57, 0.0 }
 0x529   : >> { %1476 = vadd.xlane.f32.xlu1 %v1475_v58 }
 0x52b   : >> { %v2192_v59 = vpop.eup %2191 }
 0x52c   : >> { %v1478_v60 = vsel %vm1462_vm4, %v2192_v59, 0.0 }
 0x52d   : >> { %1479 = vadd.xlane.f32.xlu1 %v1478_v60 }
 0x5b6   : >> { %v1477_v63 = vpop.xlane.xlu1 %1476 }
 0x5b7   : >> { %2193 = vrcp.f32 %v1477_v63 }
 0x5ba   : >> { %v1480_v0 = vpop.xlane.xlu1 %1479 }
 0x5bb   : >> { %2195 = vrcp.f32 %v1480_v0 }
 0x5c1   : >> { %v2194_v1 = vpop.eup %2193 }
 0x5c2   : >> { %v1483_v4 = vmul.f32 %v2194_v1, %v2190_v57 }
 0x5c5   : >> { %v2196_v3 = vpop.eup %2195 }
 0x5c6   : >> { %v1484_v5 = vmul.f32 %v2196_v3, %v2192_v59 }
 0x5c8   : >> { %v1485_v6 = vpack.c.bf16 %v1484_v5, %v1483_v4 }
 0x5ca   : >> { %2051 = vmatmul.mubr.msk.bf16.vlgmr.msra.gmra.mrb[4].mxu0 %vm1462_vm4, %v1485_v6 }
 0x69d   : >> { %v1526_v7 = vpop.f32.mrb[4].mxu0 }
 0x69e   : >> { %v2052_v8 = vpop.f32.mrb[5].mxu0 }
 0x69f   : >> { %v1529_v9 = vpop.f32.mrb[6].mxu0 }
 0x6a0   : >> { %v1533_v10 = vpack.c.bf16 %v1529_v9, %v1526_v7  ;;  %v2053_v11 = vpop.f32.mrb[7].mxu0 }
 0x6a2   : >> { %2057 = vmatmul.mubr.msk.bf16.vlgmr.msra.gmra.mrb[4].mxu1 %vm793_vm2, %v1533_v10 }
 0x774   : > { %1335 = sbr.rel (!%p1333_p8) target bundleno = 717 (0x2cd), region = 175 }
 0x775   : >> { %v1578_v12 = vpop.f32.mrb[4].mxu1 }
 0x776   : >> { %v1585_v13 = vadd.f32 %v2395_v30, %v1578_v12   ;;  %v2058_v14 = vpop.f32.mrb[5].mxu1 }
 0x777   : >> { %v1581_v15 = vpop.f32.mrb[6].mxu1 }
 0x778   : >> { %v1586_v16 = vadd.f32 %v2391_v29, %v1581_v15   ;;  %v2059_v18 = vpop.f32.mrb[7].mxu1  ;;  %v2967_v30 = vmov %v1585_v13  ;;  %v1594_v21 = vadd.f32 (%p1333_p8), %v1928_v20, %v1585_v13 }
 0x77a   : >> { %v2966_v29 = vmov %v1586_v16  ;;  %v1595_v24 = vadd.f32 (%p1333_p8), %v1928_v20, %v1586_v16  ;;  %v1598_v25 = vsel (%p1333_p8), %vm675_vm0, %v1594_v21, 0.0 }
 0x77b   : > { %1599 = vadd.xlane.f32.xlu0 %v1598_v25 }
 0x77c   : > { %v1601_v26 = vsel %vm675_vm0, %v1595_v24, 0.0 }
 0x77f   : > { %1602 = vadd.xlane.f32.xlu0 %v1601_v26 }
 0x808   : > { %v1600_v27 = vpop.xlane.xlu0 %1599 }
 0x809   : > { %v1604_v28 = vmul.f32 0.03125, %v1600_v27 }
 0x80b   : > { %v1606_v30 = vsub.f32 %v1594_v21, %v1604_v28 }
 0x80c   : > { %v1603_v31 = vpop.xlane.xlu0 %1602 }
 0x80d   : > { %v1605_v32 = vmul.f32 0.03125, %v1603_v31  ;;  %v1608_v33 = vmul.f32 %v1606_v30, %v1606_v30 }
 0x80f   : > { %v1607_v34 = vsub.f32 %v1595_v24, %v1605_v32  ;;  %v1610_v35 = vsel %vm675_vm0, %v1608_v33, 0.0 }
 0x810   : > { %1611 = vadd.xlane.f32.xlu1 %v1610_v35 }
 0x811   : > { %v1609_v36 = vmul.f32 %v1607_v34, %v1607_v34 }
 0x813   : > { %v1613_v19 = vsel %vm675_vm0, %v1609_v36, 0.0 }
 0x814   : > { %1614 = vadd.xlane.f32.xlu1 %v1613_v19 }
 0x89d   : > { %v1612_v22 = vpop.xlane.xlu1 %1611 }
 0x89e   : > { %v1616_v23 = vmul.f32 0.03125, %v1612_v22 }
 0x8a0   : > { %v1618_v29 = vadd.f32 1e-05, %v1616_v23 }
 0x8a1   : > { %v1615_v37 = vpop.xlane.xlu1 %1614 }
 0x8a2   : > { %2197 = vrsqrt.f32 %v1618_v29  ;;  %v1617_v38 = vmul.f32 0.03125, %v1615_v37 }
 0x8a4   : > { %v1619_v39 = vadd.f32 1e-05, %v1617_v38 }
 0x8a6   : > { %2199 = vrsqrt.f32 %v1619_v39 }
 0x8ac   : > { %v2198_v40 = vpop.eup %2197 }
 0x8ad   : > { %v1622_v42 = vmul.f32 %v2198_v40, %v1606_v30 }
 0x8af   : > { %v1630_v44 = vmul.f32 %v1929_v41, %v1622_v42 }
 0x8b0   : > { %v2200_v45 = vpop.eup %2199 }
 0x8b1   : > { %v1638_v46 = vadd.f32 %v1930_v43, %v1630_v44  ;;  %v1623_v47 = vmul.f32 %v2200_v45, %v1607_v34 }
 0x8b3   : > { %v1640_v48 = vadd.f32 %v1638_v46, %v2673_v2  ;;  %v1631_v49 = vmul.f32 %v1929_v41, %v1623_v47 }
 0x8b5   : > { %1642 = vst.msk [vmem:[%s2668_s20] sm:$0xff] %vm675_vm0, %v1640_v48  ;;  %v1639_v50 = vadd.f32 %v1930_v43, %v1631_v49 }
 0x8b7   : > { %v1641_v51 = vadd.f32 %v1639_v50, %v2680_v17 }
 0x8b9   : > { %1643 = vst.msk [vmem:[%s2668_s20 + $0x8] sm:$0xff] %vm675_vm0, %v1641_v51 }
 0x8ba PF: > { %s2968_s5 = sld [smem:[#allocation15_spill]]  ;;  %s2969_s21 = smov %s2383_s22 }
 0x8bb   : > { %s2970_s22 = smov %s2972_s29 }
 0x8c0   : > { %s29_s23 = sadd.s32 1, %s2968_s5  }
 0x8c1   : > { %p26_p3 = scmp.ge.s32.totalorder %s29_s23, 4  }
 0x8c3   :  { %28 = sbr.rel (!%p26_p3) target bundleno = 11 (0xb), region = 186 }
 0x8ca   :  { %1674 = vsyncpa [#allocation5], 1 }
 0x8cb   :  { %1676 = vsyncpa [#allocation5 + $0x1], 1 }
 0x8cc   :  { %1677 = vsyncpa [#allocation7], 1 }
 0x8cd   :  { %1678 = vsyncpa [#allocation10], 1 }

// kernel: decoder_layer.5
= control target key start
LH: loop header
LB: loop body
LE: loop exit
PB: predicated region body
PF: predicated region fallthrough
CT: control target
= control target key end

     0   :  { %vm39_vm0 = vcmask 261120   ;;  %vm199_vm1 = vcmask 523264   ;;  %s603_s0 = inlined_call_operand.vmem [shape: f32[32,32], index: 0, kind: input, shape index: {}]   ;;  %s604_s3 = inlined_call_operand.vmem [shape: bf16[32,64], index: 3, kind: input, shape index: {}]   ;;  %s605_s1 = inlined_call_operand.vmem [shape: f32[1,32], index: 1, kind: input, shape index: {}]   ;;  %s606_s2 = inlined_call_operand.vmem [shape: f32[1,32], index: 2, kind: input, shape index: {}]   ;;  %s607_s4 = inlined_call_operand.vmem [shape: f32[1,64], index: 4, kind: input, shape index: {}]   ;;  %s608_s7 = inlined_call_operand.vmem [shape: bf16[64,32], index: 7, kind: input, shape index: {}]   ;;  %s609_s5 = inlined_call_operand.vmem [shape: f32[1,64], index: 5, kind: input, shape index: {}]   ;;  %s610_s6 = inlined_call_operand.vmem [shape: f32[1,64], index: 6, kind: input, shape index: {}]   ;;  %s611_s8 = inlined_call_operand.vmem [shape: f32[1,32], index: 8, kind: input, shape index: {}]   ;;  %s612_s9 = inlined_call_operand.vmem [shape: f32[32,32], index: 9, kind: output, shape index: {}]  }
   0x1   :  { %v502_v0 = vld [vmem:[%s603_s0] sm:$0xff]  ;;  %v507_v1 = vld [vmem:[%s603_s0 + $0x10] sm:$0xff]  ;;  %v512_v2 = vld [vmem:[%s603_s0 + $0x8] sm:$0xff] }
   0x2   :  { %v40_v3 = vsel %vm39_vm0, %v502_v0, 0.0  ;;  %v46_v4 = vsel %vm39_vm0, %v507_v1, 0.0  ;;  %v521_v5 = vld [vmem:[%s603_s0 + $0x18] sm:$0xff]  ;;  %v43_v6 = vsel %vm39_vm0, %v512_v2, 0.0  ;;  %v427_v28 = vld [vmem:[%s604_s3] sm:$0xff]   ;;  %v428_v29 = vld [vmem:[%s604_s3 + $0x8] sm:$0xff]  }
   0x3   :  { %41 = vadd.xlane.f32.xlu0 %v40_v3  ;;  %47 = vadd.xlane.f32.xlu1 %v46_v4  ;;  %v49_v7 = vsel %vm39_vm0, %v521_v5, 0.0  ;;  %v381_v44 = vld [vmem:[%s605_s1] ss:$0 sm:$0xff] }
   0x4   :  { %407 = vmatprep.subr.bf16.mxu0 %v427_v28  ;;  %v382_v50 = vld [vmem:[%s606_s2] ss:$0 sm:$0xff] }
   0x5   :  { %408 = vmatpush3.bf16.msra.mxu0 %v427_v28  ;;  %v383_v62 = vld [vmem:[%s607_s4] ss:$0 sm:$0xff] }
   0x6   :  { %409 = vmatprep.subr.bf16.mxu0 %v428_v29 }
   0x7   :  { %44 = vadd.xlane.f32.xlu0 %v43_v6  ;;  %50 = vadd.xlane.f32.xlu1 %v49_v7 }
   0x9   :  { %410 = vmatpush3.bf16.msra.mxu0 %v428_v29 }
  0x90   :  { %v42_v8 = vpop.xlane.xlu0 %41  ;;  %v48_v9 = vpop.xlane.xlu1 %47 }
  0x91   :  { %v53_v10 = vmul.f32 0.03125, %v42_v8  ;;  %v55_v11 = vmul.f32 0.03125, %v48_v9 }
  0x93   :  { %v57_v12 = vsub.f32 %v502_v0, %v53_v10  ;;  %v59_v13 = vsub.f32 %v507_v1, %v55_v11 }
  0x94   :  { %v45_v14 = vpop.xlane.xlu0 %44  ;;  %v51_v15 = vpop.xlane.xlu1 %50 }
  0x95   :  { %v54_v16 = vmul.f32 0.03125, %v45_v14  ;;  %v56_v17 = vmul.f32 0.03125, %v51_v15  ;;  %v61_v18 = vmul.f32 %v57_v12, %v57_v12  ;;  %v63_v19 = vmul.f32 %v59_v13, %v59_v13 }
  0x97   :  { %v58_v20 = vsub.f32 %v512_v2, %v54_v16  ;;  %v60_v21 = vsub.f32 %v521_v5, %v56_v17  ;;  %v65_v22 = vsel %vm39_vm0, %v61_v18, 0.0  ;;  %v71_v23 = vsel %vm39_vm0, %v63_v19, 0.0 }
  0x98   :  { %66 = vadd.xlane.f32.xlu0 %v65_v22 }
  0x99   :  { %v62_v24 = vmul.f32 %v58_v20, %v58_v20  ;;  %v64_v25 = vmul.f32 %v60_v21, %v60_v21 }
  0x9b   :  { %v68_v26 = vsel %vm39_vm0, %v62_v24, 0.0  ;;  %v74_v27 = vsel %vm39_vm0, %v64_v25, 0.0 }
  0x9c   :  { %72 = vadd.xlane.f32.xlu0 %v71_v23  ;;  %69 = vadd.xlane.f32.xlu1 %v68_v26 }
  0xa0   :  { %75 = vadd.xlane.f32.xlu1 %v74_v27 }
 0x125   :  { %v67_v30 = vpop.xlane.xlu0 %66 }
 0x126   :  { %v77_v31 = vmul.f32 0.03125, %v67_v30 }
 0x128   :  { %v81_v32 = vadd.f32 1e-05, %v77_v31 }
 0x129   :  { %v70_v33 = vpop.xlane.xlu1 %69  ;;  %v73_v34 = vpop.xlane.xlu0 %72 }
 0x12a   :  { %433 = vrsqrt.f32 %v81_v32  ;;  %v78_v35 = vmul.f32 0.03125, %v70_v33  ;;  %v79_v36 = vmul.f32 0.03125, %v73_v34 }
 0x12c   :  { %v82_v37 = vadd.f32 1e-05, %v78_v35  ;;  %v83_v38 = vadd.f32 1e-05, %v79_v36 }
 0x12d   :  { %v76_v39 = vpop.xlane.xlu1 %75 }
 0x12e   :  { %435 = vrsqrt.f32 %v82_v37  ;;  %v80_v40 = vmul.f32 0.03125, %v76_v39  ;;  %v429_v39 = vld [vmem:[%s608_s7] sm:$0xff]  }
 0x12f   :  { %437 = vrsqrt.f32 %v83_v38  ;;  %415 = vmatprep.subr.bf16.mxu1 %v429_v39 }
 0x130   :  { %v84_v41 = vadd.f32 1e-05, %v80_v40  ;;  %416 = vmatpush3.bf16.msra.mxu1 %v429_v39  ;;  %v430_v40 = vld [vmem:[%s608_s7 + $0x8] sm:$0xff]  }
 0x131   :  { %417 = vmatprep.subr.bf16.mxu1 %v430_v40 }
 0x132   :  { %439 = vrsqrt.f32 %v84_v41  ;;  %v431_v41 = vld [vmem:[%s608_s7 + $0x10] sm:$0xff]  }
 0x134   :  { %v434_v42 = vpop.eup %433  ;;  %418 = vmatpush3.bf16.msra.mxu1 %v430_v40 }
 0x135   :  { %v89_v43 = vmul.f32 %v434_v42, %v57_v12  ;;  %v432_v42 = vld [vmem:[%s608_s7 + $0x18] sm:$0xff]   ;;  %419 = vmatprep.subr.bf16.mxu1 %v431_v41 }
 0x137   :  { %v99_v48 = vmul.f32 %v381_v44, %v89_v43 }
 0x138   :  { %v436_v45 = vpop.eup %435  ;;  %420 = vmatpush3.bf16.msra.mxu1 %v431_v41 }
 0x139   :  { %v438_v46 = vpop.eup %437  ;;  %v90_v47 = vmul.f32 %v436_v45, %v58_v20  ;;  %v109_v54 = vadd.f32 %v382_v50, %v99_v48  ;;  %421 = vmatprep.subr.bf16.mxu1 %v432_v42 }
 0x13a   :  { %v91_v49 = vmul.f32 %v438_v46, %v59_v13 }
 0x13b   :  { %v100_v51 = vmul.f32 %v381_v44, %v90_v47 }
 0x13c   :  { %v440_v52 = vpop.eup %439  ;;  %v101_v56 = vmul.f32 %v381_v44, %v91_v49  ;;  %422 = vmatpush3.bf16.msra.mxu1 %v432_v42 }
 0x13d   :  { %v92_v53 = vmul.f32 %v440_v52, %v60_v21  ;;  %v110_v55 = vadd.f32 %v382_v50, %v100_v51 }
 0x13e   :  { %v111_v59 = vadd.f32 %v382_v50, %v101_v56  ;;  %v388_v56 = vld [vmem:[%s609_s5] ss:$0 sm:$0xff] }
 0x13f   :  { %v113_v57 = vpack.c.bf16 %v110_v55, %v109_v54  ;;  %v102_v58 = vmul.f32 %v381_v44, %v92_v53 }
 0x141   :  { %411 = vmatprep.mubr.msk.bf16.mxu0 %vm39_vm0, %v113_v57  ;;  %v112_v60 = vadd.f32 %v382_v50, %v102_v58 }
 0x143   :  { %v114_v61 = vpack.c.bf16 %v112_v60, %v111_v59 }
 0x145   :  { %412 = vmatmul.mubr.msk.bf16.vlgmr.msra.gmra.mrb[0].mxu0 %vm39_vm0, %v114_v61 }
 0x218   :  { %v413_v63 = vpop.f32.mrb[0].mxu0 }
 0x219   :  { %v178_v3 = vpop.f32.mrb[1].mxu0  ;;  %v187_v4 = vadd.f32 %v413_v63, %v383_v62 }
 0x21a   :  { %v179_v6 = vadd.f32 %v383_v62, %v178_v3  ;;  %v414_v7 = vpop.f32.mrb[2].mxu0 }
 0x21b   :  { %v181_v8 = vpop.f32.mrb[3].mxu0  ;;  %v190_v10 = vadd.f32 %v414_v7, %v383_v62  ;;  %v195_v12 = vmax.f32 %v187_v4, 0.0 }
 0x21c   :  { %v193_v9 = vmax.f32 %v179_v6, 0.0  ;;  %v182_v11 = vadd.f32 %v383_v62, %v181_v8  ;;  %v389_v62 = vld [vmem:[%s610_s6] ss:$0 sm:$0xff] }
 0x21d   :  { %v196_v15 = vmax.f32 %v190_v10, 0.0  ;;  %v206_v17 = vsel %vm199_vm1, %v195_v12, 0.0 }
 0x21e   :  { %v194_v13 = vmax.f32 %v182_v11, 0.0  ;;  %v200_v14 = vsel %vm199_vm1, %v193_v9, 0.0 }
 0x21f   :  { %201 = vadd.xlane.f32.xlu0 %v200_v14  ;;  %v209_v18 = vsel %vm199_vm1, %v196_v15, 0.0 }
 0x220   :  { %v203_v16 = vsel %vm199_vm1, %v194_v13, 0.0 }
 0x221   :  { %204 = vadd.xlane.f32.xlu1 %v203_v16 }
 0x223   :  { %207 = vadd.xlane.f32.xlu0 %v206_v17 }
 0x225   :  { %210 = vadd.xlane.f32.xlu1 %v209_v18 }
 0x2ac   :  { %v202_v19 = vpop.xlane.xlu0 %201 }
 0x2ad   :  { %v213_v20 = vmul.f32 0.015625, %v202_v19 }
 0x2ae   :  { %v205_v21 = vpop.xlane.xlu1 %204 }
 0x2af   :  { %v217_v22 = vsub.f32 %v193_v9, %v213_v20  ;;  %v214_v23 = vmul.f32 0.015625, %v205_v21 }
 0x2b0   :  { %v208_v24 = vpop.xlane.xlu0 %207 }
 0x2b1   :  { %v218_v25 = vsub.f32 %v194_v13, %v214_v23  ;;  %v215_v26 = vmul.f32 0.015625, %v208_v24  ;;  %v221_v27 = vmul.f32 %v217_v22, %v217_v22 }
 0x2b2   :  { %v211_v28 = vpop.xlane.xlu1 %210 }
 0x2b3   :  { %v219_v29 = vsub.f32 %v195_v12, %v215_v26  ;;  %v216_v30 = vmul.f32 0.015625, %v211_v28  ;;  %v225_v31 = vsel %vm199_vm1, %v221_v27, 0.0  ;;  %v222_v32 = vmul.f32 %v218_v25, %v218_v25 }
 0x2b4   :  { %226 = vadd.xlane.f32.xlu0 %v225_v31 }
 0x2b5   :  { %v220_v33 = vsub.f32 %v196_v15, %v216_v30  ;;  %v228_v34 = vsel %vm199_vm1, %v222_v32, 0.0  ;;  %v223_v35 = vmul.f32 %v219_v29, %v219_v29  ;;  %v390_v15 = vld [vmem:[%s611_s8] ss:$0 sm:$0xff] }
 0x2b6   :  { %229 = vadd.xlane.f32.xlu1 %v228_v34 }
 0x2b7   :  { %v231_v36 = vsel %vm199_vm1, %v223_v35, 0.0  ;;  %v224_v37 = vmul.f32 %v220_v33, %v220_v33 }
 0x2b8   :  { %232 = vadd.xlane.f32.xlu0 %v231_v36 }
 0x2b9   :  { %v234_v38 = vsel %vm199_vm1, %v224_v37, 0.0 }
 0x2ba   :  { %235 = vadd.xlane.f32.xlu1 %v234_v38 }
 0x341   :  { %v227_v43 = vpop.xlane.xlu0 %226 }
 0x342   :  { %v237_v44 = vmul.f32 0.015625, %v227_v43 }
 0x343   :  { %v230_v45 = vpop.xlane.xlu1 %229 }
 0x344   :  { %v241_v46 = vadd.f32 1e-05, %v237_v44  ;;  %v238_v47 = vmul.f32 0.015625, %v230_v45 }
 0x345   :  { %v233_v48 = vpop.xlane.xlu0 %232 }
 0x346   :  { %441 = vrsqrt.f32 %v241_v46  ;;  %v242_v49 = vadd.f32 1e-05, %v238_v47  ;;  %v239_v50 = vmul.f32 0.015625, %v233_v48 }
 0x347   :  { %v236_v51 = vpop.xlane.xlu1 %235 }
 0x348   :  { %443 = vrsqrt.f32 %v242_v49  ;;  %v243_v52 = vadd.f32 1e-05, %v239_v50  ;;  %v240_v53 = vmul.f32 0.015625, %v236_v51 }
 0x34a   :  { %445 = vrsqrt.f32 %v243_v52  ;;  %v244_v54 = vadd.f32 1e-05, %v240_v53 }
 0x34c   :  { %447 = vrsqrt.f32 %v244_v54 }
 0x350   :  { %v442_v55 = vpop.eup %441 }
 0x351   :  { %v249_v57 = vmul.f32 %v442_v55, %v217_v22 }
 0x352   :  { %v444_v58 = vpop.eup %443 }
 0x353   :  { %v250_v59 = vmul.f32 %v444_v58, %v218_v25  ;;  %v259_v60 = vmul.f32 %v388_v56, %v249_v57 }
 0x354   :  { %v446_v61 = vpop.eup %445 }
 0x355   :  { %v251_v63 = vmul.f32 %v446_v61, %v219_v29  ;;  %v260_v3 = vmul.f32 %v388_v56, %v250_v59  ;;  %v269_v7 = vadd.f32 %v389_v62, %v259_v60 }
 0x356   :  { %v448_v4 = vpop.eup %447 }
 0x357   :  { %v252_v6 = vmul.f32 %v448_v4, %v220_v33  ;;  %v270_v8 = vadd.f32 %v389_v62, %v260_v3  ;;  %v261_v9 = vmul.f32 %v388_v56, %v251_v63 }
 0x359   :  { %v273_v10 = vpack.c.bf16 %v270_v8, %v269_v7  ;;  %v262_v11 = vmul.f32 %v388_v56, %v252_v6  ;;  %v271_v12 = vadd.f32 %v389_v62, %v261_v9 }
 0x35b   :  { %423 = vmatprep.mubr.msk.bf16.mxu1 %vm199_vm1, %v273_v10  ;;  %v272_v13 = vadd.f32 %v389_v62, %v262_v11 }
 0x35d   :  { %v274_v14 = vpack.c.bf16 %v272_v13, %v271_v12 }
 0x35f   :  { %424 = vmatmul.mubr.msk.bf16.vlgmr.msra.gmra.mrb[0].mxu1 %vm199_vm1, %v274_v14 }
 0x432   :  { %v425_v16 = vpop.f32.mrb[0].mxu1 }
 0x433   :  { %v363_v17 = vadd.f32 %v425_v16, %v390_v15  ;;  %v354_v18 = vpop.f32.mrb[1].mxu1 }
 0x434   :  { %v355_v19 = vadd.f32 %v390_v15, %v354_v18  ;;  %v426_v20 = vpop.f32.mrb[2].mxu1 }
 0x435   :  { %v371_v21 = vadd.f32 %v363_v17, %v507_v1  ;;  %v366_v22 = vadd.f32 %v426_v20, %v390_v15  ;;  %v357_v23 = vpop.f32.mrb[3].mxu1 }
 0x436   :  { %v369_v24 = vadd.f32 %v355_v19, %v502_v0  ;;  %v358_v25 = vadd.f32 %v390_v15, %v357_v23 }
 0x437   :  { %375 = vst.msk [vmem:[%s612_s9 + $0x10] sm:$0xff] %vm39_vm0, %v371_v21  ;;  %v372_v26 = vadd.f32 %v366_v22, %v521_v5 }
 0x438   :  { %373 = vst.msk [vmem:[%s612_s9] sm:$0xff] %vm39_vm0, %v369_v24  ;;  %v370_v27 = vadd.f32 %v358_v25, %v512_v2 }
 0x439   :  { %376 = vst.msk [vmem:[%s612_s9 + $0x18] sm:$0xff] %vm39_vm0, %v372_v26 }
 0x43a   :  { %374 = vst.msk [vmem:[%s612_s9 + $0x8] sm:$0xff] %vm39_vm0, %v370_v27 }

</bundles_post_ra>
